<compile_context>
chip_gen: v7x
topology: tpu7x:2x2x1
jax: 0.10.0
libtpu: 0.0.40
codegen_flags: <defaults>
</compile_context>

<pallas_src>
import functools

import jax
import jax.numpy as jnp
from jax.experimental import pallas as pl
from jax.experimental.pallas import tpu as pltpu


# ---------------------------------------------------------------------------
# Kernel
# ---------------------------------------------------------------------------
def _local_attention_kernel(q_ref, kv_ref, wq_ref, wkv_ref, bq_ref, bkv_ref,
                            wo_ref, bo_ref, out_ref, *rest,
                            n_heads, approx_recip):
    """One S-tile of the fused MHA forward.

    q_ref / kv_ref: (N, L, D) with N = tile of S (attention batch), L = B.
    Weights/biases are resident blocks (constant index_map).
    """
    if len(rest) == 2:
        attnw_ref, ctx_ref = rest
    else:
        attnw_ref = None
        (ctx_ref,) = rest

    N, L, D = q_ref.shape
    H = n_heads
    hd = D // H
    scale = 1.0 / float(hd) ** 0.5
    f32 = jnp.float32
    cdt = q_ref.dtype                          # MXU operand dtype (bf16 or f32)

    # ---- fused in-projections (full-D wide, MXU-efficient) -----------------
    q2 = q_ref[...].reshape(N * L, D)
    kv2 = kv_ref[...].reshape(N * L, D)
    qp = jnp.dot(q2, wq_ref[...], preferred_element_type=f32) + bq_ref[...]
    kvp = jnp.dot(kv2, wkv_ref[...], preferred_element_type=f32) + bkv_ref[...]
    qs = (qp * scale).reshape(N, L, D)         # f32, query pre-scaled in f32
    kvp = kvp.reshape(N, L, 2 * D)             # f32, [K | V] projections

    inv_h = 1.0 / float(H)

    # ---- per-head attention with hd-wide contraction -----------------------
    for h in range(H):                         # static loop, H is small
        lo, hi = h * hd, (h + 1) * hd
        q_h = qs[:, :, lo:hi].astype(cdt)                   # (N, L, hd)
        k_h = kvp[:, :, lo:hi].astype(cdt)                  # (N, L, hd)
        v_h = kvp[:, :, D + lo:D + hi].astype(cdt)          # (N, L, hd)

        s = jnp.einsum('nld,nmd->nlm', q_h, k_h,
                       preferred_element_type=f32)          # (N, L, L)
        s = s - jnp.max(s, axis=-1, keepdims=True)
        e = jnp.exp(s)
        p = e * pl.reciprocal(jnp.sum(e, axis=-1, keepdims=True),
                              approx=approx_recip)          # f32 softmax

        # Head context into VMEM scratch (bounds live ranges across the loop).
        ctx_ref[:, :, lo:hi] = jnp.einsum('nlm,nmd->nld', p.astype(cdt), v_h,
                                          preferred_element_type=f32)
        if attnw_ref is not None:                           # head-averaged weights
            if h == 0:
                attnw_ref[...] = p * inv_h
            else:
                attnw_ref[...] += p * inv_h

    # ---- out-projection -----------------------------------------------------
    ctx2 = ctx_ref[...].reshape(N * L, D).astype(cdt)
    out = jnp.dot(ctx2, wo_ref[...], preferred_element_type=f32) + bo_ref[...]
    out_ref[...] = out.reshape(N, L, D).astype(out_ref.dtype)


# ---------------------------------------------------------------------------
# VMEM / tiling heuristics
# ---------------------------------------------------------------------------
def _vmem_capacity_bytes():
    try:
        info = pltpu.get_tpu_info()
        for name in ("vmem_capacity_bytes", "vmem_bytes", "vmem_size_bytes"):
            v = getattr(info, name, None)
            if v:
                return int(v)
    except Exception:
        pass
    return 64 * 1024 * 1024          # conservative fallback (v7x per-core VMEM)


def _per_row_vmem_bytes(B, D, need_weights, compute_bytes):
    # Bytes of VMEM per unit of block_n (per attention-batch row in the tile).
    return B * (
        2 * D * compute_bytes * 2                 # q + kv input tiles, double buffered
        + D * 4 * 2                               # output tile (<= f32), double buffered
        + (B * 4 * 2 if need_weights else 0)      # attn-weights tile, double buffered
        + 6 * D * 4                               # f32 intermediates: qp, kvp(2D), qs, ctx
        + 4 * B * 4)                              # per-head s / e / p live values


def _weight_vmem_bytes(D, compute_bytes):
    # Wq (D,D) + Wkv (D,2D) + Wo (D,D) in compute dtype + biases in f32, x2 buffers.
    return 4 * D * D * compute_bytes * 2 + 4 * D * 4 * 2


def _choose_block_n(S, B, D, need_weights, compute_bytes, vmem_cap):
    per_row = _per_row_vmem_bytes(B, D, need_weights, compute_bytes)
    budget = int(0.6 * vmem_cap) - _weight_vmem_bytes(D, compute_bytes)
    cap = max(1, min(budget // max(per_row, 1), 512, S))
    if S >= 2:
        cap = min(cap, -(-S // 2))   # keep >= 2 grid steps (v7x has 2 TensorCores)
    cap = max(cap, 1)
    divisors = [d for d in range(1, cap + 1) if S % d == 0]
    best = max(divisors)
    if best >= min(cap, 8):
        return best                  # divides S exactly, no padding
    return cap                       # ragged S: caller pads up to a multiple


# ---------------------------------------------------------------------------
# Wrapper
# ---------------------------------------------------------------------------
def local_attention(query, key, value, params, *, n_heads, window_size,
                    need_weights=True, compute_dtype=jnp.bfloat16, block_n=None):
    """query/key/value: (B, S, D).  Returns (attn_output (B,S,D), attn_weights (S,B,B) or None)."""
    del key   # reproduces the new_key/new_value aliasing of the reference module
    B, S, D = query.shape
    assert D % n_heads == 0, "d_model must be divisible by n_heads"
    out_dtype = query.dtype
    compute_bytes = jnp.dtype(compute_dtype).itemsize

    # Windowed mean of `value` along S via prefix sums: O(S*B*D), no (S,S) matrix.
    v32 = value.astype(jnp.float32)
    prefix = jnp.concatenate(
        [jnp.zeros((B, 1, D), jnp.float32), jnp.cumsum(v32, axis=1)], axis=1)
    idx = jnp.arange(S)
    lo = jnp.clip(idx - window_size, 0, S)
    hi = jnp.clip(idx + window_size + 1, 0, S)
    counts = (hi - lo).astype(jnp.float32)
    kv = (jnp.take(prefix, hi, axis=1) - jnp.take(prefix, lo, axis=1)) \
        / counts[None, :, None]                                       # (B, S, D)

    # Attention-batch axis (S) leading; transposes/casts fuse with the prelude.
    q_t = jnp.transpose(query, (1, 0, 2)).astype(compute_dtype)       # (S, B, D)
    kv_t = jnp.transpose(kv, (1, 0, 2)).astype(compute_dtype)         # (S, B, D)

    wq, wk, wv = jnp.split(params["in_proj_weight"], 3, axis=0)
    bq, bk, bv = jnp.split(params["in_proj_bias"], 3)
    wq_t = wq.T.astype(compute_dtype)                                 # (D, D)
    wkv_t = jnp.concatenate([wk.T, wv.T], axis=1).astype(compute_dtype)   # (D, 2D)
    bq2 = bq.reshape(1, D).astype(jnp.float32)
    bkv2 = jnp.concatenate([bk, bv]).reshape(1, 2 * D).astype(jnp.float32)
    wo_t = params["out_proj_weight"].T.astype(compute_dtype)          # (D, D)
    bo2 = params["out_proj_bias"].reshape(1, D).astype(jnp.float32)

    vmem_cap = _vmem_capacity_bytes()
    if block_n is None:
        block_n = _choose_block_n(S, B, D, need_weights, compute_bytes, vmem_cap)
    block_n = max(1, min(block_n, S))

    # Ragged S: pad the attention-batch axis (independent problems, rows discarded).
    S_pad = -(-S // block_n) * block_n
    if S_pad != S:
        pad = ((0, S_pad - S), (0, 0), (0, 0))
        q_t = jnp.pad(q_t, pad)
        kv_t = jnp.pad(kv_t, pad)
    grid = (S_pad // block_n,)

    per_row = _per_row_vmem_bytes(B, D, need_weights, compute_bytes)
    est = block_n * per_row + _weight_vmem_bytes(D, compute_bytes)
    vmem_limit = int(max(32 * 1024 * 1024, min(2 * est, int(0.9 * vmem_cap))))

    row_map = lambda i: (i, 0, 0)
    const2 = lambda i: (0, 0)

    in_specs = [
        pl.BlockSpec((block_n, B, D), row_map),          # q tile
        pl.BlockSpec((block_n, B, D), row_map),          # kv tile (aliased key/value mean)
        pl.BlockSpec((D, D), const2),                    # Wq^T     (resident)
        pl.BlockSpec((D, 2 * D), const2),                # [Wk^T | Wv^T]
        pl.BlockSpec((1, D), const2),                    # bq
        pl.BlockSpec((1, 2 * D), const2),                # [bk | bv]
        pl.BlockSpec((D, D), const2),                    # Wo^T
        pl.BlockSpec((1, D), const2),                    # bo
    ]
    out_specs = [pl.BlockSpec((block_n, B, D), row_map)]
    out_shapes = [jax.ShapeDtypeStruct((S_pad, B, D), out_dtype)]
    if need_weights:
        out_specs.append(pl.BlockSpec((block_n, B, B), row_map))
        out_shapes.append(jax.ShapeDtypeStruct((S_pad, B, B), jnp.float32))

    kernel_inputs = (q_t, kv_t, wq_t, wkv_t, bq2, bkv2, wo_t, bo2)
    bytes_accessed = int(sum(a.size * a.dtype.itemsize for a in kernel_inputs))
    bytes_accessed += S_pad * B * D * jnp.dtype(out_dtype).itemsize
    bytes_accessed += S_pad * B * B * 4 if need_weights else 0
    cost = pl.CostEstimate(
        flops=int(8 * S_pad * B * D * D + 4 * S_pad * B * B * D),
        transcendentals=int(n_heads * S_pad * B * B),
        bytes_accessed=int(bytes_accessed))

    kernel = functools.partial(
        _local_attention_kernel, n_heads=n_heads,
        approx_recip=bool(jnp.dtype(compute_dtype) != jnp.float32))

    outs = pl.pallas_call(
        kernel,
        grid=grid,
        in_specs=in_specs,
        out_specs=tuple(out_specs),
        out_shape=tuple(out_shapes),
        scratch_shapes=[pltpu.VMEM((block_n, B, D), jnp.float32)],   # ctx accumulator
        compiler_params=pltpu.CompilerParams(
            dimension_semantics=("parallel",),
            vmem_limit_bytes=vmem_limit),
        cost_estimate=cost,
    )(*kernel_inputs)

    if not isinstance(outs, (list, tuple)):
        outs = (outs,)
    attn_out = jnp.transpose(outs[0][:S], (1, 0, 2))        # back to (B, S, D)
    attn_w = outs[1][:S] if need_weights else None
    return attn_out, attn_w


# ---------------------------------------------------------------------------
# Pure-JAX reference (replica of the PyTorch forward, eval mode)
# ---------------------------------------------------------------------------
def _reference(query, key, value, params, *, n_heads, window_size):
    del key
    B, S, D = query.shape
    hd = D // n_heads
    rows = []
    for i in range(S):
        lo = max(0, i - window_size)
        hi = min(S, i + window_size + 1)
        rows.append(value[:, lo:hi, :].mean(axis=1))
    kv = jnp.stack(rows, axis=1)                   # aliased new_key == new_value
    q, k, v = query, kv, kv                        # (L, N, D); L=B, N=S
    wq, wk, wv = jnp.split(params["in_proj_weight"], 3, axis=0)
    bq, bk, bv = jnp.split(params["in_proj_bias"], 3)
    ein = functools.partial(jnp.einsum, precision="highest")
    qp = ein("lnd,ed->lne", q, wq) + bq
    kp = ein("lnd,ed->lne", k, wk) + bk
    vp = ein("lnd,ed->lne", v, wv) + bv

    def split_heads(x):                            # (L, N, D) -> (N, H, L, hd)
        return x.reshape(B, S, n_heads, hd).transpose(1, 2, 0, 3)

    qh, kh, vh = split_heads(qp), split_heads(kp), split_heads(vp)
    s = ein("nhld,nhmd->nhlm", qh * (hd ** -0.5), kh)
    p = jax.nn.softmax(s, axis=-1)
    o = ein("nhlm,nhmd->nhld", p, vh)
    o = o.transpose(2, 0, 1, 3).reshape(B, S, D)   # (L, N, D)
    out = ein("lnd,ed->lne", o, params["out_proj_weight"]) + params["out_proj_bias"]
    return out, p.mean(axis=1)                     # (B,S,D), (S,B,B)


def _make_params(keyseq, D):
    k4, k5, k6, k7 = keyseq
    bound = (6.0 / (2.0 * D)) ** 0.5               # xavier_uniform, as nn.MultiheadAttention
    return {
        "in_proj_weight": jax.random.uniform(k4, (3 * D, D), jnp.float32, -bound, bound),
        "in_proj_bias": 0.1 * jax.random.normal(k5, (3 * D,), jnp.float32),
        "out_proj_weight": jax.random.uniform(k6, (D, D), jnp.float32, -bound, bound),
        "out_proj_bias": 0.1 * jax.random.normal(k7, (D,), jnp.float32),
    }


if __name__ == "__main__":
    B, S, D, H, W = 2, 16, 32, 4, 3
    root = jax.random.PRNGKey(0)
    k1, k2, k3, k4, k5, k6, k7, k8 = jax.random.split(root, 8)
    query = jax.random.normal(k1, (B, S, D), jnp.float32)
    key_in = jax.random.normal(k2, (B, S, D), jnp.float32)
    value = jax.random.normal(k3, (B, S, D), jnp.float32)
    params = _make_params((k4, k5, k6, k7), D)

    ref_out, ref_w = _reference(query, key_in, value, params,
                                n_heads=H, window_size=W)

    # 1) f32 MXU-operand path (exact reciprocal), explicit block_n=8 -> grid=(2,).
    out32, w32 = local_attention(query, key_in, value, params, n_heads=H,
                                 window_size=W, compute_dtype=jnp.float32,
                                 block_n=8)
    jax.block_until_ready((out32, w32))
    assert out32.shape == (B, S, D) and w32.shape == (S, B, B)
    assert bool(jnp.allclose(out32, ref_out, atol=5e-3, rtol=5e-3))
    assert bool(jnp.allclose(w32, ref_w, atol=5e-3, rtol=5e-3))

    # 2) Default bf16 MXU-operand path, auto block_n (VMEM-aware heuristic).
    out16, w16 = local_attention(query, key_in, value, params, n_heads=H,
                                 window_size=W)
    jax.block_until_ready((out16, w16))
    assert bool(jnp.allclose(out16, ref_out, atol=3e-2, rtol=3e-2))
    assert bool(jnp.allclose(w16, ref_w, atol=3e-2, rtol=3e-2))

    # 3) need_weights=False path: skips the (S,B,B) weights output entirely.
    out_nw, w_none = local_attention(query, key_in, value, params, n_heads=H,
                                     window_size=W, need_weights=False)
    jax.block_until_ready(out_nw)
    assert w_none is None
    assert bool(jnp.allclose(out_nw, ref_out, atol=3e-2, rtol=3e-2))

    # 4) Ragged S (no divisor <= cap): exercises the S-padding path.
    S_odd = 13
    q_o = jax.random.normal(k8, (B, S_odd, D), jnp.float32)
    v_o = jax.random.normal(k2, (B, S_odd, D), jnp.float32)
    ref_out_o, ref_w_o = _reference(q_o, q_o, v_o, params, n_heads=H, window_size=W)
    out_o, w_o = local_attention(q_o, q_o, v_o, params, n_heads=H,
                                 window_size=W, compute_dtype=jnp.float32)
    jax.block_until_ready((out_o, w_o))
    assert out_o.shape == (B, S_odd, D) and w_o.shape == (S_odd, B, B)
    assert bool(jnp.allclose(out_o, ref_out_o, atol=5e-3, rtol=5e-3))
    assert bool(jnp.allclose(w_o, ref_w_o, atol=5e-3, rtol=5e-3))

    print("KERNEL_OK")
</pallas_src>

<mosaic_0001>
module attributes {stable_mosaic.version = 11 : i64} {
  func.func @_local_attention_kernel(%arg0: i32, %arg1: memref<8x2x32xf32, #tpu.memory_space<vmem>>, %arg2: memref<8x2x32xf32, #tpu.memory_space<vmem>>, %arg3: memref<32x32xf32, #tpu.memory_space<vmem>>, %arg4: memref<32x64xf32, #tpu.memory_space<vmem>>, %arg5: memref<1x32xf32, #tpu.memory_space<vmem>>, %arg6: memref<1x64xf32, #tpu.memory_space<vmem>>, %arg7: memref<32x32xf32, #tpu.memory_space<vmem>>, %arg8: memref<1x32xf32, #tpu.memory_space<vmem>>, %arg9: memref<8x2x32xf32, #tpu.memory_space<vmem>>, %arg10: memref<8x2x2xf32, #tpu.memory_space<vmem>>, %arg11: memref<8x2x32xf32, #tpu.memory_space<vmem>>) attributes {dimension_semantics = [#tpu.dimension_semantics<parallel>], iteration_bounds = array<i64: 2>, scalar_prefetch = 0 : i64, scratch_operands = 1 : i64, tpu.core_type = #tpu.core_type<tc>, window_params = [{transform_indices = @transform_0, window_bounds = array<i64: 8, 2, 32>}, {transform_indices = @transform_1, window_bounds = array<i64: 8, 2, 32>}, {pipeline_mode = #tpu.pipeline_mode<synchronous>, transform_indices = @transform_2, window_bounds = array<i64: 32, 32>}, {pipeline_mode = #tpu.pipeline_mode<synchronous>, transform_indices = @transform_3, window_bounds = array<i64: 32, 64>}, {pipeline_mode = #tpu.pipeline_mode<synchronous>, transform_indices = @transform_4, window_bounds = array<i64: 1, 32>}, {pipeline_mode = #tpu.pipeline_mode<synchronous>, transform_indices = @transform_5, window_bounds = array<i64: 1, 64>}, {pipeline_mode = #tpu.pipeline_mode<synchronous>, transform_indices = @transform_6, window_bounds = array<i64: 32, 32>}, {pipeline_mode = #tpu.pipeline_mode<synchronous>, transform_indices = @transform_7, window_bounds = array<i64: 1, 32>}, {transform_indices = @transform_8, window_bounds = array<i64: 8, 2, 32>}, {transform_indices = @transform_9, window_bounds = array<i64: 8, 2, 2>}]} {
    %c0 = arith.constant 0 : index
    %c0_0 = arith.constant 0 : index
    %c0_1 = arith.constant 0 : index
    %0 = vector.load %arg1[%c0, %c0_0, %c0_1] : memref<8x2x32xf32, #tpu.memory_space<vmem>>, vector<8x2x32xf32>
    %1 = vector.shape_cast %0 : vector<8x2x32xf32> to vector<16x32xf32>
    %c0_2 = arith.constant 0 : index
    %c0_3 = arith.constant 0 : index
    %c0_4 = arith.constant 0 : index
    %2 = vector.load %arg2[%c0_2, %c0_3, %c0_4] : memref<8x2x32xf32, #tpu.memory_space<vmem>>, vector<8x2x32xf32>
    %3 = vector.shape_cast %2 : vector<8x2x32xf32> to vector<16x32xf32>
    %c0_5 = arith.constant 0 : index
    %c0_6 = arith.constant 0 : index
    %4 = vector.load %arg3[%c0_5, %c0_6] : memref<32x32xf32, #tpu.memory_space<vmem>>, vector<32x32xf32>
    %cst = arith.constant dense<0.000000e+00> : vector<16x32xf32>
    %5 = tpu.matmul %1, %4, %cst {dimension_numbers = #tpu.dot_dimension_numbers<[1], [0], [0], [1], [0, 0, 1, 1], [], []>} : vector<16x32xf32>, vector<32x32xf32>, vector<16x32xf32> -> vector<16x32xf32>
    %c0_7 = arith.constant 0 : index
    %c0_8 = arith.constant 0 : index
    %6 = vector.load %arg5[%c0_7, %c0_8] : memref<1x32xf32, #tpu.memory_space<vmem>>, vector<1x32xf32>
    %7 = vector.broadcast %6 : vector<1x32xf32> to vector<16x32xf32>
    %8 = arith.addf %5, %7 : vector<16x32xf32>
    %c0_9 = arith.constant 0 : index
    %c0_10 = arith.constant 0 : index
    %9 = vector.load %arg4[%c0_9, %c0_10] : memref<32x64xf32, #tpu.memory_space<vmem>>, vector<32x64xf32>
    %cst_11 = arith.constant dense<0.000000e+00> : vector<16x64xf32>
    %10 = tpu.matmul %3, %9, %cst_11 {dimension_numbers = #tpu.dot_dimension_numbers<[1], [0], [0], [1], [0, 0, 1, 1], [], []>} : vector<16x32xf32>, vector<32x64xf32>, vector<16x64xf32> -> vector<16x64xf32>
    %c0_12 = arith.constant 0 : index
    %c0_13 = arith.constant 0 : index
    %11 = vector.load %arg6[%c0_12, %c0_13] : memref<1x64xf32, #tpu.memory_space<vmem>>, vector<1x64xf32>
    %12 = vector.broadcast %11 : vector<1x64xf32> to vector<16x64xf32>
    %13 = arith.addf %10, %12 : vector<16x64xf32>
    %cst_14 = arith.constant 0.353553385 : f32
    %14 = vector.broadcast %cst_14 : f32 to vector<16x32xf32>
    %15 = arith.mulf %8, %14 : vector<16x32xf32>
    %16 = vector.shape_cast %15 : vector<16x32xf32> to vector<8x2x32xf32>
    %17 = vector.shape_cast %13 : vector<16x64xf32> to vector<8x2x64xf32>
    %18 = vector.extract_strided_slice %16 {offsets = [0, 0, 0], sizes = [8, 2, 8], strides = [1, 1, 1]} : vector<8x2x32xf32> to vector<8x2x8xf32>
    %19 = vector.extract_strided_slice %17 {offsets = [0, 0, 0], sizes = [8, 2, 8], strides = [1, 1, 1]} : vector<8x2x64xf32> to vector<8x2x8xf32>
    %20 = vector.extract_strided_slice %17 {offsets = [0, 0, 32], sizes = [8, 2, 8], strides = [1, 1, 1]} : vector<8x2x64xf32> to vector<8x2x8xf32>
    "tpu.trace_start"() <{level = 10 : i32, message = "nld,nmd->nlm"}> : () -> ()
    %cst_15 = arith.constant dense<0.000000e+00> : vector<8x2x2xf32>
    %21 = tpu.matmul %18, %19, %cst_15 {dimension_numbers = #tpu.dot_dimension_numbers<[2], [2], [1], [1], [0, 0, 0, 1, 1, 1], [0], [0]>} : vector<8x2x8xf32>, vector<8x2x8xf32>, vector<8x2x2xf32> -> vector<8x2x2xf32>
    "tpu.trace_stop"() : () -> ()
    %cst_16 = arith.constant dense<0xFF800000> : vector<8x2xf32>
    %22 = vector.multi_reduction <maximumf>, %21, %cst_16 [2] : vector<8x2x2xf32> to vector<8x2xf32>
    %23 = vector.shape_cast %22 : vector<8x2xf32> to vector<8x2x1xf32>
    %24 = vector.broadcast %23 : vector<8x2x1xf32> to vector<8x2x2xf32>
    %25 = arith.subf %21, %24 : vector<8x2x2xf32>
    %26 = math.exp %25 : vector<8x2x2xf32>
    %cst_17 = arith.constant dense<0.000000e+00> : vector<8x2xf32>
    %27 = vector.multi_reduction <add>, %26, %cst_17 [2] : vector<8x2x2xf32> to vector<8x2xf32>
    %28 = vector.shape_cast %27 : vector<8x2xf32> to vector<8x2x1xf32>
    %29 = tpu.reciprocal %28 : vector<8x2x1xf32> -> vector<8x2x1xf32>
    %30 = vector.broadcast %29 : vector<8x2x1xf32> to vector<8x2x2xf32>
    %31 = arith.mulf %26, %30 : vector<8x2x2xf32>
    "tpu.trace_start"() <{level = 10 : i32, message = "nlm,nmd->nld"}> : () -> ()
    %cst_18 = arith.constant dense<0.000000e+00> : vector<8x2x8xf32>
    %32 = tpu.matmul %31, %20, %cst_18 {dimension_numbers = #tpu.dot_dimension_numbers<[2], [1], [1], [2], [0, 0, 0, 1, 1, 2], [0], [0]>} : vector<8x2x2xf32>, vector<8x2x8xf32>, vector<8x2x8xf32> -> vector<8x2x8xf32>
    "tpu.trace_stop"() : () -> ()
    %c0_19 = arith.constant 0 : index
    %c0_20 = arith.constant 0 : index
    %c0_21 = arith.constant 0 : index
    %33 = vector.load %arg11[%c0_19, %c0_20, %c0_21] : memref<8x2x32xf32, #tpu.memory_space<vmem>>, vector<8x2x8xf32>
    tpu.vector_store %arg11[%c0_19, %c0_20, %c0_21], %32 {strides = array<i32>} : memref<8x2x32xf32, #tpu.memory_space<vmem>>, vector<8x2x8xf32>,
    %cst_22 = arith.constant 2.500000e-01 : f32
    %34 = vector.broadcast %cst_22 : f32 to vector<8x2x2xf32>
    %35 = arith.mulf %31, %34 : vector<8x2x2xf32>
    %c0_23 = arith.constant 0 : index
    %c0_24 = arith.constant 0 : index
    %c0_25 = arith.constant 0 : index
    %36 = vector.load %arg10[%c0_23, %c0_24, %c0_25] : memref<8x2x2xf32, #tpu.memory_space<vmem>>, vector<8x2x2xf32>
    tpu.vector_store %arg10[%c0_23, %c0_24, %c0_25], %35 {strides = array<i32>} : memref<8x2x2xf32, #tpu.memory_space<vmem>>, vector<8x2x2xf32>,
    %37 = vector.extract_strided_slice %16 {offsets = [0, 0, 8], sizes = [8, 2, 8], strides = [1, 1, 1]} : vector<8x2x32xf32> to vector<8x2x8xf32>
    %38 = vector.extract_strided_slice %17 {offsets = [0, 0, 8], sizes = [8, 2, 8], strides = [1, 1, 1]} : vector<8x2x64xf32> to vector<8x2x8xf32>
    %39 = vector.extract_strided_slice %17 {offsets = [0, 0, 40], sizes = [8, 2, 8], strides = [1, 1, 1]} : vector<8x2x64xf32> to vector<8x2x8xf32>
    "tpu.trace_start"() <{level = 10 : i32, message = "nld,nmd->nlm"}> : () -> ()
    %cst_26 = arith.constant dense<0.000000e+00> : vector<8x2x2xf32>
    %40 = tpu.matmul %37, %38, %cst_26 {dimension_numbers = #tpu.dot_dimension_numbers<[2], [2], [1], [1], [0, 0, 0, 1, 1, 1], [0], [0]>} : vector<8x2x8xf32>, vector<8x2x8xf32>, vector<8x2x2xf32> -> vector<8x2x2xf32>
    "tpu.trace_stop"() : () -> ()
    %cst_27 = arith.constant dense<0xFF800000> : vector<8x2xf32>
    %41 = vector.multi_reduction <maximumf>, %40, %cst_27 [2] : vector<8x2x2xf32> to vector<8x2xf32>
    %42 = vector.shape_cast %41 : vector<8x2xf32> to vector<8x2x1xf32>
    %43 = vector.broadcast %42 : vector<8x2x1xf32> to vector<8x2x2xf32>
    %44 = arith.subf %40, %43 : vector<8x2x2xf32>
    %45 = math.exp %44 : vector<8x2x2xf32>
    %cst_28 = arith.constant dense<0.000000e+00> : vector<8x2xf32>
    %46 = vector.multi_reduction <add>, %45, %cst_28 [2] : vector<8x2x2xf32> to vector<8x2xf32>
    %47 = vector.shape_cast %46 : vector<8x2xf32> to vector<8x2x1xf32>
    %48 = tpu.reciprocal %47 : vector<8x2x1xf32> -> vector<8x2x1xf32>
    %49 = vector.broadcast %48 : vector<8x2x1xf32> to vector<8x2x2xf32>
    %50 = arith.mulf %45, %49 : vector<8x2x2xf32>
    "tpu.trace_start"() <{level = 10 : i32, message = "nlm,nmd->nld"}> : () -> ()
    %cst_29 = arith.constant dense<0.000000e+00> : vector<8x2x8xf32>
    %51 = tpu.matmul %50, %39, %cst_29 {dimension_numbers = #tpu.dot_dimension_numbers<[2], [1], [1], [2], [0, 0, 0, 1, 1, 2], [0], [0]>} : vector<8x2x2xf32>, vector<8x2x8xf32>, vector<8x2x8xf32> -> vector<8x2x8xf32>
    "tpu.trace_stop"() : () -> ()
    %c0_30 = arith.constant 0 : index
    %c0_31 = arith.constant 0 : index
    %c8 = arith.constant 8 : index
    %52 = vector.load %arg11[%c0_30, %c0_31, %c8] : memref<8x2x32xf32, #tpu.memory_space<vmem>>, vector<8x2x8xf32>
    tpu.vector_store %arg11[%c0_30, %c0_31, %c8], %51 {strides = array<i32>} : memref<8x2x32xf32, #tpu.memory_space<vmem>>, vector<8x2x8xf32>,
    %c0_32 = arith.constant 0 : index
    %c0_33 = arith.constant 0 : index
    %c0_34 = arith.constant 0 : index
    %53 = vector.load %arg10[%c0_32, %c0_33, %c0_34] : memref<8x2x2xf32, #tpu.memory_space<vmem>>, vector<8x2x2xf32>
    %cst_35 = arith.constant 2.500000e-01 : f32
    %54 = vector.broadcast %cst_35 : f32 to vector<8x2x2xf32>
    %55 = arith.mulf %50, %54 : vector<8x2x2xf32>
    %56 = arith.addf %53, %55 : vector<8x2x2xf32>
    %c0_36 = arith.constant 0 : index
    %c0_37 = arith.constant 0 : index
    %c0_38 = arith.constant 0 : index
    %57 = vector.load %arg10[%c0_36, %c0_37, %c0_38] : memref<8x2x2xf32, #tpu.memory_space<vmem>>, vector<8x2x2xf32>
    tpu.vector_store %arg10[%c0_36, %c0_37, %c0_38], %56 {strides = array<i32>} : memref<8x2x2xf32, #tpu.memory_space<vmem>>, vector<8x2x2xf32>,
    %58 = vector.extract_strided_slice %16 {offsets = [0, 0, 16], sizes = [8, 2, 8], strides = [1, 1, 1]} : vector<8x2x32xf32> to vector<8x2x8xf32>
    %59 = vector.extract_strided_slice %17 {offsets = [0, 0, 16], sizes = [8, 2, 8], strides = [1, 1, 1]} : vector<8x2x64xf32> to vector<8x2x8xf32>
    %60 = vector.extract_strided_slice %17 {offsets = [0, 0, 48], sizes = [8, 2, 8], strides = [1, 1, 1]} : vector<8x2x64xf32> to vector<8x2x8xf32>
    "tpu.trace_start"() <{level = 10 : i32, message = "nld,nmd->nlm"}> : () -> ()
    %cst_39 = arith.constant dense<0.000000e+00> : vector<8x2x2xf32>
    %61 = tpu.matmul %58, %59, %cst_39 {dimension_numbers = #tpu.dot_dimension_numbers<[2], [2], [1], [1], [0, 0, 0, 1, 1, 1], [0], [0]>} : vector<8x2x8xf32>, vector<8x2x8xf32>, vector<8x2x2xf32> -> vector<8x2x2xf32>
    "tpu.trace_stop"() : () -> ()
    %cst_40 = arith.constant dense<0xFF800000> : vector<8x2xf32>
    %62 = vector.multi_reduction <maximumf>, %61, %cst_40 [2] : vector<8x2x2xf32> to vector<8x2xf32>
    %63 = vector.shape_cast %62 : vector<8x2xf32> to vector<8x2x1xf32>
    %64 = vector.broadcast %63 : vector<8x2x1xf32> to vector<8x2x2xf32>
    %65 = arith.subf %61, %64 : vector<8x2x2xf32>
    %66 = math.exp %65 : vector<8x2x2xf32>
    %cst_41 = arith.constant dense<0.000000e+00> : vector<8x2xf32>
    %67 = vector.multi_reduction <add>, %66, %cst_41 [2] : vector<8x2x2xf32> to vector<8x2xf32>
    %68 = vector.shape_cast %67 : vector<8x2xf32> to vector<8x2x1xf32>
    %69 = tpu.reciprocal %68 : vector<8x2x1xf32> -> vector<8x2x1xf32>
    %70 = vector.broadcast %69 : vector<8x2x1xf32> to vector<8x2x2xf32>
    %71 = arith.mulf %66, %70 : vector<8x2x2xf32>
    "tpu.trace_start"() <{level = 10 : i32, message = "nlm,nmd->nld"}> : () -> ()
    %cst_42 = arith.constant dense<0.000000e+00> : vector<8x2x8xf32>
    %72 = tpu.matmul %71, %60, %cst_42 {dimension_numbers = #tpu.dot_dimension_numbers<[2], [1], [1], [2], [0, 0, 0, 1, 1, 2], [0], [0]>} : vector<8x2x2xf32>, vector<8x2x8xf32>, vector<8x2x8xf32> -> vector<8x2x8xf32>
    "tpu.trace_stop"() : () -> ()
    %c0_43 = arith.constant 0 : index
    %c0_44 = arith.constant 0 : index
    %c16 = arith.constant 16 : index
    %73 = vector.load %arg11[%c0_43, %c0_44, %c16] : memref<8x2x32xf32, #tpu.memory_space<vmem>>, vector<8x2x8xf32>
    tpu.vector_store %arg11[%c0_43, %c0_44, %c16], %72 {strides = array<i32>} : memref<8x2x32xf32, #tpu.memory_space<vmem>>, vector<8x2x8xf32>,
    %c0_45 = arith.constant 0 : index
    %c0_46 = arith.constant 0 : index
    %c0_47 = arith.constant 0 : index
    %74 = vector.load %arg10[%c0_45, %c0_46, %c0_47] : memref<8x2x2xf32, #tpu.memory_space<vmem>>, vector<8x2x2xf32>
    %cst_48 = arith.constant 2.500000e-01 : f32
    %75 = vector.broadcast %cst_48 : f32 to vector<8x2x2xf32>
    %76 = arith.mulf %71, %75 : vector<8x2x2xf32>
    %77 = arith.addf %74, %76 : vector<8x2x2xf32>
    %c0_49 = arith.constant 0 : index
    %c0_50 = arith.constant 0 : index
    %c0_51 = arith.constant 0 : index
    %78 = vector.load %arg10[%c0_49, %c0_50, %c0_51] : memref<8x2x2xf32, #tpu.memory_space<vmem>>, vector<8x2x2xf32>
    tpu.vector_store %arg10[%c0_49, %c0_50, %c0_51], %77 {strides = array<i32>} : memref<8x2x2xf32, #tpu.memory_space<vmem>>, vector<8x2x2xf32>,
    %79 = vector.extract_strided_slice %16 {offsets = [0, 0, 24], sizes = [8, 2, 8], strides = [1, 1, 1]} : vector<8x2x32xf32> to vector<8x2x8xf32>
    %80 = vector.extract_strided_slice %17 {offsets = [0, 0, 24], sizes = [8, 2, 8], strides = [1, 1, 1]} : vector<8x2x64xf32> to vector<8x2x8xf32>
    %81 = vector.extract_strided_slice %17 {offsets = [0, 0, 56], sizes = [8, 2, 8], strides = [1, 1, 1]} : vector<8x2x64xf32> to vector<8x2x8xf32>
    "tpu.trace_start"() <{level = 10 : i32, message = "nld,nmd->nlm"}> : () -> ()
    %cst_52 = arith.constant dense<0.000000e+00> : vector<8x2x2xf32>
    %82 = tpu.matmul %79, %80, %cst_52 {dimension_numbers = #tpu.dot_dimension_numbers<[2], [2], [1], [1], [0, 0, 0, 1, 1, 1], [0], [0]>} : vector<8x2x8xf32>, vector<8x2x8xf32>, vector<8x2x2xf32> -> vector<8x2x2xf32>
    "tpu.trace_stop"() : () -> ()
    %cst_53 = arith.constant dense<0xFF800000> : vector<8x2xf32>
    %83 = vector.multi_reduction <maximumf>, %82, %cst_53 [2] : vector<8x2x2xf32> to vector<8x2xf32>
    %84 = vector.shape_cast %83 : vector<8x2xf32> to vector<8x2x1xf32>
    %85 = vector.broadcast %84 : vector<8x2x1xf32> to vector<8x2x2xf32>
    %86 = arith.subf %82, %85 : vector<8x2x2xf32>
    %87 = math.exp %86 : vector<8x2x2xf32>
    %cst_54 = arith.constant dense<0.000000e+00> : vector<8x2xf32>
    %88 = vector.multi_reduction <add>, %87, %cst_54 [2] : vector<8x2x2xf32> to vector<8x2xf32>
    %89 = vector.shape_cast %88 : vector<8x2xf32> to vector<8x2x1xf32>
    %90 = tpu.reciprocal %89 : vector<8x2x1xf32> -> vector<8x2x1xf32>
    %91 = vector.broadcast %90 : vector<8x2x1xf32> to vector<8x2x2xf32>
    %92 = arith.mulf %87, %91 : vector<8x2x2xf32>
    "tpu.trace_start"() <{level = 10 : i32, message = "nlm,nmd->nld"}> : () -> ()
    %cst_55 = arith.constant dense<0.000000e+00> : vector<8x2x8xf32>
    %93 = tpu.matmul %92, %81, %cst_55 {dimension_numbers = #tpu.dot_dimension_numbers<[2], [1], [1], [2], [0, 0, 0, 1, 1, 2], [0], [0]>} : vector<8x2x2xf32>, vector<8x2x8xf32>, vector<8x2x8xf32> -> vector<8x2x8xf32>
    "tpu.trace_stop"() : () -> ()
    %c0_56 = arith.constant 0 : index
    %c0_57 = arith.constant 0 : index
    %c24 = arith.constant 24 : index
    %94 = vector.load %arg11[%c0_56, %c0_57, %c24] : memref<8x2x32xf32, #tpu.memory_space<vmem>>, vector<8x2x8xf32>
    tpu.vector_store %arg11[%c0_56, %c0_57, %c24], %93 {strides = array<i32>} : memref<8x2x32xf32, #tpu.memory_space<vmem>>, vector<8x2x8xf32>,
    %c0_58 = arith.constant 0 : index
    %c0_59 = arith.constant 0 : index
    %c0_60 = arith.constant 0 : index
    %95 = vector.load %arg10[%c0_58, %c0_59, %c0_60] : memref<8x2x2xf32, #tpu.memory_space<vmem>>, vector<8x2x2xf32>
    %cst_61 = arith.constant 2.500000e-01 : f32
    %96 = vector.broadcast %cst_61 : f32 to vector<8x2x2xf32>
    %97 = arith.mulf %92, %96 : vector<8x2x2xf32>
    %98 = arith.addf %95, %97 : vector<8x2x2xf32>
    %c0_62 = arith.constant 0 : index
    %c0_63 = arith.constant 0 : index
    %c0_64 = arith.constant 0 : index
    %99 = vector.load %arg10[%c0_62, %c0_63, %c0_64] : memref<8x2x2xf32, #tpu.memory_space<vmem>>, vector<8x2x2xf32>
    tpu.vector_store %arg10[%c0_62, %c0_63, %c0_64], %98 {strides = array<i32>} : memref<8x2x2xf32, #tpu.memory_space<vmem>>, vector<8x2x2xf32>,
    %c0_65 = arith.constant 0 : index
    %c0_66 = arith.constant 0 : index
    %c0_67 = arith.constant 0 : index
    %100 = vector.load %arg11[%c0_65, %c0_66, %c0_67] : memref<8x2x32xf32, #tpu.memory_space<vmem>>, vector<8x2x32xf32>
    %101 = vector.shape_cast %100 : vector<8x2x32xf32> to vector<16x32xf32>
    %c0_68 = arith.constant 0 : index
    %c0_69 = arith.constant 0 : index
    %102 = vector.load %arg7[%c0_68, %c0_69] : memref<32x32xf32, #tpu.memory_space<vmem>>, vector<32x32xf32>
    %cst_70 = arith.constant dense<0.000000e+00> : vector<16x32xf32>
    %103 = tpu.matmul %101, %102, %cst_70 {dimension_numbers = #tpu.dot_dimension_numbers<[1], [0], [0], [1], [0, 0, 1, 1], [], []>} : vector<16x32xf32>, vector<32x32xf32>, vector<16x32xf32> -> vector<16x32xf32>
    %c0_71 = arith.constant 0 : index
    %c0_72 = arith.constant 0 : index
    %104 = vector.load %arg8[%c0_71, %c0_72] : memref<1x32xf32, #tpu.memory_space<vmem>>, vector<1x32xf32>
    %105 = vector.broadcast %104 : vector<1x32xf32> to vector<16x32xf32>
    %106 = arith.addf %103, %105 : vector<16x32xf32>
    %107 = vector.shape_cast %106 : vector<16x32xf32> to vector<8x2x32xf32>
    %c0_73 = arith.constant 0 : index
    %c0_74 = arith.constant 0 : index
    %c0_75 = arith.constant 0 : index
    %108 = vector.load %arg9[%c0_73, %c0_74, %c0_75] : memref<8x2x32xf32, #tpu.memory_space<vmem>>, vector<8x2x32xf32>
    tpu.vector_store %arg9[%c0_73, %c0_74, %c0_75], %107 {strides = array<i32>} : memref<8x2x32xf32, #tpu.memory_space<vmem>>, vector<8x2x32xf32>,
    return
  }
  func.func @transform_0(%arg0: i32) -> (i32, i32, i32) {
    %c0_i32 = arith.constant 0 : i32
    %c0_i32_0 = arith.constant 0 : i32
    %c0_i32_1 = arith.constant 0 : i32
    return %arg0, %c0_i32, %c0_i32_0 : i32, i32, i32
  }
  func.func @transform_1(%arg0: i32) -> (i32, i32, i32) {
    %c0_i32 = arith.constant 0 : i32
    %c0_i32_0 = arith.constant 0 : i32
    %c0_i32_1 = arith.constant 0 : i32
    return %arg0, %c0_i32, %c0_i32_0 : i32, i32, i32
  }
  func.func @transform_2(%arg0: i32) -> (i32, i32) {
    %c0_i32 = arith.constant 0 : i32
    %c0_i32_0 = arith.constant 0 : i32
    %c0_i32_1 = arith.constant 0 : i32
    return %c0_i32, %c0_i32_0 : i32, i32
  }
  func.func @transform_3(%arg0: i32) -> (i32, i32) {
    %c0_i32 = arith.constant 0 : i32
    %c0_i32_0 = arith.constant 0 : i32
    %c0_i32_1 = arith.constant 0 : i32
    return %c0_i32, %c0_i32_0 : i32, i32
  }
  func.func @transform_4(%arg0: i32) -> (i32, i32) {
    %c0_i32 = arith.constant 0 : i32
    %c0_i32_0 = arith.constant 0 : i32
    %c0_i32_1 = arith.constant 0 : i32
    return %c0_i32, %c0_i32_0 : i32, i32
  }
  func.func @transform_5(%arg0: i32) -> (i32, i32) {
    %c0_i32 = arith.constant 0 : i32
    %c0_i32_0 = arith.constant 0 : i32
    %c0_i32_1 = arith.constant 0 : i32
    return %c0_i32, %c0_i32_0 : i32, i32
  }
  func.func @transform_6(%arg0: i32) -> (i32, i32) {
    %c0_i32 = arith.constant 0 : i32
    %c0_i32_0 = arith.constant 0 : i32
    %c0_i32_1 = arith.constant 0 : i32
    return %c0_i32, %c0_i32_0 : i32, i32
  }
  func.func @transform_7(%arg0: i32) -> (i32, i32) {
    %c0_i32 = arith.constant 0 : i32
    %c0_i32_0 = arith.constant 0 : i32
    %c0_i32_1 = arith.constant 0 : i32
    return %c0_i32, %c0_i32_0 : i32, i32
  }
  func.func @transform_8(%arg0: i32) -> (i32, i32, i32) {
    %c0_i32 = arith.constant 0 : i32
    %c0_i32_0 = arith.constant 0 : i32
    %c0_i32_1 = arith.constant 0 : i32
    return %arg0, %c0_i32, %c0_i32_0 : i32, i32, i32
  }
  func.func @transform_9(%arg0: i32) -> (i32, i32, i32) {
    %c0_i32 = arith.constant 0 : i32
    %c0_i32_0 = arith.constant 0 : i32
    %c0_i32_1 = arith.constant 0 : i32
    return %arg0, %c0_i32, %c0_i32_0 : i32, i32, i32
  }
}

</mosaic_0001>

<bundles_post_ra>
// kernel: tpu_custom_call.1
= control target key start
LH: loop header
LB: loop body
LE: loop exit
PB: predicated region body
PF: predicated region fallthrough
CT: control target
= control target key end

     0   :  { %s9511_s0 = inlined_call_operand.hbm [shape: f32[16,2,32], index: 0, kind: input, shape index: {}]   ;;  %s9512_s1 = inlined_call_operand.hbm [shape: f32[16,2,32], index: 1, kind: input, shape index: {}]   ;;  %s9513_s2 = inlined_call_operand.hbm [shape: f32[32,32], index: 2, kind: input, shape index: {}]   ;;  %s9514_s3 = inlined_call_operand.hbm [shape: f32[32,64], index: 3, kind: input, shape index: {}]   ;;  %s9515_s4 = inlined_call_operand.vmem [shape: f32[1,32], index: 4, kind: input, shape index: {}]   ;;  %s9516_s5 = inlined_call_operand.vmem [shape: f32[1,64], index: 5, kind: input, shape index: {}]   ;;  %s9517_s6 = inlined_call_operand.hbm [shape: f32[32,32], index: 6, kind: input, shape index: {}]   ;;  %s9518_s7 = inlined_call_operand.vmem [shape: f32[1,32], index: 7, kind: input, shape index: {}]   ;;  %s9519_s8 = inlined_call_operand.hbm [shape: f32[16,2,32], index: 8, kind: output, shape index: {0}]   ;;  %s9520_s9 = inlined_call_operand.vmem [shape: f32[16,2,2], index: 9, kind: output, shape index: {1}]  }
   0x1   :  { %9527 = sst [smem:[#allocation20_spill]] %s9511_s0 }
   0x2   :  { %9528 = sst [smem:[#allocation21_spill]] %s9513_s2 }
   0x3   :  { %9529 = sst [smem:[#allocation22_spill]] %s9514_s3 }
   0x4   :  { %9530 = sst [smem:[#allocation23_spill]] %s9519_s8 }
   0x5   :  { %15 = vsyncpa [#allocation4], 0 }
   0x6   :  { %17 = vsyncpa [#allocation4 + $0x1], 0 }
   0x7   :  { %18 = vsyncpa [#allocation7], 0 }
   0x8   :  { %20 = vsyncpa [#allocation7 + $0x1], 0 }
   0x9   :  { %21 = vsyncpa [#allocation10], 0 }
   0xa   :  { %22 = vsyncpa [#allocation5], 0 }
   0xb   :  { %24 = vsyncpa [#allocation5 + $0x1], 0  ;;  %s8028_s30 = smov 0   ;;  %s8030_s10 = smov 0  }
   0xc   :  { %s8032_s11 = smov 0   ;;  %s8034_s12 = smov 0  }
   0xd LB: > { %9531 = sst [smem:[#allocation18_spill]] %s7939_s30  ;;  %s8049_s13 = sadd.s32 4294967295, %s7951_s12   ;;  %s7951_s12 = sphi %s8034_s12, %s9558_s12   ;;  %s7947_s11 = sphi %s8032_s11, %s9557_s11   ;;  %s7943_s10 = sphi %s8030_s10, %s9556_s10   ;;  %s7939_s30 = sphi %s8028_s30, %s9555_s30  }
   0xe   : > { %s6811_s14 = sadd.s32 4294967294, %s7951_s12   ;;  %p50_p0 = scmp.ne.s32.totalorder %s7943_s10, %s7939_s30 }
   0xf   : > { %p9521_p1 = scmp.eq.s32.totalorder %s8049_s13, 0  ;;  %p232_p3 = scmp.eq.s32.totalorder %s6811_s14, 1 }
  0x10   : > { %p6812_p5 = scmp.ge.s32.totalorder %s7951_s12, 1  ;;  %p265_p7 = scmp.lt.s32.totalorder %s7951_s12, 3 }
  0x11   : > { %p8058_p4 = por %p9521_p1, %p50_p0  ;;  %p8063_p6 = por %p232_p3, %p50_p0 }
  0x12   : > { %p8068_p8 = pnand %p6812_p5, %p265_p7  ;;  %s7953_s18 = smov [#allocation8]  }
  0x13   : > { %s9532_s15 = scalar_select %p8058_p4, 1, 0 }
  0x14   : > { %s9533_s16 = scalar_select %p8063_p6, 1, 0 }
  0x15   : > { %s9535_s17 = scalar_select %p8068_p8, 1, 0 }
  0x16   : > { %9534 = sst [smem:[#allocation19_spill]] %s9533_s16  ;;  %s277_s19 = sshll.u32 %s7953_s18, 4  ;;  %s8072_s19 = int_to_ptr.vmem [resolvable:$true] %s277_s19 }
  0x17   : > { %p7518_p9 = pneg %p8068_p8  ;;  %s7954_s21 = smov [#allocation9]  }
  0x18   : > { %s290_s22 = sshll.u32 %s7954_s21, 4  ;;  %s7955_s23 = smov [#allocation11]   ;;  %s8083_s22 = int_to_ptr.vmem [resolvable:$true] %s290_s22 }
  0x19   : > { %p8079_p11 = pnand %p7518_p9, %p9521_p1  ;;  %s8085_s24 = sshll.u32 %s7955_s23, 4  ;;  %s310_s24 = int_to_ptr.vmem [resolvable:$true] %s8085_s24 }
  0x1a   : > { %s9537_s2 = sld [smem:[#allocation21_spill]] }
  0x1b   : > { %p8095_p13 = pneg %p8079_p11 }
  0x20   : > { %s7729_s27 = scalar_lea.hbm %s9537_s2, 512 }
  0x21   : > { %p7730_p12 = scmp.ne.s32.totalorder %s9537_s2, %s7729_s27  ;;  %p7736_p5 = scmp.lt.u32.totalorder %s7729_s27, %s9537_s2 }
  0x23   : > { %p7732_p0 = pnand %p8095_p13, %p7730_p12 }
  0x25   : > { %p7733_p3 = pneg %p7732_p0 }
  0x27   : > { %p7738_p7 = pnand %p7736_p5, %p7733_p3 }
  0x29   : > { %7741 = shalt.err (!%p7738_p7)
}
  0x2a   : > { %s7742_s23 = scalar_lea.vmem %s8072_s19, 512  ;;  %p7750_p2 = scmp.lt.s32.totalorder %s8072_s19, %s8072_s19 }
  0x2b   : > { %p7743_p9 = scmp.ne.s32.totalorder %s8072_s19, %s7742_s23  ;;  %p7751_p6 = scmp.lt.s32.totalorder %s7742_s23, %s7742_s23 }
  0x2d   : > { %p7745_p10 = pnand %p7743_p9, %p8095_p13  ;;  %p7752_p12 = por %p7751_p6, %p7750_p2 }
  0x2f   : > { %p7746_p1 = pneg %p7745_p10 }
  0x31   : > { %p7753_p0 = pnand %p7752_p12, %p7746_p1 }
  0x33   : > { %7756 = shalt.err (!%p7753_p0)
}
  0x34   : > { %s7956_s25 = smov 128   ;;  %s7957_s26 = smov 8  }
  0x35   : > { %7521 = dma.hbm_to_vmem [thread:$0]  (!%p8079_p11), %s9537_s2, 512, %s8072_s19, [#allocation7], %s7956_s25, %s7956_s25, %s7957_s26  }
  0x36   : > { %s9539_s3 = sld [smem:[#allocation22_spill]] }
  0x3c   : > { %s7757_s21 = scalar_lea.hbm %s9539_s3, 512 }
  0x3d   : > { %p7758_p1 = scmp.ne.s32.totalorder %s9539_s3, %s7757_s21  ;;  %p7764_p10 = scmp.lt.u32.totalorder %s7757_s21, %s9539_s3 }
  0x3f   : > { %p7760_p2 = pnand %p7758_p1, %p8095_p13 }
  0x41   : > { %p7761_p6 = pneg %p7760_p2 }
  0x43   : > { %p7766_p3 = pnand %p7764_p10, %p7761_p6 }
  0x45   : > { %7769 = shalt.err (!%p7766_p3)
}
  0x46   : > { %s7770_s19 = scalar_lea.vmem %s8083_s22, 512  ;;  %p7778_p12 = scmp.lt.s32.totalorder %s8083_s22, %s8083_s22 }
  0x47   : > { %p7771_p5 = scmp.ne.s32.totalorder %s8083_s22, %s7770_s19  ;;  %p7779_p0 = scmp.lt.s32.totalorder %s7770_s19, %s7770_s19 }
  0x49   : > { %p7773_p7 = pnand %p7771_p5, %p8095_p13  ;;  %p7780_p1 = por %p7779_p0, %p7778_p12 }
  0x4b   : > { %p7774_p9 = pneg %p7773_p7 }
  0x4d   : > { %p7781_p2 = pnand %p7780_p1, %p7774_p9 }
  0x4f   : > { %7784 = shalt.err (!%p7781_p2)
}
  0x50   : > { %7524 = dma.hbm_to_vmem [thread:$0]  (!%p8079_p11), %s9539_s3, 512, %s8083_s22, [#allocation10], %s7956_s25, %s7956_s25, %s7957_s26  }
  0x51   : > { %s7785_s28 = scalar_lea.hbm %s9517_s6, 512 }
  0x52   : > { %p7786_p6 = scmp.ne.s32.totalorder %s9517_s6, %s7785_s28  ;;  %p7792_p5 = scmp.lt.u32.totalorder %s7785_s28, %s9517_s6 }
  0x54   : > { %p7788_p10 = pnand %p7786_p6, %p8095_p13 }
  0x56   : > { %p7789_p3 = pneg %p7788_p10 }
  0x58   : > { %p7794_p7 = pnand %p7792_p5, %p7789_p3 }
  0x5a   : > { %7797 = shalt.err (!%p7794_p7)
}
  0x5b   : > { %s7798_s19 = scalar_lea.vmem %s310_s24, 512  ;;  %p7806_p1 = scmp.lt.s32.totalorder %s310_s24, %s310_s24 }
  0x5c   : > { %p7799_p9 = scmp.ne.s32.totalorder %s310_s24, %s7798_s19  ;;  %p7807_p2 = scmp.lt.s32.totalorder %s7798_s19, %s7798_s19 }
  0x5e   : > { %p7801_p12 = pnand %p7799_p9, %p8095_p13  ;;  %p7808_p4 = por %p7807_p2, %p7806_p1 }
  0x60   : > { %p7802_p0 = pneg %p7801_p12 }
  0x62   : > { %p7809_p8 = pnand %p7808_p4, %p7802_p0 }
  0x64   : > { %7812 = shalt.err (!%p7809_p8)
}
  0x65   : > { %7527 = dma.hbm_to_vmem [thread:$0]  (!%p8079_p11), %s9517_s6, 512, %s310_s24, [#allocation10], %s7956_s25, %s7956_s25, %s7957_s26  }
  0x66   : > { %s8168_s20 = sadd.s32 1, %s7951_s12   ;;  %s37_s30 = sadd.s32 1, %s7947_s11 }
  0x67   : > { %s34_s14 = ssub.s32 %s7951_s12, %s8168_s20  ;;  %p44_p8 = scmp.ne.s32.totalorder %s7947_s11, %s7943_s10 }
  0x68   : > { %p35_p4 = scmp.eq.s32.totalorder %s34_s14, 0  ;;  %p45_p13 = scmp.eq.s32.totalorder %s7951_s12, 0 }
  0x69   : > { %p7542_p6 = scmp.lt.s32.totalorder %s7951_s12, 2  ;;  %p9540_p3 = scmp.eq.s32.totalorder %s8049_s13, 1 }
  0x6a   : > { %s8178_s16 = scalar_select %p35_p4, %s7947_s11, %s37_s30  }
  0x6b   : > { %p46_p10 = por %p45_p13, %p44_p8  ;;  %p8182_p5 = por %p9540_p3, %p44_p8 }
  0x6c   : > { %s326_s28 = sand.u32 1, %s7947_s11   ;;  %s6974_s29 = sshll.u32 %s7951_s12, 8 }
  0x6d   : > { %s8188_s24 = sshll.u32 %s326_s28, 4  ;;  %s9542_s0 = sld [smem:[#allocation20_spill]] }
  0x6e   : > { %s330_s21 = scalar_lea.vmem [#allocation3], %s8188_s24  ;;  %p8198_p11 = pnand %p7542_p6, %p46_p10 }
  0x6f   : > { %s337_s23 = sshll.u32 %s330_s21, 4  ;;  %s8204_s22 = scalar_lea.sflag [#allocation4], %s326_s28  ;;  %s8202_s23 = int_to_ptr.vmem [resolvable:$true] %s337_s23 }
  0x70   : > { %p7815_p9 = pneg %p8198_p11 }
  0x73   : > { %s8195_s18 = scalar_lea.hbm %s9542_s0, %s6974_s29  ;;  %s7818_s25 = scalar_lea.hbm %s9542_s0, 512 }
  0x74   : > { %s7813_s8 = scalar_lea.hbm %s8195_s18, 256  ;;  %p7819_p1 = scmp.lt.u32.totalorder %s8195_s18, %s9542_s0 }
  0x75   : > { %p7814_p7 = scmp.ne.s32.totalorder %s8195_s18, %s7813_s8  ;;  %p7820_p2 = scmp.lt.u32.totalorder %s7818_s25, %s7813_s8 }
  0x76   : > { %p7822_p8 = scmp.lt.u32.totalorder %s7813_s8, %s8195_s18 }
  0x77   : > { %p7816_p12 = pnand %p7815_p9, %p7814_p7  ;;  %p7821_p4 = por %p7820_p2, %p7819_p1 }
  0x79   : > { %p7817_p0 = pneg %p7816_p12  ;;  %p7823_p13 = por %p7822_p8, %p7821_p4 }
  0x7b   : > { %p7824_p6 = pnand %p7823_p13, %p7817_p0 }
  0x7d   : > { %7827 = shalt.err (!%p7824_p6)
}
  0x7e   : > { %s7828_s28 = scalar_lea.vmem %s8202_s23, 256  ;;  %s7958_s14 = smov [#allocation3]  }
  0x7f   : > { %p7829_p10 = scmp.ne.s32.totalorder %s8202_s23, %s7828_s28  ;;  %s7833_s30 = sshll.u32 %s7958_s14, 4  ;;  %s7834_s30 = int_to_ptr.vmem [resolvable:$false] %s7833_s30 }
  0x80   : > { %s7835_s26 = scalar_lea.vmem %s7834_s30, 512  ;;  %p7836_p12 = scmp.lt.s32.totalorder %s8202_s23, %s7834_s30 }
  0x81   : > { %p7831_p3 = pnand %p7829_p10, %p7815_p9  ;;  %p7837_p1 = scmp.lt.s32.totalorder %s7835_s26, %s7828_s28 }
  0x83   : > { %p7832_p7 = pneg %p7831_p3  ;;  %p7838_p2 = por %p7837_p1, %p7836_p12 }
  0x85   : > { %p7839_p4 = pnand %p7838_p2, %p7832_p7 }
  0x87   : > { %7842 = shalt.err (!%p7839_p4)
}
  0x88   : > { %s7959_s8 = smov 32   ;;  %s7960_s25 = smov 2  }
  0x89   : > { %7531 = dma.hbm_to_vmem [thread:$0]  (!%p8198_p11), %s8195_s18, 256, %s8202_s23, %s8204_s22, %s7959_s8, %s7959_s8, %s7960_s25  }
  0x8a   : > { %s8240_s14 = scalar_lea.hbm %s9512_s1, %s6974_s29  ;;  %s351_s30 = scalar_lea.vmem [#allocation6], %s8188_s24 }
  0x8b   : > { %s358_s26 = sshll.u32 %s351_s30, 4  ;;  %s347_s0 = sand.u32 1, %s7951_s12   ;;  %s8244_s26 = int_to_ptr.vmem [resolvable:$true] %s358_s26 }
  0x8c   : > { %s8246_s2 = scalar_lea.sflag [#allocation7], %s347_s0  ;;  %s7843_s3 = scalar_lea.hbm %s8240_s14, 256 }
  0x8d   : > { %p7844_p0 = scmp.ne.s32.totalorder %s8240_s14, %s7843_s3  ;;  %s7848_s23 = scalar_lea.hbm %s9512_s1, 512 }
  0x8e   : > { %p7849_p6 = scmp.lt.u32.totalorder %s8240_s14, %s9512_s1  ;;  %p7850_p10 = scmp.lt.u32.totalorder %s7848_s23, %s7843_s3 }
  0x8f   : > { %p7846_p8 = pnand %p7844_p0, %p7815_p9  ;;  %p7852_p7 = scmp.lt.u32.totalorder %s7843_s3, %s8240_s14 }
  0x90   : > { %p7851_p3 = por %p7850_p10, %p7849_p6 }
  0x91   : > { %p7847_p13 = pneg %p7846_p8 }
  0x92   : > { %p7853_p12 = por %p7852_p7, %p7851_p3 }
  0x94   : > { %p7854_p1 = pnand %p7853_p12, %p7847_p13 }
  0x96   : > { %7857 = shalt.err (!%p7854_p1)
}
  0x97   : > { %s7858_s0 = scalar_lea.vmem %s8244_s26, 256  ;;  %s7961_s24 = smov [#allocation6]  }
  0x98   : > { %p7859_p2 = scmp.ne.s32.totalorder %s8244_s26, %s7858_s0  ;;  %s7863_s28 = sshll.u32 %s7961_s24, 4  ;;  %s7864_s28 = int_to_ptr.vmem [resolvable:$false] %s7863_s28 }
  0x99   : > { %s7865_s30 = scalar_lea.vmem %s7864_s28, 512  ;;  %p7866_p8 = scmp.lt.s32.totalorder %s8244_s26, %s7864_s28 }
  0x9a   : > { %p7861_p4 = pnand %p7859_p2, %p7815_p9  ;;  %p7867_p6 = scmp.lt.s32.totalorder %s7865_s30, %s7858_s0 }
  0x9c   : > { %p7862_p0 = pneg %p7861_p4  ;;  %p7868_p10 = por %p7867_p6, %p7866_p8 }
  0x9e   : > { %p7869_p3 = pnand %p7868_p10, %p7862_p0 }
  0xa0   : > { %7872 = shalt.err (!%p7869_p3)
}
  0xa1   : > { %7534 = dma.hbm_to_vmem [thread:$0]  (!%p8198_p11), %s8240_s14, 256, %s8244_s26, %s8246_s2, %s7959_s8, %s7959_s8, %s7960_s25  }
  0xa2   : > { %p9544_p9 = scmp.ne.s32.totalorder %s9535_s17, 0 }
  0xa3   : > { %s8278_s3 = sand.u32 (!%p9544_p9), 1, %s7943_s10   ;;  %p9545_p13 = scmp.ne.s32.totalorder (!%p9544_p9), %s9532_s15, 0 }
  0xa4   : > { %370 = sbr.rel (%p9544_p9) target bundleno = 3410 (0xd52), region = 52  ;;  %s8281_s18 = sshll.u32 (!%p9544_p9), %s8278_s3, 4 }
  0xa5   : > { %s373_s19 = scalar_lea.sflag (!%p9544_p9), [#allocation4], %s8278_s3  ;;  %s8285_s29 = scalar_lea.vmem (!%p9544_p9), [#allocation3], %s8281_s18 }
  0xab   : > { %7918 = dma.done.wait (%p9545_p13), %s373_s19, 256  }
  0xac   : > { %7920 = vsyncadd (%p9545_p13), %s373_s19, 4294967040  ;;  %s381_s2 = sand.u32 1, %s8049_s13   ;;  %s8293_s8 = scalar_lea.vmem [#allocation6], %s8281_s18 }
  0xad   : > { %s382_s17 = scalar_lea.sflag [#allocation7], %s381_s2 }
  0xae   : > { %7922 = dma.done.wait (%p9545_p13), %s382_s17, 256  }
  0xaf   : > { %7924 = vsyncadd (%p9545_p13), %s382_s17, 4294967040  ;;  %p9546_p11 = scmp.eq.s32.totalorder %s8049_s13, 0 }
  0xb1   : > { %7926 = dma.done.wait (%p9546_p11), [#allocation7], 512   ;;  %p9547_p7 = pmov %p9546_p11 }
  0xb3   : > { %7928 = vsyncadd (%p9547_p7), [#allocation7], 4294966784  ;;  %p9548_p12 = pmov %p9547_p7 }
  0xb4   : > { %p9549_p1 = pmov %p9547_p7 }
  0xb5   : > { %7930 = dma.done.wait (%p9548_p12), [#allocation10], 1024  }
  0xb6   : > { %7932 = vsyncadd (%p9549_p1), [#allocation10], 4294966272  ;;  %v7962_v0 = vmov 1983009808   ;;  %v491_v2 = vlaneseq  ;;  %v467_v5 = vld [vmem:[#allocation8] sm:$0xff]  ;;  %v468_v6 = vld [vmem:[#allocation8 + $0x8] sm:$0xff] }
  0xb7   : > { %v489_v1 = vunpack.c.l.s4 %v7962_v0  ;;  %v600_v7 = vld [vmem:[#allocation9] sm:$0xff]  ;;  %v7476_v8 = vpack.c.bf16 %v468_v6, %v467_v5  ;;  %v601_v9 = vld [vmem:[#allocation9 + $0x8] sm:$0xff]  ;;  %v469_v10 = vld [vmem:[#allocation8 + $0x10] sm:$0xff]  ;;  %vm520_vm0 = vcmask 261120   ;;  %v7963_v54 = vmov 0.0   ;;  %s7965_s23 = smov 96  }
  0xb8   : > { %v492_v4 = vshrl.u32 %v491_v2, 7  ;;  %v470_v11 = vld [vmem:[#allocation8 + $0x18] sm:$0xff]  ;;  %v7484_v12 = vpack.c.bf16 %v601_v9, %v600_v7  ;;  %v602_v14 = vld [vmem:[#allocation9 + $0x10] sm:$0xff]  ;;  %vm7964_vm1 = vmmov 0   ;;  %vm806_vm2 = vcmask 64512   ;;  %s7966_s22 = smov 120  }
  0xb9   : > { %v490_v3 = vunpack.c.0.s8 %v489_v1  ;;  %v7480_v13 = vpack.c.bf16 %v470_v11, %v469_v10  ;;  %v603_v15 = vld [vmem:[#allocation9 + $0x18] sm:$0xff]  ;;  %v451_v16 = vld [vmem:[%s8285_s29] sm:$0x3]  ;;  %7477 = vmatprep.subr.bf16.mxu0 %v7476_v8  ;;  %v452_v19 = vld [vmem:[%s8285_s29 + $0x2] sm:$0x3]  ;;  %vm1399_vm3 = vcmask 9216  }
  0xba   : > { %v7488_v18 = vpack.c.bf16 %v603_v15, %v602_v14  ;;  %v453_v20 = vld [vmem:[%s8285_s29 + $0x4] sm:$0x3]  ;;  %v454_v21 = vld [vmem:[%s8285_s29 + $0x6] sm:$0x3]  ;;  %7485 = vmatprep.subr.bf16.mxu1 %v7484_v12  ;;  %7479 = vmatpush3.bf16.msra.mxu0 %v7476_v8  ;;  %v486_v22 = vcombine.low %v451_v16, %v452_v19  ;;  %v459_v24 = vld [vmem:[%s8293_s8] sm:$0x3] }
  0xbb   : > { %v8308_v17 = vsub.s32 %v490_v3, %v492_v4  ;;  %v487_v23 = vcombine.low %v453_v20, %v454_v21  ;;  %v460_v25 = vld [vmem:[%s8293_s8 + $0x2] sm:$0x3]  ;;  %v461_v26 = vld [vmem:[%s8293_s8 + $0x4] sm:$0x3]  ;;  %7487 = vmatpush3.bf16.msra.mxu1 %v7484_v12  ;;  %7481 = vmatprep.subr.bf16.mxu0 %v7480_v13  ;;  %v462_v27 = vld [vmem:[%s8293_s8 + $0x6] sm:$0x3] }
  0xbc   : > { %v619_v28 = vcombine.low %v459_v24, %v460_v25  ;;  %v455_v29 = vld [vmem:[%s8285_s29 + $0x8] sm:$0x3]  ;;  %v456_v30 = vld [vmem:[%s8285_s29 + $0xa] sm:$0x3]  ;;  %7489 = vmatprep.subr.bf16.mxu1 %v7488_v18  ;;  %v620_v33 = vcombine.low %v461_v26, %v462_v27  ;;  %v457_v34 = vld [vmem:[%s8285_s29 + $0xc] sm:$0x3] }
  0xbd   : > { %v494_v31 = vrot.slane %v486_v22, %v8308_v17  ;;  %v501_v32 = vrot.slane %v487_v23, %v8308_v17  ;;  %v458_v35 = vld [vmem:[%s8285_s29 + $0xe] sm:$0x3]  ;;  %v503_v36 = vcombine.low %v455_v29, %v456_v30  ;;  %v463_v37 = vld [vmem:[%s8293_s8 + $0x8] sm:$0x3]  ;;  %v464_v40 = vld [vmem:[%s8293_s8 + $0xa] sm:$0x3] }
  0xbe   : > { %v627_v38 = vrot.slane %v619_v28, %v8308_v17  ;;  %v504_v39 = vcombine.low %v457_v34, %v458_v35  ;;  %v465_v41 = vld [vmem:[%s8293_s8 + $0xc] sm:$0x3]  ;;  %v466_v42 = vld [vmem:[%s8293_s8 + $0xe] sm:$0x3]  ;;  %7483 = vmatpush3.bf16.msra.mxu0 %v7480_v13  ;;  %v634_v44 = vrot.slane %v620_v33, %v8308_v17  ;;  %v636_v46 = vcombine.low %v463_v37, %v464_v40  ;;  %v6832_v55 = vld [vmem:[%s9515_s4] ss:$0 sm:$0xff] }
  0xbf   : > { %v502_v43 = vcombine.low %v494_v31, %v501_v32  ;;  %v511_v45 = vrot.slane %v503_v36, %v8308_v17  ;;  %7491 = vmatpush3.bf16.msra.mxu1 %v7488_v18  ;;  %v637_v48 = vcombine.low %v465_v41, %v466_v42  ;;  %7155 = vmatprep.subr.mxu0 %v7963_v54  ;;  %v6835_v57 = vld [vmem:[%s9516_s5] ss:$0 sm:$0xff]  ;;  %vm1501_vm4 = vcmask 1041408   ;;  %s6830_s21 = sshll.u32 %s8049_s13, 3  ;;  %s7967_s19 = smov 88  }
  0xc0   : > { %v518_v47 = vrot.slane %v504_v39, %v8308_v17  ;;  %v635_v49 = vcombine.low %v627_v38, %v634_v44  ;;  %v644_v50 = vrot.slane %v636_v46, %v8308_v17  ;;  %7145 = vmatprep.subr.mxu1 %v7963_v54  ;;  %p446_p2 = scmp.lt.s32.totalorder %s6830_s21, 15  ;;  %vm1497_vm5 = vcmask 15360   ;;  %s7968_s29 = smov 112  }
  0xc1   : > { %7131 = vmatprep.mubr.msk.f32.mxu0 %vm520_vm0, %v502_v43  ;;  %v651_v52 = vrot.slane %v637_v48, %v8308_v17  ;;  %vm2162_vm6 = vcmask 58368   ;;  %s7969_s2 = smov 80   ;;  %s7970_s17 = smov 104   ;;  %vm3603_vm7 = vcmask 123968   ;;  %vm5004_vm8 = vcmask 189568  }
  0xc2   : > { %v519_v51 = vcombine.low %v511_v45, %v518_v47  ;;  %7142 = vmatprep.mubr.msk.f32.mxu1 %vm520_vm0, %v635_v49  ;;  %s9560_s21 = smov (!%p446_p2, %s6830_s21), 15  ;;  %s7971_s8 = smov 72   ;;  %vm6405_vm9 = vcmask 255168   ;;  %vm6630_vm10 = vcmask 254976  }
  0xc3   : > { %v652_v53 = vcombine.low %v644_v50, %v651_v52  ;;  %s6831_s0 = sshll.u32 %s9560_s21, 1  ;;  %s7972_s15 = smov 8  }
  0xc4   : > { %7132 = vmatmul.mubr.msk.f32.vlgmr.msra.gmra.mrb[0].mxu0 %vm520_vm0, %v519_v51  ;;  %s8640_s30 = scalar_lea.vmem %s9520_s9, %s6831_s0  ;;  %s7973_s25 = smov 16  }
  0xc5   : > { %7143 = vmatmul.mubr.msk.f32.vlgmr.msra.gmra.mrb[0].mxu1 %vm520_vm0, %v652_v53  ;;  %7157 = vmatprep.mubr.msk.f32.mxu0 %vm7964_vm1, %v7963_v54  ;;  %s7974_s14 = smov 24   ;;  %s434_s21 = scalar_lea.vmem [#allocation12], %s8281_s18 }
  0xc6   : > { %7147 = vmatprep.mubr.msk.f32.mxu1 %vm7964_vm1, %v7963_v54  ;;  %s6658_s0 = sshll.u32 %s434_s21, 4  ;;  %s9550_s24 = sld [smem:[#allocation23_spill]]  ;;  %s9463_s0 = int_to_ptr.vmem [resolvable:$true] %s6658_s0 }
 0x197   : > { %v7133_v56 = vpop.f32.mrb[0].mxu0 }
 0x198   : > { %v591_v58 = vpop.f32.mrb[1].mxu0  ;;  %v7144_v59 = vpop.f32.mrb[0].mxu1  ;;  %v597_v3 = vadd.f32 %v7133_v56, %v6832_v55 }
 0x199   : > { %v592_v60 = vadd.f32 %v6832_v55, %v591_v58  ;;  %v723_v61 = vpop.f32.mrb[1].mxu1  ;;  %v729_v5 = vadd.f32 %v7144_v59, %v6835_v57 }
 0x19a   : > { %v724_v63 = vadd.f32 %v6835_v57, %v723_v61  ;;  %v733_v9 = vmul.f32 0.35355338, %v597_v3 }
 0x19b   : > { %v732_v62 = vmul.f32 0.35355338, %v592_v60  ;;  %v789_v10 = vcombine.high %v729_v5, %v729_v5  ;;  %v8374_v11 = vrot.slane %v729_v5, %v8308_v17 }
 0x19c   : > { %v772_v1 = vcombine.high %v724_v63, %v724_v63  ;;  %v8350_v2 = vrot.slane %v724_v63, %v8308_v17  ;;  %v753_v14 = vcombine.high %v733_v9, %v733_v9  ;;  %v8396_v15 = vrot.slane %v733_v9, %v8308_v17 }
 0x19d   : > { %v736_v0 = vcombine.high %v732_v62, %v732_v62  ;;  %v8353_v4 = vrot.slane %v732_v62, %v8308_v17  ;;  %v8402_v16 = vrot.slane %v789_v10, %v8308_v17  ;;  %v804_v19 = vcombine.high %v8374_v11, %v8374_v11 }
 0x19e   : > { %v8356_v6 = vrot.slane %v772_v1, %v8308_v17  ;;  %7146 = vmatpush3.xpose.msk.msra.mxu1 %vm806_vm2, %v8350_v2  ;;  %v8366_v8 = vcombine.high %v8350_v2, %v8350_v2  ;;  %v8422_v20 = vrot.slane %v753_v14, %v8308_v17  ;;  %v8432_v21 = vcombine.high %v8396_v15, %v8396_v15 }
 0x19f   : > { %v8361_v7 = vrot.slane %v736_v0, %v8308_v17  ;;  %7150 = vmatprep.subr.mxu1 %v7963_v54  ;;  %v8382_v12 = vcombine.high %v8353_v4, %v8353_v4  ;;  %v805_v22 = vcombine.high %v8402_v16, %v8402_v16  ;;  %v8487_v49 = vrot.slane %v8350_v2, %v8308_v17 }
 0x1a0   : > { %7156 = vmatpush3.xpose.msk.msra.mxu0 %vm806_vm2, %v8356_v6  ;;  %v8389_v13 = vcombine.high %v8356_v6, %v8356_v6  ;;  %v8448_v23 = vcombine.high %v8422_v20, %v8422_v20  ;;  %v8473_v46 = vrot.slane %v8366_v8, %v8308_v17  ;;  %v8478_v47 = vrot.slane %v8356_v6, %v8308_v17 }
 0x1a1   : > { %7148 = vmatmul.mubr.msk.f32.vlgmr.msra.gmra.mrb[2].mxu1 %vm806_vm2, %v8353_v4  ;;  %7165 = vmatprep.subr.mxu0 %v7963_v54  ;;  %v8410_v18 = vcombine.high %v8361_v7, %v8361_v7  ;;  %v8492_v50 = vrot.slane %v804_v19, %v8308_v17  ;;  %v8496_v51 = vrot.slane %v8374_v11, %v8308_v17 }
 0x1a2   : > { %7151 = vmatpush3.xpose.msk.msra.mxu1 %vm806_vm2, %v8366_v8  ;;  %7152 = vmatprep.mubr.msk.f32.mxu1 %vm7964_vm1, %v7963_v54  ;;  %v8483_v48 = vrot.slane %v8389_v13, %v8308_v17  ;;  %v8501_v52 = vrot.slane %v805_v22, %v8308_v17  ;;  %v8505_v53 = vrot.slane %v8402_v16, %v8308_v17 }
 0x1a3   : > { %7158 = vmatmul.mubr.msk.f32.vlgmr.msra.gmra.mrb[2].mxu0 %vm806_vm2, %v8361_v7  ;;  %7160 = vmatprep.subr.mxu1 %v7963_v54  ;;  %v8515_v55 = vrot.slane %v8382_v12, %v8308_v17  ;;  %v8519_v56 = vrot.slane %v8353_v4, %v8308_v17 }
 0x1a4   : > { %7166 = vmatpush3.xpose.msk.msra.mxu0 %vm806_vm2, %v8374_v11  ;;  %7167 = vmatprep.mubr.msk.f32.mxu0 %vm7964_vm1, %v7963_v54 }
 0x1a5   : > { %7153 = vmatmul.mubr.msk.f32.vlgmr.msra.gmra.mrb[4].mxu1 %vm806_vm2, %v8382_v12  ;;  %7175 = vmatprep.subr.mxu0 %v7963_v54 }
 0x1a6   : > { %7161 = vmatpush3.xpose.msk.msra.mxu1 %vm806_vm2, %v8389_v13  ;;  %7162 = vmatprep.mubr.msk.f32.mxu1 %vm7964_vm1, %v7963_v54 }
 0x1a7   : > { %7168 = vmatmul.mubr.msk.f32.vlgmr.msra.gmra.mrb[4].mxu0 %vm806_vm2, %v8396_v15  ;;  %7170 = vmatprep.subr.mxu1 %v7963_v54 }
 0x1a8   : > { %7176 = vmatpush3.xpose.msk.msra.mxu0 %vm806_vm2, %v8402_v16  ;;  %7177 = vmatprep.mubr.msk.f32.mxu0 %vm7964_vm1, %v7963_v54 }
 0x1a9   : > { %7163 = vmatmul.mubr.msk.f32.vlgmr.msra.gmra.mrb[6].mxu1 %vm806_vm2, %v8410_v18  ;;  %7185 = vmatprep.subr.mxu0 %v7963_v54 }
 0x1aa   : > { %7171 = vmatpush3.xpose.msk.msra.mxu1 %vm806_vm2, %v804_v19  ;;  %7172 = vmatprep.mubr.msk.f32.mxu1 %vm7964_vm1, %v7963_v54 }
 0x1ab   : > { %7178 = vmatmul.mubr.msk.f32.vlgmr.msra.gmra.mrb[6].mxu0 %vm806_vm2, %v8422_v20  ;;  %7180 = vmatprep.subr.mxu1 %v7963_v54 }
 0x1ac   : > { %7187 = vmatprep.mubr.msk.f32.mxu0 %vm7964_vm1, %v7963_v54 }
 0x1ad   : > { %7173 = vmatmul.mubr.msk.f32.vlgmr.msra.gmra.mrb[8].mxu1 %vm806_vm2, %v8432_v21 }
 0x1ae   : > { %7181 = vmatpush3.xpose.msk.msra.mxu1 %vm806_vm2, %v805_v22  ;;  %7182 = vmatprep.mubr.msk.f32.mxu1 %vm7964_vm1, %v7963_v54 }
 0x1af   : > { %7190 = vmatprep.subr.mxu1 %v7963_v54 }
 0x1b1   : > { %7183 = vmatmul.mubr.msk.f32.vlgmr.msra.gmra.mrb[10].mxu1 %vm806_vm2, %v8448_v23 }
 0x1b2   : > { %7192 = vmatprep.mubr.msk.f32.mxu1 %vm7964_vm1, %v7963_v54 }
 0x274   : > { %v877_v24 = vpop.f32.mrb[2].mxu1 }
 0x275   : > { %v7149_v25 = vpop.f32.mrb[3].mxu1  ;;  %v1400_v26 = vsel %vm1399_vm3, %v877_v24, -inf }
 0x276   : > { %1401 = vmax.xlane.f32.xlu0 %v1400_v26  ;;  %v1025_v27 = vpop.f32.mrb[2].mxu0 }
 0x277   : > { %v7159_v28 = vpop.f32.mrb[3].mxu0  ;;  %v1406_v29 = vsel %vm1399_vm3, %v1025_v27, -inf }
 0x278   : > { %v951_v30 = vpop.f32.mrb[4].mxu1  ;;  %1407 = vmax.xlane.f32.xlu1 %v1406_v29 }
 0x279   : > { %v7154_v31 = vpop.f32.mrb[5].mxu1  ;;  %v1403_v32 = vsel %vm1399_vm3, %v951_v30, -inf }
 0x27a   : > { %1404 = vmax.xlane.f32.xlu0 %v1403_v32  ;;  %v8458_v33 = vpop.f32.mrb[4].mxu0 }
 0x27b   : > { %v7169_v34 = vpop.f32.mrb[5].mxu0  ;;  %v1412_v37 = vsel %vm1399_vm3, %v8458_v33, -inf }
 0x27c   : > { %v1099_v35 = vpop.f32.mrb[6].mxu1  ;;  %v8565_v34 = vrot.slane %v8410_v18, %v8308_v17  ;;  %v8581_v18 = vrot.slane %v8396_v15, %v8308_v17 }
 0x27d   : > { %v7164_v36 = vpop.f32.mrb[7].mxu1  ;;  %v1409_v38 = vsel %vm1399_vm3, %v1099_v35, -inf }
 0x27e   : > { %1413 = vmax.xlane.f32.xlu0 %v1412_v37  ;;  %v8463_v39 = vpop.f32.mrb[6].mxu0  ;;  %1410 = vmax.xlane.f32.xlu1 %v1409_v38 }
 0x27f   : > { %v7179_v40 = vpop.f32.mrb[7].mxu0  ;;  %v1418_v43 = vsel %vm1399_vm3, %v8463_v39, -inf }
 0x280   : > { %v8465_v41 = vpop.f32.mrb[8].mxu1 }
 0x281   : > { %v7174_v42 = vpop.f32.mrb[9].mxu1  ;;  %v1415_v57 = vsel %vm1399_vm3, %v8465_v41, -inf }
 0x282   : > { %1419 = vmax.xlane.f32.xlu0 %v1418_v43 }
 0x284   : > { %v8469_v44 = vpop.f32.mrb[10].mxu1 }
 0x285   : > { %v7184_v45 = vpop.f32.mrb[11].mxu1  ;;  %v1421_v58 = vsel %vm1399_vm3, %v8469_v44, -inf }
 0x28f   : > { %1581 = vrot.lane.b32.xlu1 %v8473_v46, %s7965_s23 }
 0x293   : > { %1665 = vrot.lane.b32.xlu1 %v8478_v47, %s7965_s23 }
 0x297   : > { %1749 = vrot.lane.b32.xlu1 %v8483_v48, %s7965_s23 }
 0x298   : > { %1495 = vrot.lane.b32.xlu0 %v8487_v49, %s7965_s23 }
 0x29b   : > { %1917 = vrot.lane.b32.xlu1 %v8492_v50, %s7965_s23 }
 0x29c   : > { %1833 = vrot.lane.b32.xlu0 %v8496_v51, %s7965_s23 }
 0x29f   : > { %2085 = vrot.lane.b32.xlu1 %v8501_v52, %s7965_s23 }
 0x2a0   : > { %2001 = vrot.lane.b32.xlu0 %v8505_v53, %s7965_s23 }
 0x2a3   : > { %2281 = vrot.lane.b32.xlu1 %v8473_v46, %s7966_s22 }
 0x2a4   : > { %2196 = vrot.lane.b32.xlu0 %v8487_v49, %s7966_s22 }
 0x2a7   : > { %2279 = vrot.lane.b32.xlu1 %v8515_v55, %s7966_s22 }
 0x2a8   : > { %2194 = vrot.lane.b32.xlu0 %v8519_v56, %s7966_s22 }
 0x2ac   : > { %2366 = vrot.lane.b32.xlu0 %v8478_v47, %s7966_s22 }
 0x2cb   : > { %1416 = vmax.xlane.f32.xlu1 %v1415_v57 }
 0x2cf   : > { %1422 = vmax.xlane.f32.xlu1 %v1421_v58 }
 0x2e0   : > { %2451 = vrot.lane.b32.xlu1 %v8483_v48, %s7966_s22 }
 0x303   : > { %v1402_v59 = vpop.xlane.xlu0 %1401 }
 0x304   : > { %v1424_v60 = vsub.f32 %v877_v24, %v1402_v59 }
 0x305   : > { %v1408_v61 = vpop.xlane.xlu1 %1407 }
 0x306   : > { %v1432_v62 = vmul.f32 1.442695, %v1424_v60  ;;  %v1426_v63 = vsub.f32 %v1025_v27, %v1408_v61 }
 0x307   : > { %v1405_v0 = vpop.xlane.xlu0 %1404 }
 0x308   : > { %7601 = vpow2.f32 %v1432_v62  ;;  %v1436_v1 = vmul.f32 1.442695, %v1426_v63  ;;  %v1425_v2 = vsub.f32 %v951_v30, %v1405_v0  ;;  %v8623_v63 = vrot.slane %v8448_v23, %v8308_v17 }
 0x30a   : > { %7603 = vpow2.f32 %v1436_v1  ;;  %v1434_v3 = vmul.f32 1.442695, %v1425_v2 }
 0x30b   : > { %v1414_v4 = vpop.xlane.xlu0 %1413  ;;  %v1411_v5 = vpop.xlane.xlu1 %1410 }
 0x30c   : > { %7605 = vpow2.f32 %v1434_v3  ;;  %v1428_v6 = vsub.f32 %v8458_v33, %v1414_v4  ;;  %v1427_v8 = vsub.f32 %v1099_v35, %v1411_v5  ;;  %v8571_v35 = vrot.slane %v8361_v7, %v8308_v17 }
 0x30d   : > { %v8591_v7 = vrot.slane %v8422_v20, %v8308_v17 }
 0x30e   : > { %v1440_v9 = vmul.f32 1.442695, %v1428_v6  ;;  %v1438_v10 = vmul.f32 1.442695, %v1427_v8 }
 0x30f   : > { %v1420_v11 = vpop.xlane.xlu0 %1419  ;;  %v1582_v12 = vpop.permute.xlu1 %1581 }
 0x310   : > { %7607 = vpow2.f32 %v1440_v9  ;;  %v1430_v13 = vsub.f32 %v8463_v39, %v1420_v11  ;;  %7191 = vmatpush3.msk.msra.mxu1 %vm1501_vm4, %v1582_v12 }
 0x311   : > { %7609 = vpow2.f32 %v1438_v10  ;;  %7200 = vmatprep.subr.mxu1 %v7963_v54 }
 0x312   : > { %v8537_v14 = vpop.eup %7601  ;;  %v1444_v16 = vmul.f32 1.442695, %v1430_v13 }
 0x313   : > { %v1496_v19 = vpop.permute.xlu0 %1495  ;;  %v1448_v22 = vsel %vm1399_vm3, %v8537_v14, 0.0  ;;  %v1666_v36 = vpop.permute.xlu1 %1665 }
 0x314   : > { %v8541_v24 = vpop.eup %7603  ;;  %7611 = vpow2.f32 %v1444_v16  ;;  %1449 = vadd.xlane.f32.xlu0 %v1448_v22  ;;  %7186 = vmatpush3.msk.msra.mxu0 %vm1501_vm4, %v1496_v19 }
 0x315   : > { %7195 = vmatprep.subr.mxu0 %v7963_v54  ;;  %v1454_v26 = vsel %vm1399_vm3, %v8541_v24, 0.0 }
 0x316   : > { %v8545_v25 = vpop.eup %7605 }
 0x317   : > { %v1451_v27 = vsel %vm1399_vm3, %v8545_v25, 0.0  ;;  %v8577_v37 = vpop.permute.xlu1 %1749 }
 0x318   : > { %1455 = vadd.xlane.f32.xlu0 %v1454_v26  ;;  %1452 = vadd.xlane.f32.xlu1 %v1451_v27 }
 0x31a   : > { %v8551_v28 = vpop.eup %7607 }
 0x31b   : > { %v8553_v29 = vpop.eup %7609  ;;  %v1460_v30 = vsel %vm1399_vm3, %v8551_v28, 0.0  ;;  %v8585_v38 = vpop.permute.xlu1 %1917 }
 0x31c   : > { %1461 = vadd.xlane.f32.xlu0 %v1460_v30  ;;  %v1457_v31 = vsel %vm1399_vm3, %v8553_v29, 0.0 }
 0x31d   : > { %1458 = vadd.xlane.f32.xlu1 %v1457_v31 }
 0x31e   : > { %v8559_v32 = vpop.eup %7611 }
 0x31f   : > { %v1466_v33 = vsel %vm1399_vm3, %v8559_v32, 0.0  ;;  %v8595_v39 = vpop.permute.xlu1 %2085 }
 0x320   : > { %1467 = vadd.xlane.f32.xlu0 %v1466_v33 }
 0x323   : > { %v8597_v40 = vpop.permute.xlu1 %2281 }
 0x327   : > { %v8599_v15 = vpop.permute.xlu1 %2279 }
 0x32e   : > { %2449 = vrot.lane.b32.xlu1 %v8565_v34, %s7966_s22 }
 0x336   : > { %2364 = vrot.lane.b32.xlu0 %v8571_v35, %s7966_s22 }
 0x33a   : > { %2536 = vrot.lane.b32.xlu0 %v8496_v51, %s7966_s22 }
 0x33e   : > { %2534 = vrot.lane.b32.xlu0 %v8581_v18, %s7966_s22 }
 0x342   : > { %2706 = vrot.lane.b32.xlu0 %v8505_v53, %s7966_s22 }
 0x346   : > { %2704 = vrot.lane.b32.xlu0 %v8591_v7, %s7966_s22 }
 0x358   : > { %v1417_v42 = vpop.xlane.xlu1 %1416 }
 0x359   : > { %v1429_v43 = vsub.f32 %v8465_v41, %v1417_v42  ;;  %v8615_v41 = vrot.slane %v8432_v21, %v8308_v17 }
 0x35b   : > { %v1442_v45 = vmul.f32 1.442695, %v1429_v43 }
 0x35c   : > { %v1423_v57 = vpop.xlane.xlu1 %1422 }
 0x35d   : > { %7613 = vpow2.f32 %v1442_v45  ;;  %v1431_v58 = vsub.f32 %v8469_v44, %v1423_v57  ;;  %v1834_v44 = vpop.permute.xlu0 %1833 }
 0x35f   : > { %v1446_v59 = vmul.f32 1.442695, %v1431_v58 }
 0x360   : > { %v8634_v3 = vpop.permute.xlu1 %2451 }
 0x361   : > { %7615 = vpow2.f32 %v1446_v59  ;;  %v2002_v0 = vpop.permute.xlu0 %2001 }
 0x365   : > { %v8627_v1 = vpop.permute.xlu0 %2196 }
 0x367   : > { %v8603_v20 = vpop.eup %7613 }
 0x368   : > { %v1463_v60 = vsel %vm1399_vm3, %v8603_v20, 0.0 }
 0x369   : > { %1464 = vadd.xlane.f32.xlu1 %v1463_v60  ;;  %v8629_v2 = vpop.permute.xlu0 %2194 }
 0x36b   : > { %v8607_v61 = vpop.eup %7615 }
 0x36c   : > { %v1469_v62 = vsel %vm1399_vm3, %v8607_v61, 0.0 }
 0x36d   : > { %1470 = vadd.xlane.f32.xlu1 %v1469_v62  ;;  %v8631_v21 = vpop.permute.xlu0 %2366 }
 0x37e   : > { %2621 = vrot.lane.b32.xlu1 %v8492_v50, %s7966_s22 }
 0x382   : > { %2619 = vrot.lane.b32.xlu1 %v8615_v41, %s7966_s22 }
 0x386   : > { %2791 = vrot.lane.b32.xlu1 %v8501_v52, %s7966_s22 }
 0x38a   : > { %2789 = vrot.lane.b32.xlu1 %v8623_v63, %s7966_s22  ;;  %s6976_s22 = sshll.u32 %s8049_s13, 8 }
 0x38b   : > { %s9461_s28 = scalar_lea.hbm %s9550_s24, %s6976_s22 }
 0x3a1   : > { %v1450_v4 = vpop.xlane.xlu0 %1449 }
 0x3a2   : > { %7617 = vrcp.f32 %v1450_v4 }
 0x3a5   : > { %v1456_v5 = vpop.xlane.xlu0 %1455  ;;  %v1453_v6 = vpop.xlane.xlu1 %1452 }
 0x3a6   : > { %7619 = vrcp.f32 %v1456_v5 }
 0x3a7   : > { %7621 = vrcp.f32 %v1453_v6 }
 0x3a9   : > { %v1462_v23 = vpop.xlane.xlu0 %1461 }
 0x3aa   : > { %7623 = vrcp.f32 %v1462_v23  ;;  %v1459_v8 = vpop.xlane.xlu1 %1458 }
 0x3ab   : > { %7625 = vrcp.f32 %v1459_v8 }
 0x3ac   : > { %v7618_v9 = vpop.eup %7617 }
 0x3ad   : > { %v1468_v10 = vpop.xlane.xlu0 %1467  ;;  %v1480_v11 = vmul.f32 %v7618_v9, %v8537_v14 }
 0x3ae   : > { %7627 = vrcp.f32 %v1468_v10  ;;  %v2450_v45 = vpop.permute.xlu1 %2449 }
 0x3af   : > { %7188 = vmatmul.mubr.msk.f32.vlgmr.msra.gmra.mrb[8].mxu0 %vm1497_vm5, %v1480_v11  ;;  %v2171_v12 = vmul.f32 0.25, %v1480_v11 }
 0x3b0   : > { %v7620_v13 = vpop.eup %7619  ;;  %7196 = vmatpush3.msk.msra.mxu0 %vm1501_vm4, %v1666_v36  ;;  %7197 = vmatprep.mubr.msk.f32.mxu0 %vm7964_vm1, %v7963_v54 }
 0x3b1   : > { %v7622_v16 = vpop.eup %7621  ;;  %2179 = vst.msk [vmem:[%s8640_s30] sm:$0x3] %vm1399_vm3, %v2171_v12  ;;  %7205 = vmatprep.subr.mxu0 %v7963_v54  ;;  %v1482_v14 = vmul.f32 %v7620_v13, %v8541_v24  ;;  %v2365_v31 = vpop.permute.xlu0 %2364 }
 0x3b2   : > { %v1481_v19 = vmul.f32 %v7622_v16, %v8545_v25 }
 0x3b3   : > { %7198 = vmatmul.mubr.msk.f32.vlgmr.msra.gmra.mrb[10].mxu0 %vm1497_vm5, %v1482_v14  ;;  %v2173_v22 = vmul.f32 0.25, %v1482_v14 }
 0x3b4   : > { %v7624_v26 = vpop.eup %7623  ;;  %7193 = vmatmul.mubr.msk.f32.vlgmr.msra.gmra.mrb[12].mxu1 %vm1497_vm5, %v1481_v19  ;;  %v2172_v27 = vmul.f32 0.25, %v1481_v19  ;;  %7206 = vmatpush3.msk.msra.mxu0 %vm1501_vm4, %v1834_v44 }
 0x3b5   : > { %v7626_v30 = vpop.eup %7625  ;;  %2181 = vst.msk [vmem:[%s8640_s30 + $0x4] sm:$0x3] %vm1399_vm3, %v2173_v22  ;;  %7201 = vmatpush3.msk.msra.mxu1 %vm1501_vm4, %v8577_v37  ;;  %7202 = vmatprep.mubr.msk.f32.mxu1 %vm7964_vm1, %v7963_v54  ;;  %v1484_v24 = vmul.f32 %v7624_v26, %v8551_v28  ;;  %v2537_v37 = vpop.permute.xlu0 %2536 }
 0x3b6   : > { %2180 = vst.msk [vmem:[%s8640_s30 + $0x2] sm:$0x3] %vm1399_vm3, %v2172_v27  ;;  %7207 = vmatprep.mubr.msk.f32.mxu0 %vm7964_vm1, %v7963_v54  ;;  %7210 = vmatprep.subr.mxu1 %v7963_v54  ;;  %v1483_v25 = vmul.f32 %v7626_v30, %v8553_v29 }
 0x3b7   : > { %7215 = vmatprep.subr.mxu0 %v7963_v54  ;;  %7208 = vmatmul.mubr.msk.f32.vlgmr.msra.gmra.mrb[12].mxu0 %vm1497_vm5, %v1484_v24  ;;  %v2175_v33 = vmul.f32 0.25, %v1484_v24 }
 0x3b8   : > { %v7628_v36 = vpop.eup %7627  ;;  %7203 = vmatmul.mubr.msk.f32.vlgmr.msra.gmra.mrb[14].mxu1 %vm1497_vm5, %v1483_v25  ;;  %v2174_v28 = vmul.f32 0.25, %v1483_v25  ;;  %7216 = vmatpush3.msk.msra.mxu0 %vm1501_vm4, %v2002_v0 }
 0x3b9   : > { %2183 = vst.msk [vmem:[%s8640_s30 + $0x8] sm:$0x3] %vm1399_vm3, %v2175_v33  ;;  %7211 = vmatpush3.msk.msra.mxu1 %vm1501_vm4, %v8585_v38  ;;  %7217 = vmatprep.mubr.msk.f32.mxu0 %vm7964_vm1, %v7963_v54  ;;  %v1486_v29 = vmul.f32 %v7628_v36, %v8559_v32  ;;  %v2535_v32 = vpop.permute.xlu0 %2534 }
 0x3ba   : > { %2182 = vst.msk [vmem:[%s8640_s30 + $0x6] sm:$0x3] %vm1399_vm3, %v2174_v28  ;;  %7225 = vmatprep.subr.mxu0 %v7963_v54  ;;  %7212 = vmatprep.mubr.msk.f32.mxu1 %vm7964_vm1, %v7963_v54 }
 0x3bb   : > { %7218 = vmatmul.mubr.msk.f32.vlgmr.msra.gmra.mrb[14].mxu0 %vm1497_vm5, %v1486_v29  ;;  %v2177_v42 = vmul.f32 0.25, %v1486_v29  ;;  %7220 = vmatprep.subr.mxu1 %v7963_v54 }
 0x3bc   : > { %7227 = vmatprep.mubr.msk.f32.mxu0 %vm7964_vm1, %v7963_v54 }
 0x3bd   : > { %2185 = vst.msk [vmem:[%s8640_s30 + $0xc] sm:$0x3] %vm1399_vm3, %v2177_v42  ;;  %v2707_v38 = vpop.permute.xlu0 %2706 }
 0x3bf   : > { %7226 = vmatpush3.xpose.msk.msra.mxu0 %vm806_vm2, %v8627_v1 }
 0x3c0   : > { %7235 = vmatprep.subr.mxu0 %v7963_v54 }
 0x3c1   : > { %v2705_v43 = vpop.permute.xlu0 %2704 }
 0x3c2   : > { %7228 = vmatmul.mubr.msk.f32.vlgmr.msra.gmra.mrb[16].mxu0 %vm806_vm2, %v8629_v2 }
 0x3c3   : > { %7236 = vmatpush3.xpose.msk.msra.mxu0 %vm806_vm2, %v8631_v21  ;;  %7237 = vmatprep.mubr.msk.f32.mxu0 %vm7964_vm1, %v7963_v54 }
 0x3c4   : > { %7245 = vmatprep.subr.mxu0 %v7963_v54 }
 0x3c6   : > { %7238 = vmatmul.mubr.msk.f32.vlgmr.msra.gmra.mrb[18].mxu0 %vm806_vm2, %v2365_v31 }
 0x3c7   : > { %7246 = vmatpush3.xpose.msk.msra.mxu0 %vm806_vm2, %v2537_v37  ;;  %7247 = vmatprep.mubr.msk.f32.mxu0 %vm7964_vm1, %v7963_v54 }
 0x3c8   : > { %7255 = vmatprep.subr.mxu0 %v7963_v54 }
 0x3ca   : > { %7248 = vmatmul.mubr.msk.f32.vlgmr.msra.gmra.mrb[20].mxu0 %vm806_vm2, %v2535_v32 }
 0x3cb   : > { %7256 = vmatpush3.xpose.msk.msra.mxu0 %vm806_vm2, %v2707_v38  ;;  %7257 = vmatprep.mubr.msk.f32.mxu0 %vm7964_vm1, %v7963_v54 }
 0x3cc   : > { %7265 = vmatprep.subr.mxu0 %v7963_v54 }
 0x3ce   : > { %7258 = vmatmul.mubr.msk.f32.vlgmr.msra.gmra.mrb[22].mxu0 %vm806_vm2, %v2705_v43 }
 0x3cf   : > { %7267 = vmatprep.mubr.msk.f32.mxu0 %vm7964_vm1, %v7963_v54 }
 0x3f6   : > { %v1465_v57 = vpop.xlane.xlu1 %1464 }
 0x3f7   : > { %7629 = vrcp.f32 %v1465_v57 }
 0x3fa   : > { %v1471_v58 = vpop.xlane.xlu1 %1470 }
 0x3fb   : > { %7631 = vrcp.f32 %v1471_v58 }
 0x3fe   : > { %v2622_v1 = vpop.permute.xlu1 %2621 }
 0x401   : > { %v7630_v59 = vpop.eup %7629 }
 0x402   : > { %v1485_v60 = vmul.f32 %v7630_v59, %v8603_v20 }
 0x404   : > { %7213 = vmatmul.mubr.msk.f32.vlgmr.msra.gmra.mrb[16].mxu1 %vm1497_vm5, %v1485_v60  ;;  %v2176_v62 = vmul.f32 0.25, %v1485_v60 }
 0x405   : > { %v7632_v44 = vpop.eup %7631  ;;  %7221 = vmatpush3.msk.msra.mxu1 %vm1501_vm4, %v8595_v39  ;;  %7222 = vmatprep.mubr.msk.f32.mxu1 %vm7964_vm1, %v7963_v54  ;;  %v2620_v39 = vpop.permute.xlu1 %2619 }
 0x406   : > { %2184 = vst.msk [vmem:[%s8640_s30 + $0xa] sm:$0x3] %vm1399_vm3, %v2176_v62  ;;  %v1487_v0 = vmul.f32 %v7632_v44, %v8607_v61  ;;  %7230 = vmatprep.subr.mxu1 %v7963_v54 }
 0x408   : > { %7223 = vmatmul.mubr.msk.f32.vlgmr.msra.gmra.mrb[18].mxu1 %vm1497_vm5, %v1487_v0  ;;  %v2178_v20 = vmul.f32 0.25, %v1487_v0 }
 0x409   : > { %7232 = vmatprep.mubr.msk.f32.mxu1 %vm7964_vm1, %v7963_v54  ;;  %v2792_v61 = vpop.permute.xlu1 %2791 }
 0x40a   : > { %2186 = vst.msk [vmem:[%s8640_s30 + $0xe] sm:$0x3] %vm1399_vm3, %v2178_v20 }
 0x40c   : > { %7231 = vmatpush3.xpose.msk.msra.mxu1 %vm806_vm2, %v8597_v40 }
 0x40d   : > { %7240 = vmatprep.subr.mxu1 %v7963_v54  ;;  %v2790_v40 = vpop.permute.xlu1 %2789 }
 0x40f   : > { %7233 = vmatmul.mubr.msk.f32.vlgmr.msra.gmra.mrb[20].mxu1 %vm806_vm2, %v8599_v15 }
 0x410   : > { %7241 = vmatpush3.xpose.msk.msra.mxu1 %vm806_vm2, %v8634_v3  ;;  %7242 = vmatprep.mubr.msk.f32.mxu1 %vm7964_vm1, %v7963_v54 }
 0x411   : > { %7250 = vmatprep.subr.mxu1 %v7963_v54 }
 0x413   : > { %7243 = vmatmul.mubr.msk.f32.vlgmr.msra.gmra.mrb[22].mxu1 %vm806_vm2, %v2450_v45 }
 0x414   : > { %7251 = vmatpush3.xpose.msk.msra.mxu1 %vm806_vm2, %v2622_v1  ;;  %7252 = vmatprep.mubr.msk.f32.mxu1 %vm7964_vm1, %v7963_v54 }
 0x415   : > { %7260 = vmatprep.subr.mxu1 %v7963_v54 }
 0x417   : > { %7253 = vmatmul.mubr.msk.f32.vlgmr.msra.gmra.mrb[24].mxu1 %vm806_vm2, %v2620_v39 }
 0x418   : > { %7261 = vmatpush3.xpose.msk.msra.mxu1 %vm806_vm2, %v2792_v61  ;;  %7262 = vmatprep.mubr.msk.f32.mxu1 %vm7964_vm1, %v7963_v54 }
 0x419   : > { %7270 = vmatprep.subr.mxu1 %v7963_v54 }
 0x41b   : > { %7263 = vmatmul.mubr.msk.f32.vlgmr.msra.gmra.mrb[26].mxu1 %vm806_vm2, %v2790_v40 }
 0x41c   : > { %7272 = vmatprep.mubr.msk.f32.mxu1 %vm7964_vm1, %v7963_v54 }
 0x482   : > { %v1570_v15 = vpop.f32.mrb[8].mxu0 }
 0x483   : > { %2163 = vst.msk [vmem:[#allocation2] sm:$0x3] %vm2162_vm6, %v1570_v15  ;;  %v7189_v2 = vpop.f32.mrb[9].mxu0 }
 0x486   : > { %v1738_v21 = vpop.f32.mrb[10].mxu0 }
 0x487   : > { %v1654_v3 = vpop.f32.mrb[12].mxu1  ;;  %2165 = vst.msk [vmem:[#allocation2 + $0x4] sm:$0x3] %vm2162_vm6, %v1738_v21  ;;  %v7199_v4 = vpop.f32.mrb[11].mxu0 }
 0x488   : > { %2164 = vst.msk [vmem:[#allocation2 + $0x2] sm:$0x3] %vm2162_vm6, %v1654_v3  ;;  %v7194_v5 = vpop.f32.mrb[13].mxu1 }
 0x48a   : > { %v1906_v6 = vpop.f32.mrb[12].mxu0 }
 0x48b   : > { %v1822_v23 = vpop.f32.mrb[14].mxu1  ;;  %2167 = vst.msk [vmem:[#allocation2 + $0x8] sm:$0x3] %vm2162_vm6, %v1906_v6  ;;  %v7209_v8 = vpop.f32.mrb[13].mxu0 }
 0x48c   : > { %2166 = vst.msk [vmem:[#allocation2 + $0x6] sm:$0x3] %vm2162_vm6, %v1822_v23  ;;  %v7204_v9 = vpop.f32.mrb[15].mxu1 }
 0x48e   : > { %v2074_v10 = vpop.f32.mrb[14].mxu0 }
 0x48f   : > { %2169 = vst.msk [vmem:[#allocation2 + $0xc] sm:$0x3] %vm2162_vm6, %v2074_v10  ;;  %v7219_v11 = vpop.f32.mrb[15].mxu0 }
 0x495   : > { %v2268_v12 = vpop.f32.mrb[16].mxu0 }
 0x496   : > { %v7229_v13 = vpop.f32.mrb[17].mxu0  ;;  %v2867_v16 = vsel %vm1399_vm3, %v2268_v12, -inf }
 0x497   : > { %2868 = vmax.xlane.f32.xlu0 %v2867_v16 }
 0x499   : > { %v2438_v14 = vpop.f32.mrb[18].mxu0 }
 0x49a   : > { %v7239_v19 = vpop.f32.mrb[19].mxu0  ;;  %v2873_v22 = vsel %vm1399_vm3, %v2438_v14, -inf }
 0x49b   : > { %2874 = vmax.xlane.f32.xlu0 %v2873_v22 }
 0x49d   : > { %v8758_v26 = vpop.f32.mrb[20].mxu0 }
 0x49e   : > { %v7249_v27 = vpop.f32.mrb[21].mxu0  ;;  %v2879_v57 = vsel %vm1399_vm3, %v8758_v26, -inf }
 0x4a1   : > { %v8760_v30 = vpop.f32.mrb[22].mxu0 }
 0x4a2   : > { %v7259_v31 = vpop.f32.mrb[23].mxu0  ;;  %v2885_v62 = vsel %vm1399_vm3, %v8760_v30, -inf }
 0x4d7   : > { %v1990_v24 = vpop.f32.mrb[16].mxu1 }
 0x4d8   : > { %2168 = vst.msk [vmem:[#allocation2 + $0xa] sm:$0x3] %vm2162_vm6, %v1990_v24  ;;  %v7214_v25 = vpop.f32.mrb[17].mxu1 }
 0x4db   : > { %v2158_v33 = vpop.f32.mrb[18].mxu1 }
 0x4dc   : > { %2170 = vst.msk [vmem:[#allocation2 + $0xe] sm:$0x3] %vm2162_vm6, %v2158_v33  ;;  %v7224_v36 = vpop.f32.mrb[19].mxu1 }
 0x4e2   : > { %v2353_v28 = vpop.f32.mrb[20].mxu1 }
 0x4e3   : > { %v7234_v29 = vpop.f32.mrb[21].mxu1  ;;  %v2870_v37 = vsel %vm1399_vm3, %v2353_v28, -inf }
 0x4e4   : > { %2871 = vmax.xlane.f32.xlu1 %v2870_v37 }
 0x4e6   : > { %v2523_v42 = vpop.f32.mrb[22].mxu1 }
 0x4e7   : > { %v7244_v32 = vpop.f32.mrb[23].mxu1  ;;  %v2876_v38 = vsel %vm1399_vm3, %v2523_v42, -inf }
 0x4e8   : > { %2877 = vmax.xlane.f32.xlu0 %v2876_v38 }
 0x4ea   : > { %v2693_v43 = vpop.f32.mrb[24].mxu1 }
 0x4eb   : > { %v7254_v45 = vpop.f32.mrb[25].mxu1  ;;  %v2882_v58 = vsel %vm1399_vm3, %v2693_v43, -inf }
 0x4ec   : > { %2880 = vmax.xlane.f32.xlu0 %v2879_v57  ;;  %2883 = vmax.xlane.f32.xlu1 %v2882_v58 }
 0x4ee   : > { %v8769_v59 = vpop.f32.mrb[26].mxu1 }
 0x4ef   : > { %v7264_v60 = vpop.f32.mrb[27].mxu1  ;;  %v2888_v2 = vsel %vm1399_vm3, %v8769_v59, -inf }
 0x4f0   : > { %2886 = vmax.xlane.f32.xlu0 %v2885_v62 }
 0x4fd   : > { %3032 = vrot.lane.b32.xlu1 %v8473_v46, %s7967_s19 }
 0x501   : > { %3109 = vrot.lane.b32.xlu1 %v8478_v47, %s7967_s19 }
 0x505   : > { %3186 = vrot.lane.b32.xlu1 %v8483_v48, %s7967_s19 }
 0x506   : > { %2955 = vrot.lane.b32.xlu0 %v8487_v49, %s7967_s19 }
 0x509   : > { %3340 = vrot.lane.b32.xlu1 %v8492_v50, %s7967_s19 }
 0x50a   : > { %3263 = vrot.lane.b32.xlu0 %v8496_v51, %s7967_s19 }
 0x50d   : > { %3494 = vrot.lane.b32.xlu1 %v8501_v52, %s7967_s19 }
 0x50e   : > { %3417 = vrot.lane.b32.xlu0 %v8505_v53, %s7967_s19  ;;  %s7873_s19 = scalar_lea.vmem %s9463_s0, 256 }
 0x50f   : > { %p7874_p4 = scmp.ne.s32.totalorder %s9463_s0, %s7873_s19 }
 0x511   : > { %3724 = vrot.lane.b32.xlu1 %v8473_v46, %s7968_s29  ;;  %p7875_p0 = pnand %p7874_p4, %p8182_p5 }
 0x512   : > { %3646 = vrot.lane.b32.xlu0 %v8487_v49, %s7968_s29 }
 0x513   : > { %p7876_p8 = pneg %p7875_p0 }
 0x515   : > { %3722 = vrot.lane.b32.xlu1 %v8515_v55, %s7968_s29 }
 0x516   : > { %3644 = vrot.lane.b32.xlu0 %v8519_v56, %s7968_s29 }
 0x51a   : > { %3802 = vrot.lane.b32.xlu0 %v8478_v47, %s7968_s29 }
 0x524   : > { %v2869_v44 = vpop.xlane.xlu0 %2868 }
 0x525   : > { %v2891_v0 = vsub.f32 %v2268_v12, %v2869_v44 }
 0x527   : > { %v2899_v1 = vmul.f32 1.442695, %v2891_v0 }
 0x528   : > { %v2875_v20 = vpop.xlane.xlu0 %2874 }
 0x529   : > { %v2893_v39 = vsub.f32 %v2438_v14, %v2875_v20  ;;  %7633 = vpow2.f32 %v2899_v1 }
 0x52b   : > { %v2903_v61 = vmul.f32 1.442695, %v2893_v39 }
 0x52d   : > { %7635 = vpow2.f32 %v2903_v61 }
 0x533   : > { %v8791_v40 = vpop.eup %7633 }
 0x534   : > { %v2915_v15 = vsel %vm1399_vm3, %v8791_v40, 0.0 }
 0x537   : > { %v8797_v21 = vpop.eup %7635 }
 0x538   : > { %v2921_v3 = vsel %vm1399_vm3, %v8797_v21, 0.0 }
 0x539   : > { %2916 = vadd.xlane.f32.xlu0 %v2915_v15  ;;  %2889 = vmax.xlane.f32.xlu1 %v2888_v2 }
 0x53d   : > { %2922 = vadd.xlane.f32.xlu0 %v2921_v3 }
 0x54a   : > { %3880 = vrot.lane.b32.xlu1 %v8483_v48, %s7968_s29 }
 0x571   : > { %v2872_v4 = vpop.xlane.xlu1 %2871 }
 0x572   : > { %v2892_v5 = vsub.f32 %v2353_v28, %v2872_v4 }
 0x574   : > { %v2901_v6 = vmul.f32 1.442695, %v2892_v5 }
 0x575   : > { %v2878_v23 = vpop.xlane.xlu0 %2877 }
 0x576   : > { %7637 = vpow2.f32 %v2901_v6  ;;  %v2894_v8 = vsub.f32 %v2523_v42, %v2878_v23 }
 0x578   : > { %v2905_v9 = vmul.f32 1.442695, %v2894_v8  ;;  %v3612_v8 = vld [vmem:[%s8640_s30] sm:$0x3] }
 0x579   : > { %v2881_v10 = vpop.xlane.xlu0 %2880  ;;  %v2884_v11 = vpop.xlane.xlu1 %2883 }
 0x57a   : > { %7639 = vpow2.f32 %v2905_v9  ;;  %v2895_v12 = vsub.f32 %v8758_v26, %v2881_v10  ;;  %v2896_v13 = vsub.f32 %v2693_v43, %v2884_v11  ;;  %v3614_v11 = vld [vmem:[%s8640_s30 + $0x4] sm:$0x3] }
 0x57c   : > { %v2907_v16 = vmul.f32 1.442695, %v2895_v12  ;;  %v2909_v14 = vmul.f32 1.442695, %v2896_v13 }
 0x57d   : > { %v2887_v19 = vpop.xlane.xlu0 %2886  ;;  %v3033_v22 = vpop.permute.xlu1 %3032 }
 0x57e   : > { %7641 = vpow2.f32 %v2907_v16  ;;  %v2897_v27 = vsub.f32 %v8760_v30, %v2887_v19  ;;  %7271 = vmatpush3.msk.msra.mxu1 %vm1501_vm4, %v3033_v22 }
 0x57f   : > { %7643 = vpow2.f32 %v2909_v14  ;;  %7280 = vmatprep.subr.mxu1 %v7963_v54 }
 0x580   : > { %v8807_v31 = vpop.eup %7637  ;;  %v2911_v24 = vmul.f32 1.442695, %v2897_v27 }
 0x581   : > { %v2956_v25 = vpop.permute.xlu0 %2955  ;;  %v2918_v26 = vsel %vm1399_vm3, %v8807_v31, 0.0  ;;  %v3110_v38 = vpop.permute.xlu1 %3109 }
 0x582   : > { %7645 = vpow2.f32 %v2911_v24  ;;  %7266 = vmatpush3.msk.msra.mxu0 %vm1501_vm4, %v2956_v25  ;;  %2919 = vadd.xlane.f32.xlu1 %v2918_v26 }
 0x583   : > { %7275 = vmatprep.subr.mxu0 %v7963_v54 }
 0x584   : > { %v8813_v33 = vpop.eup %7639 }
 0x585   : > { %v2924_v30 = vsel %vm1399_vm3, %v8813_v33, 0.0  ;;  %v3264_v43 = vpop.permute.xlu0 %3263  ;;  %v8835_v45 = vpop.permute.xlu1 %3186 }
 0x586   : > { %2925 = vadd.xlane.f32.xlu1 %v2924_v30  ;;  %v3613_v30 = vld [vmem:[%s8640_s30 + $0x2] sm:$0x3] }
 0x588   : > { %v8817_v36 = vpop.eup %7641 }
 0x589   : > { %v8819_v28 = vpop.eup %7643  ;;  %v2927_v29 = vsel %vm1399_vm3, %v8817_v36, 0.0  ;;  %v8839_v57 = vpop.permute.xlu0 %3417 }
 0x58a   : > { %2928 = vadd.xlane.f32.xlu0 %v2927_v29  ;;  %v2930_v37 = vsel %vm1399_vm3, %v8819_v28, 0.0  ;;  %v8841_v58 = vpop.permute.xlu1 %3340 }
 0x58b   : > { %2931 = vadd.xlane.f32.xlu1 %v2930_v37 }
 0x58c   : > { %v8825_v42 = vpop.eup %7645 }
 0x58d   : > { %v2933_v32 = vsel %vm1399_vm3, %v8825_v42, 0.0  ;;  %v8847_v60 = vpop.permute.xlu0 %3646 }
 0x58e   : > { %2934 = vadd.xlane.f32.xlu0 %v2933_v32  ;;  %v8849_v62 = vpop.permute.xlu1 %3494 }
 0x591   : > { %v8853_v44 = vpop.permute.xlu0 %3644 }
 0x592   : > { %v8855_v0 = vpop.permute.xlu1 %3724 }
 0x595   : > { %v8861_v1 = vpop.permute.xlu0 %3802 }
 0x596   : > { %v8863_v20 = vpop.permute.xlu1 %3722 }
 0x59c   : > { %3878 = vrot.lane.b32.xlu1 %v8565_v34, %s7968_s29 }
 0x5a4   : > { %3800 = vrot.lane.b32.xlu0 %v8571_v35, %s7968_s29 }
 0x5a8   : > { %3958 = vrot.lane.b32.xlu0 %v8496_v51, %s7968_s29 }
 0x5ac   : > { %3956 = vrot.lane.b32.xlu0 %v8581_v18, %s7968_s29 }
 0x5b0   : > { %4114 = vrot.lane.b32.xlu0 %v8505_v53, %s7968_s29 }
 0x5b4   : > { %4112 = vrot.lane.b32.xlu0 %v8591_v7, %s7968_s29 }
 0x5b8   : > { %4356 = vrot.lane.b32.xlu0 %v8487_v49, %s7969_s2 }
 0x5bc   : > { %4664 = vrot.lane.b32.xlu0 %v8496_v51, %s7969_s2 }
 0x5c0   : > { %4818 = vrot.lane.b32.xlu0 %v8505_v53, %s7969_s2 }
 0x5c4   : > { %5047 = vrot.lane.b32.xlu0 %v8487_v49, %s7970_s17 }
 0x5c6   : > { %v2917_v39 = vpop.xlane.xlu0 %2916  ;;  %v2890_v61 = vpop.xlane.xlu1 %2889 }
 0x5c7   : > { %7647 = vrcp.f32 %v2917_v39  ;;  %v2898_v15 = vsub.f32 %v8769_v59, %v2890_v61 }
 0x5c8   : > { %5045 = vrot.lane.b32.xlu0 %v8519_v56, %s7970_s17 }
 0x5c9   : > { %v2913_v2 = vmul.f32 1.442695, %v2898_v15 }
 0x5ca   : > { %v2923_v3 = vpop.xlane.xlu0 %2922 }
 0x5cb   : > { %7649 = vpow2.f32 %v2913_v2  ;;  %v3616_v2 = vld [vmem:[%s8640_s30 + $0x8] sm:$0x3] }
 0x5cc   : > { %7651 = vrcp.f32 %v2923_v3 }
 0x5d1   : > { %v7648_v4 = vpop.eup %7647 }
 0x5d2   : > { %v2947_v5 = vmul.f32 %v7648_v4, %v8791_v40  ;;  %v3617_v4 = vld [vmem:[%s8640_s30 + $0xa] sm:$0x3] }
 0x5d4   : > { %7268 = vmatmul.mubr.msk.f32.vlgmr.msra.gmra.mrb[24].mxu0 %vm1497_vm5, %v2947_v5  ;;  %v3620_v6 = vmul.f32 0.25, %v2947_v5 }
 0x5d5   : > { %v8872_v23 = vpop.eup %7649  ;;  %7276 = vmatpush3.msk.msra.mxu0 %vm1501_vm4, %v3110_v38  ;;  %7277 = vmatprep.mubr.msk.f32.mxu0 %vm7964_vm1, %v7963_v54  ;;  %v3615_v38 = vld [vmem:[%s8640_s30 + $0x6] sm:$0x3] }
 0x5d6   : > { %v7652_v56 = vpop.eup %7651  ;;  %v3628_v59 = vadd.f32 %v3620_v6, %v3612_v8  ;;  %7285 = vmatprep.subr.mxu0 %v7963_v54  ;;  %v2936_v40 = vsel %vm1399_vm3, %v8872_v23, 0.0  ;;  %v3618_v6 = vld [vmem:[%s8640_s30 + $0xc] sm:$0x3] }
 0x5d7   : > { %2937 = vadd.xlane.f32.xlu1 %v2936_v40  ;;  %v2949_v9 = vmul.f32 %v7652_v56, %v8797_v21  ;;  %v8910_v21 = vpop.permute.xlu1 %3880 }
 0x5d8   : > { %3636 = vst.msk [vmem:[%s8640_s30] sm:$0x3] %vm1399_vm3, %v3628_v59 }
 0x5d9   : > { %7278 = vmatmul.mubr.msk.f32.vlgmr.msra.gmra.mrb[26].mxu0 %vm1497_vm5, %v2949_v9  ;;  %v3622_v10 = vmul.f32 0.25, %v2949_v9 }
 0x5da   : > { %7286 = vmatpush3.msk.msra.mxu0 %vm1501_vm4, %v3264_v43  ;;  %7287 = vmatprep.mubr.msk.f32.mxu0 %vm7964_vm1, %v7963_v54 }
 0x5db   : > { %v3630_v12 = vadd.f32 %v3622_v10, %v3614_v11  ;;  %7295 = vmatprep.subr.mxu0 %v7963_v54 }
 0x5dd   : > { %3638 = vst.msk [vmem:[%s8640_s30 + $0x4] sm:$0x3] %vm1399_vm3, %v3630_v12  ;;  %v3619_v12 = vld [vmem:[%s8640_s30 + $0xe] sm:$0x3] }
 0x5e8   : > { %4036 = vrot.lane.b32.xlu1 %v8492_v50, %s7968_s29 }
 0x5ec   : > { %4034 = vrot.lane.b32.xlu1 %v8615_v41, %s7968_s29 }
 0x5f0   : > { %4192 = vrot.lane.b32.xlu1 %v8501_v52, %s7968_s29 }
 0x5f4   : > { %4190 = vrot.lane.b32.xlu1 %v8623_v63, %s7968_s29  ;;  %s7975_s29 = smov [#allocation12]  }
 0x5f8   : > { %4433 = vrot.lane.b32.xlu1 %v8473_v46, %s7969_s2 }
 0x5fc   : > { %4510 = vrot.lane.b32.xlu1 %v8478_v47, %s7969_s2 }
 0x600   : > { %4587 = vrot.lane.b32.xlu1 %v8483_v48, %s7969_s2 }
 0x604   : > { %4741 = vrot.lane.b32.xlu1 %v8492_v50, %s7969_s2 }
 0x608   : > { %4895 = vrot.lane.b32.xlu1 %v8501_v52, %s7969_s2  ;;  %s7877_s2 = sshll.u32 %s7975_s29, 4  ;;  %s7878_s2 = int_to_ptr.vmem [resolvable:$false] %s7877_s2 }
 0x609   : > { %p7880_p6 = scmp.lt.s32.totalorder %s9463_s0, %s7878_s2 }
 0x60c   : > { %5125 = vrot.lane.b32.xlu1 %v8473_v46, %s7970_s17 }
 0x60f   : > { %v2920_v13 = vpop.xlane.xlu1 %2919 }
 0x610   : > { %7653 = vrcp.f32 %v2920_v13  ;;  %5123 = vrot.lane.b32.xlu1 %v8515_v55, %s7970_s17 }
 0x613   : > { %v2926_v16 = vpop.xlane.xlu1 %2925 }
 0x614   : > { %7655 = vrcp.f32 %v2926_v16 }
 0x617   : > { %v2929_v14 = vpop.xlane.xlu0 %2928 }
 0x618   : > { %7657 = vrcp.f32 %v2929_v14  ;;  %v2932_v19 = vpop.xlane.xlu1 %2931 }
 0x619   : > { %7659 = vrcp.f32 %v2932_v19 }
 0x61a   : > { %v7654_v22 = vpop.eup %7653 }
 0x61b   : > { %v2935_v27 = vpop.xlane.xlu0 %2934  ;;  %v2948_v24 = vmul.f32 %v7654_v22, %v8807_v31 }
 0x61c   : > { %7661 = vrcp.f32 %v2935_v27 }
 0x61d   : > { %7273 = vmatmul.mubr.msk.f32.vlgmr.msra.gmra.mrb[28].mxu1 %vm1497_vm5, %v2948_v24  ;;  %v3621_v25 = vmul.f32 0.25, %v2948_v24 }
 0x61e   : > { %v7656_v26 = vpop.eup %7655  ;;  %7281 = vmatpush3.msk.msra.mxu1 %vm1501_vm4, %v8835_v45  ;;  %7282 = vmatprep.mubr.msk.f32.mxu1 %vm7964_vm1, %v7963_v54 }
 0x61f   : > { %v3629_v55 = vadd.f32 %v3621_v25, %v3613_v30  ;;  %v3801_v29 = vpop.permute.xlu0 %3800  ;;  %7290 = vmatprep.subr.mxu1 %v7963_v54  ;;  %v2950_v31 = vmul.f32 %v7656_v26, %v8813_v33 }
 0x621   : > { %3637 = vst.msk [vmem:[%s8640_s30 + $0x2] sm:$0x3] %vm1399_vm3, %v3629_v55  ;;  %7283 = vmatmul.mubr.msk.f32.vlgmr.msra.gmra.mrb[30].mxu1 %vm1497_vm5, %v2950_v31  ;;  %v3623_v37 = vmul.f32 0.25, %v2950_v31 }
 0x622   : > { %v7658_v32 = vpop.eup %7657  ;;  %7291 = vmatpush3.msk.msra.mxu1 %vm1501_vm4, %v8841_v58  ;;  %7292 = vmatprep.mubr.msk.f32.mxu1 %vm7964_vm1, %v7963_v54 }
 0x623   : > { %v7660_v43 = vpop.eup %7659  ;;  %v3631_v45 = vadd.f32 %v3623_v37, %v3615_v38  ;;  %7300 = vmatprep.subr.mxu1 %v7963_v54  ;;  %v2951_v33 = vmul.f32 %v7658_v32, %v8817_v36  ;;  %v3959_v39 = vpop.permute.xlu0 %3958 }
 0x624   : > { %v2952_v61 = vmul.f32 %v7660_v43, %v8819_v28 }
 0x625   : > { %3639 = vst.msk [vmem:[%s8640_s30 + $0x6] sm:$0x3] %vm1399_vm3, %v3631_v45  ;;  %7288 = vmatmul.mubr.msk.f32.vlgmr.msra.gmra.mrb[28].mxu0 %vm1497_vm5, %v2951_v33  ;;  %v3624_v15 = vmul.f32 0.25, %v2951_v33 }
 0x626   : > { %v7662_v58 = vpop.eup %7661  ;;  %7293 = vmatmul.mubr.msk.f32.vlgmr.msra.gmra.mrb[32].mxu1 %vm1497_vm5, %v2952_v61  ;;  %v3625_v3 = vmul.f32 0.25, %v2952_v61  ;;  %7296 = vmatpush3.msk.msra.mxu0 %vm1501_vm4, %v8839_v57 }
 0x627   : > { %v3632_v36 = vadd.f32 %v3624_v15, %v3616_v2  ;;  %7301 = vmatpush3.msk.msra.mxu1 %vm1501_vm4, %v8849_v62  ;;  %7297 = vmatprep.mubr.msk.f32.mxu0 %vm7964_vm1, %v7963_v54  ;;  %v2953_v28 = vmul.f32 %v7662_v58, %v8825_v42  ;;  %v3957_v62 = vpop.permute.xlu0 %3956 }
 0x628   : > { %v3633_v5 = vadd.f32 %v3625_v3, %v3617_v4  ;;  %7305 = vmatprep.subr.mxu0 %v7963_v54  ;;  %7302 = vmatprep.mubr.msk.f32.mxu1 %vm7964_vm1, %v7963_v54 }
 0x629   : > { %3640 = vst.msk [vmem:[%s8640_s30 + $0x8] sm:$0x3] %vm1399_vm3, %v3632_v36  ;;  %7298 = vmatmul.mubr.msk.f32.vlgmr.msra.gmra.mrb[30].mxu0 %vm1497_vm5, %v2953_v28  ;;  %v3626_v57 = vmul.f32 0.25, %v2953_v28  ;;  %7310 = vmatprep.subr.mxu1 %v7963_v54 }
 0x62a   : > { %3641 = vst.msk [vmem:[%s8640_s30 + $0xa] sm:$0x3] %vm1399_vm3, %v3633_v5  ;;  %7307 = vmatprep.mubr.msk.f32.mxu0 %vm7964_vm1, %v7963_v54 }
 0x62b   : > { %v3634_v42 = vadd.f32 %v3626_v57, %v3618_v6  ;;  %v4115_v8 = vpop.permute.xlu0 %4114 }
 0x62d   : > { %3642 = vst.msk [vmem:[%s8640_s30 + $0xc] sm:$0x3] %vm1399_vm3, %v3634_v42  ;;  %7306 = vmatpush3.xpose.msk.msra.mxu0 %vm806_vm2, %v8847_v60 }
 0x62e   : > { %7315 = vmatprep.subr.mxu0 %v7963_v54 }
 0x62f   : > { %v4113_v60 = vpop.permute.xlu0 %4112 }
 0x630   : > { %7308 = vmatmul.mubr.msk.f32.vlgmr.msra.gmra.mrb[32].mxu0 %vm806_vm2, %v8853_v44 }
 0x631   : > { %7316 = vmatpush3.xpose.msk.msra.mxu0 %vm806_vm2, %v8861_v1  ;;  %7317 = vmatprep.mubr.msk.f32.mxu0 %vm7964_vm1, %v7963_v54  ;;  %v3879_v1 = vpop.permute.xlu1 %3878 }
 0x632   : > { %7325 = vmatprep.subr.mxu0 %v7963_v54 }
 0x633   : > { %v4357_v44 = vpop.permute.xlu0 %4356 }
 0x634   : > { %7318 = vmatmul.mubr.msk.f32.vlgmr.msra.gmra.mrb[34].mxu0 %vm806_vm2, %v3801_v29 }
 0x635   : > { %7326 = vmatpush3.xpose.msk.msra.mxu0 %vm806_vm2, %v3959_v39  ;;  %7327 = vmatprep.mubr.msk.f32.mxu0 %vm7964_vm1, %v7963_v54 }
 0x636   : > { %7335 = vmatprep.subr.mxu0 %v7963_v54 }
 0x638   : > { %7328 = vmatmul.mubr.msk.f32.vlgmr.msra.gmra.mrb[36].mxu0 %vm806_vm2, %v3957_v62 }
 0x639   : > { %7336 = vmatpush3.xpose.msk.msra.mxu0 %vm806_vm2, %v4115_v8  ;;  %7337 = vmatprep.mubr.msk.f32.mxu0 %vm7964_vm1, %v7963_v54 }
 0x63a   : > { %7345 = vmatprep.subr.mxu0 %v7963_v54 }
 0x63c   : > { %7338 = vmatmul.mubr.msk.f32.vlgmr.msra.gmra.mrb[38].mxu0 %vm806_vm2, %v4113_v60 }
 0x63d   : > { %7346 = vmatpush3.msk.msra.mxu0 %vm1501_vm4, %v4357_v44  ;;  %7347 = vmatprep.mubr.msk.f32.mxu0 %vm7964_vm1, %v7963_v54 }
 0x63e   : > { %7355 = vmatprep.subr.mxu0 %v7963_v54 }
 0x664   : > { %v2938_v56 = vpop.xlane.xlu1 %2937 }
 0x665   : > { %7663 = vrcp.f32 %v2938_v56 }
 0x668   : > { %v4037_v59 = vpop.permute.xlu1 %4036 }
 0x66c   : > { %v4035_v10 = vpop.permute.xlu1 %4034 }
 0x66f   : > { %v7664_v40 = vpop.eup %7663 }
 0x670   : > { %v2954_v9 = vmul.f32 %v7664_v40, %v8872_v23  ;;  %v4193_v16 = vpop.permute.xlu1 %4192  ;;  %v9055_v40 = vpop.permute.xlu0 %4664 }
 0x672   : > { %v3627_v11 = vmul.f32 0.25, %v2954_v9  ;;  %7303 = vmatmul.mubr.msk.f32.vlgmr.msra.gmra.mrb[34].mxu1 %vm1497_vm5, %v2954_v9 }
 0x673   : > { %7311 = vmatpush3.xpose.msk.msra.mxu1 %vm806_vm2, %v8855_v0  ;;  %7312 = vmatprep.mubr.msk.f32.mxu1 %vm7964_vm1, %v7963_v54 }
 0x674   : > { %v3635_v13 = vadd.f32 %v3627_v11, %v3619_v12  ;;  %7320 = vmatprep.subr.mxu1 %v7963_v54  ;;  %v4191_v0 = vpop.permute.xlu1 %4190  ;;  %v9057_v9 = vpop.permute.xlu0 %4818 }
 0x676   : > { %3643 = vst.msk [vmem:[%s8640_s30 + $0xe] sm:$0x3] %vm1399_vm3, %v3635_v13  ;;  %7313 = vmatmul.mubr.msk.f32.vlgmr.msra.gmra.mrb[36].mxu1 %vm806_vm2, %v8863_v20 }
 0x677   : > { %7321 = vmatpush3.xpose.msk.msra.mxu1 %vm806_vm2, %v8910_v21  ;;  %7322 = vmatprep.mubr.msk.f32.mxu1 %vm7964_vm1, %v7963_v54 }
 0x678   : > { %7330 = vmatprep.subr.mxu1 %v7963_v54  ;;  %v4434_v20 = vpop.permute.xlu1 %4433  ;;  %v9061_v11 = vpop.permute.xlu0 %5047 }
 0x67a   : > { %7323 = vmatmul.mubr.msk.f32.vlgmr.msra.gmra.mrb[38].mxu1 %vm806_vm2, %v3879_v1 }
 0x67b   : > { %7331 = vmatpush3.xpose.msk.msra.mxu1 %vm806_vm2, %v4037_v59  ;;  %7332 = vmatprep.mubr.msk.f32.mxu1 %vm7964_vm1, %v7963_v54 }
 0x67c   : > { %7340 = vmatprep.subr.mxu1 %v7963_v54  ;;  %v9063_v12 = vpop.permute.xlu0 %5045 }
 0x67e   : > { %7333 = vmatmul.mubr.msk.f32.vlgmr.msra.gmra.mrb[40].mxu1 %vm806_vm2, %v4035_v10 }
 0x67f   : > { %7341 = vmatpush3.xpose.msk.msra.mxu1 %vm806_vm2, %v4193_v16  ;;  %7342 = vmatprep.mubr.msk.f32.mxu1 %vm7964_vm1, %v7963_v54 }
 0x680   : > { %7350 = vmatprep.subr.mxu1 %v7963_v54 }
 0x682   : > { %7343 = vmatmul.mubr.msk.f32.vlgmr.msra.gmra.mrb[42].mxu1 %vm806_vm2, %v4191_v0 }
 0x683   : > { %7351 = vmatpush3.msk.msra.mxu1 %vm1501_vm4, %v4434_v20  ;;  %7352 = vmatprep.mubr.msk.f32.mxu1 %vm7964_vm1, %v7963_v54 }
 0x684   : > { %7360 = vmatprep.subr.mxu1 %v7963_v54 }
 0x6a7   : > { %v9020_v23 = vpop.f32.mrb[24].mxu0 }
 0x6a8   : > { %v7269_v21 = vpop.f32.mrb[25].mxu0 }
 0x6ac   : > { %v9022_v14 = vpop.f32.mrb[26].mxu0 }
 0x6ad   : > { %v7279_v19 = vpop.f32.mrb[27].mxu0 }
 0x6f0   : > { %v9024_v22 = vpop.f32.mrb[28].mxu1 }
 0x6f1   : > { %v7274_v27 = vpop.f32.mrb[29].mxu1 }
 0x6f4   : > { %v9026_v24 = vpop.f32.mrb[30].mxu1 }
 0x6f5   : > { %v7284_v25 = vpop.f32.mrb[31].mxu1 }
 0x6f8   : > { %v9028_v26 = vpop.f32.mrb[28].mxu0 }
 0x6f9   : > { %v9030_v30 = vpop.f32.mrb[32].mxu1  ;;  %v7289_v55 = vpop.f32.mrb[29].mxu0 }
 0x6fa   : > { %v7294_v29 = vpop.f32.mrb[33].mxu1 }
 0x6fc   : > { %v9032_v31 = vpop.f32.mrb[30].mxu0 }
 0x6fd   : > { %v7299_v37 = vpop.f32.mrb[31].mxu0 }
 0x6fe   : > { %v4511_v37 = vpop.permute.xlu1 %4510 }
 0x703   : > { %v3718_v32 = vpop.f32.mrb[32].mxu0 }
 0x704   : > { %v7309_v38 = vpop.f32.mrb[33].mxu0  ;;  %v4268_v43 = vsel %vm1399_vm3, %v3718_v32, -inf }
 0x705   : > { %4269 = vmax.xlane.f32.xlu0 %v4268_v43  ;;  %v9070_v38 = vpop.permute.xlu1 %4587 }
 0x707   : > { %v3874_v45 = vpop.f32.mrb[34].mxu0 }
 0x708   : > { %v7319_v33 = vpop.f32.mrb[35].mxu0  ;;  %v4274_v39 = vsel %vm1399_vm3, %v3874_v45, -inf }
 0x709   : > { %4275 = vmax.xlane.f32.xlu0 %v4274_v39 }
 0x70b   : > { %v4030_v61 = vpop.f32.mrb[36].mxu0 }
 0x70c   : > { %v7329_v15 = vpop.f32.mrb[37].mxu0  ;;  %v4280_v60 = vsel %vm1399_vm3, %v4030_v61, -inf }
 0x70f   : > { %v9036_v58 = vpop.f32.mrb[38].mxu0 }
 0x710   : > { %v7339_v2 = vpop.f32.mrb[39].mxu0  ;;  %v4286_v59 = vsel %vm1399_vm3, %v9036_v58, -inf }
 0x745   : > { %v9038_v3 = vpop.f32.mrb[34].mxu1 }
 0x746   : > { %v7304_v36 = vpop.f32.mrb[35].mxu1 }
 0x749   : > { %v3796_v4 = vpop.f32.mrb[36].mxu1 }
 0x74a   : > { %v7314_v28 = vpop.f32.mrb[37].mxu1  ;;  %v4271_v5 = vsel %vm1399_vm3, %v3796_v4, -inf }
 0x74b   : > { %4272 = vmax.xlane.f32.xlu1 %v4271_v5 }
 0x74d   : > { %v3952_v57 = vpop.f32.mrb[38].mxu1 }
 0x74e   : > { %v7324_v62 = vpop.f32.mrb[39].mxu1  ;;  %v4277_v6 = vsel %vm1399_vm3, %v3952_v57, -inf }
 0x74f   : > { %4278 = vmax.xlane.f32.xlu0 %v4277_v6 }
 0x751   : > { %v9042_v42 = vpop.f32.mrb[40].mxu1 }
 0x752   : > { %v7334_v8 = vpop.f32.mrb[41].mxu1  ;;  %v4283_v44 = vsel %vm1399_vm3, %v9042_v42, -inf }
 0x753   : > { %4281 = vmax.xlane.f32.xlu0 %v4280_v60  ;;  %4284 = vmax.xlane.f32.xlu1 %v4283_v44 }
 0x755   : > { %v9047_v1 = vpop.f32.mrb[42].mxu1 }
 0x756   : > { %v7344_v56 = vpop.f32.mrb[43].mxu1  ;;  %v4289_v10 = vsel %vm1399_vm3, %v9047_v1, -inf }
 0x757   : > { %4287 = vmax.xlane.f32.xlu0 %v4286_v59 }
 0x764   : > { %5281 = vrot.lane.b32.xlu1 %v8483_v48, %s7970_s17 }
 0x76d   : > { %5203 = vrot.lane.b32.xlu0 %v8478_v47, %s7970_s17 }
 0x788   : > { %4290 = vmax.xlane.f32.xlu1 %v4289_v10 }
 0x792   : > { %v4270_v13 = vpop.xlane.xlu0 %4269 }
 0x793   : > { %v4292_v16 = vsub.f32 %v3718_v32, %v4270_v13  ;;  %v9072_v32 = vpop.permute.xlu1 %4741 }
 0x795   : > { %v4300_v0 = vmul.f32 1.442695, %v4292_v16 }
 0x796   : > { %v4276_v20 = vpop.xlane.xlu0 %4275 }
 0x797   : > { %7665 = vpow2.f32 %v4300_v0  ;;  %v4294_v21 = vsub.f32 %v3874_v45, %v4276_v20  ;;  %v9074_v43 = vpop.permute.xlu1 %4895 }
 0x799   : > { %v4304_v19 = vmul.f32 1.442695, %v4294_v21 }
 0x79b   : > { %7667 = vpow2.f32 %v4304_v19  ;;  %v9076_v45 = vpop.permute.xlu1 %5125 }
 0x79f   : > { %v9078_v33 = vpop.permute.xlu1 %5123 }
 0x7a1   : > { %v7666_v27 = vpop.eup %7665 }
 0x7a2   : > { %v4316_v25 = vsel %vm1399_vm3, %v7666_v27, 0.0 }
 0x7a3   : > { %4317 = vadd.xlane.f32.xlu0 %v4316_v25 }
 0x7a5   : > { %v9066_v55 = vpop.eup %7667 }
 0x7a6   : > { %v4322_v29 = vsel %vm1399_vm3, %v9066_v55, 0.0 }
 0x7a7   : > { %4323 = vadd.xlane.f32.xlu0 %v4322_v29 }
 0x7d8   : > { %v4273_v39 = vpop.xlane.xlu1 %4272 }
 0x7d9   : > { %v4293_v15 = vsub.f32 %v3796_v4, %v4273_v39 }
 0x7db   : > { %v4302_v2 = vmul.f32 1.442695, %v4293_v15 }
 0x7dc   : > { %v4279_v36 = vpop.xlane.xlu0 %4278 }
 0x7dd   : > { %7669 = vpow2.f32 %v4302_v2  ;;  %v4295_v28 = vsub.f32 %v3952_v57, %v4279_v36 }
 0x7df   : > { %v4306_v5 = vmul.f32 1.442695, %v4295_v28 }
 0x7e0   : > { %v4282_v62 = vpop.xlane.xlu0 %4281 }
 0x7e1   : > { %7671 = vpow2.f32 %v4306_v5  ;;  %v4296_v6 = vsub.f32 %v4030_v61, %v4282_v62  ;;  %v4285_v61 = vpop.xlane.xlu1 %4284  ;;  %v5013_v5 = vld [vmem:[%s8640_s30] sm:$0x3] }
 0x7e2   : > { %v4297_v10 = vsub.f32 %v9042_v42, %v4285_v61 }
 0x7e3   : > { %v4308_v8 = vmul.f32 1.442695, %v4296_v6 }
 0x7e4   : > { %v4288_v13 = vpop.xlane.xlu0 %4287  ;;  %v4310_v16 = vmul.f32 1.442695, %v4297_v10 }
 0x7e5   : > { %7673 = vpow2.f32 %v4308_v8  ;;  %v4298_v0 = vsub.f32 %v9036_v58, %v4288_v13  ;;  %v9110_v29 = vpop.permute.xlu1 %5281  ;;  %v5014_v13 = vld [vmem:[%s8640_s30 + $0x2] sm:$0x3] }
 0x7e6   : > { %7675 = vpow2.f32 %v4310_v16 }
 0x7e7   : > { %v9080_v60 = vpop.eup %7669  ;;  %v4312_v20 = vmul.f32 1.442695, %v4298_v0 }
 0x7e8   : > { %v4319_v44 = vsel %vm1399_vm3, %v9080_v60, 0.0 }
 0x7e9   : > { %4320 = vadd.xlane.f32.xlu1 %v4319_v44  ;;  %7677 = vpow2.f32 %v4312_v20  ;;  %v5016_v20 = vld [vmem:[%s8640_s30 + $0x6] sm:$0x3] }
 0x7eb   : > { %v9084_v56 = vpop.eup %7671 }
 0x7ec   : > { %v4325_v4 = vsel %vm1399_vm3, %v9084_v56, 0.0 }
 0x7ed   : > { %4326 = vadd.xlane.f32.xlu1 %v4325_v4 }
 0x7ef   : > { %v9088_v59 = vpop.eup %7673 }
 0x7f0   : > { %v4328_v57 = vsel %vm1399_vm3, %v9088_v59, 0.0  ;;  %v9098_v21 = vpop.eup %7675 }
 0x7f1   : > { %4329 = vadd.xlane.f32.xlu0 %v4328_v57  ;;  %v4331_v19 = vsel %vm1399_vm3, %v9098_v21, 0.0 }
 0x7f3   : > { %v9102_v25 = vpop.eup %7677 }
 0x7fe   : > { %5279 = vrot.lane.b32.xlu1 %v8565_v34, %s7970_s17  ;;  %v4334_v34 = vsel %vm1399_vm3, %v9102_v25, 0.0 }
 0x807   : > { %5201 = vrot.lane.b32.xlu0 %v8571_v35, %s7970_s17  ;;  %v9106_v35 = vpop.permute.xlu0 %5203 }
 0x815   : > { %v4291_v2 = vpop.xlane.xlu1 %4290 }
 0x822   : > { %4332 = vadd.xlane.f32.xlu1 %v4331_v19 }
 0x826   : > { %4335 = vadd.xlane.f32.xlu0 %v4334_v34  ;;  %v5017_v34 = vld [vmem:[%s8640_s30 + $0x8] sm:$0x3] }
 0x830   : > { %v4318_v42 = vpop.xlane.xlu0 %4317 }
 0x831   : > { %7679 = vrcp.f32 %v4318_v42 }
 0x833   : > { %5437 = vrot.lane.b32.xlu1 %v8492_v50, %s7970_s17 }
 0x834   : > { %v4324_v58 = vpop.xlane.xlu0 %4323 }
 0x835   : > { %7681 = vrcp.f32 %v4324_v58 }
 0x83b   : > { %v7680_v39 = vpop.eup %7679 }
 0x83c   : > { %v4348_v15 = vmul.f32 %v7680_v39, %v7666_v27  ;;  %5359 = vrot.lane.b32.xlu0 %v8496_v51, %s7970_s17  ;;  %v4299_v27 = vsub.f32 %v9047_v1, %v4291_v2 }
 0x83e   : > { %v5021_v36 = vmul.f32 0.25, %v4348_v15  ;;  %7348 = vmatmul.mubr.msk.f32.vlgmr.msra.gmra.mrb[40].mxu0 %vm1497_vm5, %v4348_v15 }
 0x83f   : > { %v7682_v28 = vpop.eup %7681  ;;  %7356 = vmatpush3.msk.msra.mxu0 %vm1501_vm4, %v4511_v37  ;;  %7357 = vmatprep.mubr.msk.f32.mxu0 %vm7964_vm1, %v7963_v54  ;;  %v5015_v37 = vld [vmem:[%s8640_s30 + $0x4] sm:$0x3] }
 0x840   : > { %v5029_v62 = vadd.f32 %v5021_v36, %v5013_v5  ;;  %v4350_v6 = vmul.f32 %v7682_v28, %v9066_v55  ;;  %5357 = vrot.lane.b32.xlu0 %v8581_v18, %s7970_s17  ;;  %7365 = vmatprep.subr.mxu0 %v7963_v54  ;;  %v4314_v18 = vmul.f32 1.442695, %v4299_v27  ;;  %v5018_v28 = vld [vmem:[%s8640_s30 + $0xa] sm:$0x3]  ;;  %v5019_v27 = vld [vmem:[%s8640_s30 + $0xc] sm:$0x3] }
 0x842   : > { %5037 = vst.msk [vmem:[%s8640_s30] sm:$0x3] %vm1399_vm3, %v5029_v62  ;;  %v5023_v8 = vmul.f32 0.25, %v4350_v6  ;;  %7358 = vmatmul.mubr.msk.f32.vlgmr.msra.gmra.mrb[42].mxu0 %vm1497_vm5, %v4350_v6  ;;  %7683 = vpow2.f32 %v4314_v18 }
 0x843   : > { %7366 = vmatpush3.msk.msra.mxu0 %vm1501_vm4, %v9055_v40  ;;  %7367 = vmatprep.mubr.msk.f32.mxu0 %vm7964_vm1, %v7963_v54 }
 0x844   : > { %v5031_v55 = vadd.f32 %v5023_v8, %v5015_v37  ;;  %5515 = vrot.lane.b32.xlu0 %v8505_v53, %s7970_s17  ;;  %7375 = vmatprep.subr.mxu0 %v7963_v54 }
 0x846   : > { %5039 = vst.msk [vmem:[%s8640_s30 + $0x4] sm:$0x3] %vm1399_vm3, %v5031_v55 }
 0x848   : > { %5513 = vrot.lane.b32.xlu0 %v8591_v7, %s7970_s17 }
 0x84c   : > { %v9139_v1 = vpop.eup %7683 }
 0x84d   : > { %v4337_v40 = vsel %vm1399_vm3, %v9139_v1, 0.0 }
 0x857   : > { %4338 = vadd.xlane.f32.xlu1 %v4337_v40  ;;  %v5020_v40 = vld [vmem:[%s8640_s30 + $0xe] sm:$0x3] }
 0x868   : > { %5435 = vrot.lane.b32.xlu1 %v8615_v41, %s7970_s17 }
 0x86c   : > { %5593 = vrot.lane.b32.xlu1 %v8501_v52, %s7970_s17 }
 0x870   : > { %5591 = vrot.lane.b32.xlu1 %v8623_v63, %s7970_s17  ;;  %s7879_s17 = scalar_lea.vmem %s7878_s2, 512 }
 0x871   : > { %p7881_p10 = scmp.lt.s32.totalorder %s7879_s17, %s7873_s19 }
 0x873   : > { %p7882_p3 = por %p7881_p10, %p7880_p6 }
 0x875   : > { %p7883_p9 = pnand %p7882_p3, %p7876_p8 }
 0x876   : > { %v4321_v44 = vpop.xlane.xlu1 %4320 }
 0x877   : > { %7685 = vrcp.f32 %v4321_v44 }
 0x87a   : > { %v4327_v7 = vpop.xlane.xlu1 %4326 }
 0x87b   : > { %7687 = vrcp.f32 %v4327_v7 }
 0x87e   : > { %v4330_v4 = vpop.xlane.xlu0 %4329 }
 0x87f   : > { %7689 = vrcp.f32 %v4330_v4 }
 0x881   : > { %v7686_v57 = vpop.eup %7685 }
 0x882   : > { %v4349_v61 = vmul.f32 %v7686_v57, %v9080_v60  ;;  %v5202_v42 = vpop.permute.xlu0 %5201 }
 0x884   : > { %v5022_v10 = vmul.f32 0.25, %v4349_v61  ;;  %7353 = vmatmul.mubr.msk.f32.vlgmr.msra.gmra.mrb[44].mxu1 %vm1497_vm5, %v4349_v61 }
 0x885   : > { %v7688_v41 = vpop.eup %7687  ;;  %7361 = vmatpush3.msk.msra.mxu1 %vm1501_vm4, %v9070_v38  ;;  %7362 = vmatprep.mubr.msk.f32.mxu1 %vm7964_vm1, %v7963_v54 }
 0x886   : > { %v5030_v63 = vadd.f32 %v5022_v10, %v5014_v13  ;;  %v4351_v16 = vmul.f32 %v7688_v41, %v9084_v56  ;;  %7370 = vmatprep.subr.mxu1 %v7963_v54 }
 0x888   : > { %5038 = vst.msk [vmem:[%s8640_s30 + $0x2] sm:$0x3] %vm1399_vm3, %v5030_v63  ;;  %v5024_v60 = vmul.f32 0.25, %v4351_v16  ;;  %7363 = vmatmul.mubr.msk.f32.vlgmr.msra.gmra.mrb[46].mxu1 %vm1497_vm5, %v4351_v16 }
 0x889   : > { %v7690_v0 = vpop.eup %7689  ;;  %7371 = vmatpush3.msk.msra.mxu1 %vm1501_vm4, %v9072_v32  ;;  %7372 = vmatprep.mubr.msk.f32.mxu1 %vm7964_vm1, %v7963_v54 }
 0x88a   : > { %v5032_v38 = vadd.f32 %v5024_v60, %v5016_v20  ;;  %v4352_v19 = vmul.f32 %v7690_v0, %v9088_v59  ;;  %7380 = vmatprep.subr.mxu1 %v7963_v54  ;;  %v5280_v59 = vpop.permute.xlu1 %5279 }
 0x88c   : > { %5040 = vst.msk [vmem:[%s8640_s30 + $0x6] sm:$0x3] %vm1399_vm3, %v5032_v38  ;;  %v5025_v56 = vmul.f32 0.25, %v4352_v19  ;;  %7368 = vmatmul.mubr.msk.f32.vlgmr.msra.gmra.mrb[44].mxu0 %vm1497_vm5, %v4352_v19 }
 0x88d   : > { %7376 = vmatpush3.msk.msra.mxu0 %vm1501_vm4, %v9057_v9  ;;  %7377 = vmatprep.mubr.msk.f32.mxu0 %vm7964_vm1, %v7963_v54 }
 0x88e   : > { %v5033_v32 = vadd.f32 %v5025_v56, %v5017_v34  ;;  %7385 = vmatprep.subr.mxu0 %v7963_v54 }
 0x890   : > { %5041 = vst.msk [vmem:[%s8640_s30 + $0x8] sm:$0x3] %vm1399_vm3, %v5033_v32 }
 0x8af   : > { %v4333_v58 = vpop.xlane.xlu1 %4332 }
 0x8b0   : > { %7691 = vrcp.f32 %v4333_v58 }
 0x8b3   : > { %v4336_v39 = vpop.xlane.xlu0 %4335 }
 0x8b4   : > { %7693 = vrcp.f32 %v4336_v39 }
 0x8b7   : > { %v5360_v5 = vpop.permute.xlu0 %5359 }
 0x8ba   : > { %v7692_v15 = vpop.eup %7691 }
 0x8bb   : > { %v4353_v9 = vmul.f32 %v7692_v15, %v9098_v21  ;;  %v5358_v8 = vpop.permute.xlu0 %5357 }
 0x8bd   : > { %v5026_v2 = vmul.f32 0.25, %v4353_v9  ;;  %7373 = vmatmul.mubr.msk.f32.vlgmr.msra.gmra.mrb[48].mxu1 %vm1497_vm5, %v4353_v9 }
 0x8be   : > { %v7694_v36 = vpop.eup %7693  ;;  %7381 = vmatpush3.msk.msra.mxu1 %vm1501_vm4, %v9074_v43  ;;  %7382 = vmatprep.mubr.msk.f32.mxu1 %vm7964_vm1, %v7963_v54 }
 0x8bf   : > { %v5034_v62 = vadd.f32 %v5026_v2, %v5018_v28  ;;  %v4354_v6 = vmul.f32 %v7694_v36, %v9102_v25  ;;  %7390 = vmatprep.subr.mxu1 %v7963_v54  ;;  %v5438_v25 = vpop.permute.xlu1 %5437 }
 0x8c1   : > { %5042 = vst.msk [vmem:[%s8640_s30 + $0xa] sm:$0x3] %vm1399_vm3, %v5034_v62  ;;  %v5027_v21 = vmul.f32 0.25, %v4354_v6  ;;  %7378 = vmatmul.mubr.msk.f32.vlgmr.msra.gmra.mrb[46].mxu0 %vm1497_vm5, %v4354_v6 }
 0x8c2   : > { %7386 = vmatpush3.xpose.msk.msra.mxu0 %vm806_vm2, %v9061_v11  ;;  %7387 = vmatprep.mubr.msk.f32.mxu0 %vm7964_vm1, %v7963_v54  ;;  %v5516_v11 = vpop.permute.xlu0 %5515 }
 0x8c3   : > { %v5035_v43 = vadd.f32 %v5027_v21, %v5019_v27  ;;  %7395 = vmatprep.subr.mxu0 %v7963_v54 }
 0x8c5   : > { %5043 = vst.msk [vmem:[%s8640_s30 + $0xc] sm:$0x3] %vm1399_vm3, %v5035_v43  ;;  %7388 = vmatmul.mubr.msk.f32.vlgmr.msra.gmra.mrb[48].mxu0 %vm806_vm2, %v9063_v12 }
 0x8c6   : > { %7396 = vmatpush3.xpose.msk.msra.mxu0 %vm806_vm2, %v9106_v35  ;;  %7397 = vmatprep.mubr.msk.f32.mxu0 %vm7964_vm1, %v7963_v54  ;;  %v5514_v12 = vpop.permute.xlu0 %5513 }
 0x8c7   : > { %7405 = vmatprep.subr.mxu0 %v7963_v54 }
 0x8c9   : > { %7398 = vmatmul.mubr.msk.f32.vlgmr.msra.gmra.mrb[50].mxu0 %vm806_vm2, %v5202_v42 }
 0x8ca   : > { %7406 = vmatpush3.xpose.msk.msra.mxu0 %vm806_vm2, %v5360_v5  ;;  %7407 = vmatprep.mubr.msk.f32.mxu0 %vm7964_vm1, %v7963_v54 }
 0x8cb   : > { %7415 = vmatprep.subr.mxu0 %v7963_v54 }
 0x8cd   : > { %7408 = vmatmul.mubr.msk.f32.vlgmr.msra.gmra.mrb[52].mxu0 %vm806_vm2, %v5358_v8 }
 0x8ce   : > { %7416 = vmatpush3.xpose.msk.msra.mxu0 %vm806_vm2, %v5516_v11  ;;  %7417 = vmatprep.mubr.msk.f32.mxu0 %vm7964_vm1, %v7963_v54 }
 0x8cf   : > { %7425 = vmatprep.subr.mxu0 %v7963_v54 }
 0x8d1   : > { %7418 = vmatmul.mubr.msk.f32.vlgmr.msra.gmra.mrb[54].mxu0 %vm806_vm2, %v5514_v12 }
 0x8d2   : > { %7427 = vmatprep.mubr.msk.f32.mxu0 %vm7964_vm1, %v7963_v54 }
 0x8e4   : > { %v4339_v35 = vpop.xlane.xlu1 %4338 }
 0x8e5   : > { %7695 = vrcp.f32 %v4339_v35 }
 0x8e8   : > { %v5436_v7 = vpop.permute.xlu1 %5435 }
 0x8ef   : > { %v7696_v37 = vpop.eup %7695 }
 0x8f0   : > { %v4355_v55 = vmul.f32 %v7696_v37, %v9139_v1 }
 0x8f2   : > { %v5028_v18 = vmul.f32 0.25, %v4355_v55  ;;  %7383 = vmatmul.mubr.msk.f32.vlgmr.msra.gmra.mrb[50].mxu1 %vm1497_vm5, %v4355_v55 }
 0x8f3   : > { %7391 = vmatpush3.xpose.msk.msra.mxu1 %vm806_vm2, %v9076_v45  ;;  %7392 = vmatprep.mubr.msk.f32.mxu1 %vm7964_vm1, %v7963_v54  ;;  %v5594_v45 = vpop.permute.xlu1 %5593 }
 0x8f4   : > { %v5036_v44 = vadd.f32 %v5028_v18, %v5020_v40  ;;  %7400 = vmatprep.subr.mxu1 %v7963_v54 }
 0x8f6   : > { %5044 = vst.msk [vmem:[%s8640_s30 + $0xe] sm:$0x3] %vm1399_vm3, %v5036_v44  ;;  %7393 = vmatmul.mubr.msk.f32.vlgmr.msra.gmra.mrb[52].mxu1 %vm806_vm2, %v9078_v33 }
 0x8f7   : > { %7401 = vmatpush3.xpose.msk.msra.mxu1 %vm806_vm2, %v9110_v29  ;;  %7402 = vmatprep.mubr.msk.f32.mxu1 %vm7964_vm1, %v7963_v54  ;;  %v5592_v33 = vpop.permute.xlu1 %5591 }
 0x8f8   : > { %7410 = vmatprep.subr.mxu1 %v7963_v54 }
 0x8fa   : > { %7403 = vmatmul.mubr.msk.f32.vlgmr.msra.gmra.mrb[54].mxu1 %vm806_vm2, %v5280_v59 }
 0x8fb   : > { %7411 = vmatpush3.xpose.msk.msra.mxu1 %vm806_vm2, %v5438_v25  ;;  %7412 = vmatprep.mubr.msk.f32.mxu1 %vm7964_vm1, %v7963_v54 }
 0x8fc   : > { %7420 = vmatprep.subr.mxu1 %v7963_v54 }
 0x8fe   : > { %7413 = vmatmul.mubr.msk.f32.vlgmr.msra.gmra.mrb[56].mxu1 %vm806_vm2, %v5436_v7 }
 0x8ff   : > { %7421 = vmatpush3.xpose.msk.msra.mxu1 %vm806_vm2, %v5594_v45  ;;  %7422 = vmatprep.mubr.msk.f32.mxu1 %vm7964_vm1, %v7963_v54 }
 0x900   : > { %7430 = vmatprep.subr.mxu1 %v7963_v54 }
 0x902   : > { %7423 = vmatmul.mubr.msk.f32.vlgmr.msra.gmra.mrb[58].mxu1 %vm806_vm2, %v5592_v33 }
 0x903   : > { %7432 = vmatprep.mubr.msk.f32.mxu1 %vm7964_vm1, %v7963_v54 }
 0x911   : > { %v9249_v29 = vpop.f32.mrb[40].mxu0 }
 0x912   : > { %v7349_v1 = vpop.f32.mrb[41].mxu0 }
 0x915   : > { %v9251_v4 = vpop.f32.mrb[42].mxu0 }
 0x916   : > { %v7359_v57 = vpop.f32.mrb[43].mxu0 }
 0x957   : > { %v9253_v61 = vpop.f32.mrb[44].mxu1 }
 0x958   : > { %v7354_v10 = vpop.f32.mrb[45].mxu1 }
 0x95b   : > { %v9255_v41 = vpop.f32.mrb[46].mxu1 }
 0x95c   : > { %v7364_v13 = vpop.f32.mrb[47].mxu1 }
 0x95f   : > { %v9257_v63 = vpop.f32.mrb[44].mxu0 }
 0x960   : > { %v7369_v16 = vpop.f32.mrb[45].mxu0 }
 0x990   : > { %v9259_v60 = vpop.f32.mrb[48].mxu1 }
 0x991   : > { %v7374_v0 = vpop.f32.mrb[49].mxu1 }
 0x994   : > { %v9261_v20 = vpop.f32.mrb[46].mxu0 }
 0x995   : > { %v7379_v38 = vpop.f32.mrb[47].mxu0 }
 0x998   : > { %v5119_v19 = vpop.f32.mrb[48].mxu0 }
 0x999   : > { %v7389_v56 = vpop.f32.mrb[49].mxu0  ;;  %v5669_v34 = vsel %vm1399_vm3, %v5119_v19, -inf }
 0x99a   : > { %5670 = vmax.xlane.f32.xlu0 %v5669_v34 }
 0x99c   : > { %v5275_v32 = vpop.f32.mrb[50].mxu0 }
 0x99d   : > { %v7399_v59 = vpop.f32.mrb[51].mxu0  ;;  %v5675_v42 = vsel %vm1399_vm3, %v5275_v32, -inf }
 0x99e   : > { %5676 = vmax.xlane.f32.xlu0 %v5675_v42 }
 0x9a0   : > { %v5431_v58 = vpop.f32.mrb[52].mxu0 }
 0x9a1   : > { %v7409_v39 = vpop.f32.mrb[53].mxu0  ;;  %v5681_v11 = vsel %vm1399_vm3, %v5431_v58, -inf }
 0x9a4   : > { %v9265_v15 = vpop.f32.mrb[54].mxu0 }
 0x9a5   : > { %v7419_v9 = vpop.f32.mrb[55].mxu0  ;;  %v5687_v37 = vsel %vm1399_vm3, %v9265_v15, -inf }
 0x9c5   : > { %v9267_v2 = vpop.f32.mrb[50].mxu1 }
 0x9c6   : > { %v7384_v36 = vpop.f32.mrb[51].mxu1 }
 0x9c9   : > { %v5197_v28 = vpop.f32.mrb[52].mxu1 }
 0x9ca   : > { %v7394_v5 = vpop.f32.mrb[53].mxu1  ;;  %v5672_v62 = vsel %vm1399_vm3, %v5197_v28, -inf }
 0x9cb   : > { %5673 = vmax.xlane.f32.xlu1 %v5672_v62 }
 0x9cd   : > { %v5353_v6 = vpop.f32.mrb[54].mxu1 }
 0x9ce   : > { %v7404_v21 = vpop.f32.mrb[55].mxu1  ;;  %v5678_v27 = vsel %vm1399_vm3, %v5353_v6, -inf }
 0x9cf   : > { %5679 = vmax.xlane.f32.xlu0 %v5678_v27 }
 0x9d1   : > { %v5509_v43 = vpop.f32.mrb[56].mxu1 }
 0x9d2   : > { %v7414_v8 = vpop.f32.mrb[57].mxu1  ;;  %v5684_v12 = vsel %vm1399_vm3, %v5509_v43, -inf }
 0x9d3   : > { %5682 = vmax.xlane.f32.xlu0 %v5681_v11  ;;  %5685 = vmax.xlane.f32.xlu1 %v5684_v12 }
 0x9d5   : > { %v5665_v25 = vpop.f32.mrb[58].mxu1 }
 0x9d6   : > { %v7424_v35 = vpop.f32.mrb[59].mxu1  ;;  %v5690_v55 = vsel %vm1399_vm3, %v5665_v25, -inf }
 0x9d7   : > { %5688 = vmax.xlane.f32.xlu0 %v5687_v37  ;;  %5691 = vmax.xlane.f32.xlu1 %v5690_v55 }
 0x9e8   : > { %5834 = vrot.lane.b32.xlu1 %v8473_v46, %s7971_s8 }
 0x9ec   : > { %5911 = vrot.lane.b32.xlu1 %v8478_v47, %s7971_s8 }
 0x9ed   : > { %5757 = vrot.lane.b32.xlu0 %v8487_v49, %s7971_s8 }
 0x9f0   : > { %5988 = vrot.lane.b32.xlu1 %v8483_v48, %s7971_s8 }
 0x9f1   : > { %6065 = vrot.lane.b32.xlu0 %v8496_v51, %s7971_s8 }
 0x9f4   : > { %6142 = vrot.lane.b32.xlu1 %v8492_v50, %s7971_s8 }
 0xa27   : > { %v5671_v18 = vpop.xlane.xlu0 %5670 }
 0xa28   : > { %v5693_v40 = vsub.f32 %v5119_v19, %v5671_v18 }
 0xa2a   : > { %v5701_v44 = vmul.f32 1.442695, %v5693_v40 }
 0xa2b   : > { %v5677_v7 = vpop.xlane.xlu0 %5676 }
 0xa2c   : > { %7697 = vpow2.f32 %v5701_v44  ;;  %v5695_v46 = vsub.f32 %v5275_v32, %v5677_v7 }
 0xa2e   : > { %v5705_v45 = vmul.f32 1.442695, %v5695_v46 }
 0xa30   : > { %7699 = vpow2.f32 %v5705_v45 }
 0xa36   : > { %v9288_v47 = vpop.eup %7697 }
 0xa37   : > { %v5717_v49 = vsel %vm1399_vm3, %v9288_v47, 0.0 }
 0xa38   : > { %5718 = vadd.xlane.f32.xlu0 %v5717_v49 }
 0xa3a   : > { %v9292_v48 = vpop.eup %7699 }
 0xa3b   : > { %v5723_v51 = vsel %vm1399_vm3, %v9292_v48, 0.0 }
 0xa3c   : > { %5724 = vadd.xlane.f32.xlu0 %v5723_v51 }
 0xa58   : > { %v5674_v50 = vpop.xlane.xlu1 %5673 }
 0xa59   : > { %v5694_v33 = vsub.f32 %v5197_v28, %v5674_v50 }
 0xa5b   : > { %v5703_v1 = vmul.f32 1.442695, %v5694_v33 }
 0xa5c   : > { %v5680_v57 = vpop.xlane.xlu0 %5679 }
 0xa5d   : > { %7701 = vpow2.f32 %v5703_v1  ;;  %v5696_v10 = vsub.f32 %v5353_v6, %v5680_v57  ;;  %v6417_v57 = vld [vmem:[%s8640_s30 + $0x6] sm:$0x3] }
 0xa5f   : > { %v5707_v13 = vmul.f32 1.442695, %v5696_v10 }
 0xa60   : > { %v5683_v16 = vpop.xlane.xlu0 %5682  ;;  %v5686_v0 = vpop.xlane.xlu1 %5685 }
 0xa61   : > { %7703 = vpow2.f32 %v5707_v13  ;;  %v5697_v38 = vsub.f32 %v5431_v58, %v5683_v16  ;;  %v5698_v19 = vsub.f32 %v5509_v43, %v5686_v0 }
 0xa63   : > { %v5709_v56 = vmul.f32 1.442695, %v5697_v38  ;;  %v5711_v34 = vmul.f32 1.442695, %v5698_v19 }
 0xa64   : > { %v5689_v32 = vpop.xlane.xlu0 %5688  ;;  %v5692_v59 = vpop.xlane.xlu1 %5691 }
 0xa65   : > { %7705 = vpow2.f32 %v5709_v56  ;;  %v5699_v42 = vsub.f32 %v9265_v15, %v5689_v32  ;;  %v5700_v39 = vsub.f32 %v5665_v25, %v5692_v59  ;;  %v6418_v32 = vld [vmem:[%s8640_s30 + $0x8] sm:$0x3] }
 0xa66   : > { %7707 = vpow2.f32 %v5711_v34 }
 0xa67   : > { %v9297_v9 = vpop.eup %7701  ;;  %v5713_v36 = vmul.f32 1.442695, %v5699_v42  ;;  %v5715_v28 = vmul.f32 1.442695, %v5700_v39 }
 0xa68   : > { %v5758_v5 = vpop.permute.xlu0 %5757  ;;  %v5835_v62 = vpop.permute.xlu1 %5834  ;;  %v5720_v6 = vsel %vm1399_vm3, %v9297_v9, 0.0 }
 0xa69   : > { %7709 = vpow2.f32 %v5713_v36  ;;  %7426 = vmatpush3.msk.msra.mxu0 %vm1501_vm4, %v5758_v5  ;;  %5721 = vadd.xlane.f32.xlu1 %v5720_v6 }
 0xa6a   : > { %7711 = vpow2.f32 %v5715_v28  ;;  %7431 = vmatpush3.msk.msra.mxu1 %vm1501_vm4, %v5835_v62  ;;  %7435 = vmatprep.subr.mxu0 %v7963_v54 }
 0xa6b   : > { %v9304_v58 = vpop.eup %7703  ;;  %7440 = vmatprep.subr.mxu1 %v7963_v54 }
 0xa6c   : > { %v5726_v15 = vsel %vm1399_vm3, %v9304_v58, 0.0 }
 0xa6d   : > { %5727 = vadd.xlane.f32.xlu1 %v5726_v15  ;;  %v6420_v15 = vld [vmem:[%s8640_s30 + $0xc] sm:$0x3] }
 0xa6f   : > { %v9309_v21 = vpop.eup %7705 }
 0xa70   : > { %v9311_v27 = vpop.eup %7707  ;;  %v5729_v43 = vsel %vm1399_vm3, %v9309_v21, 0.0 }
 0xa71   : > { %5730 = vadd.xlane.f32.xlu0 %v5729_v43  ;;  %v5732_v8 = vsel %vm1399_vm3, %v9311_v27, 0.0  ;;  %v6421_v43 = vld [vmem:[%s8640_s30 + $0xe] sm:$0x3] }
 0xa72   : > { %5733 = vadd.xlane.f32.xlu1 %v5732_v8 }
 0xa73   : > { %v9317_v11 = vpop.eup %7709 }
 0xa74   : > { %v9319_v12 = vpop.eup %7711  ;;  %v5735_v25 = vsel %vm1399_vm3, %v9317_v11, 0.0 }
 0xa75   : > { %5736 = vadd.xlane.f32.xlu0 %v5735_v25  ;;  %v5738_v35 = vsel %vm1399_vm3, %v9319_v12, 0.0 }
 0xa76   : > { %5739 = vadd.xlane.f32.xlu1 %v5738_v35 }
 0xa87   : > { %6296 = vrot.lane.b32.xlu1 %v8501_v52, %s7971_s8  ;;  %v6066_v52 = vpop.permute.xlu0 %6065 }
 0xa8b   : > { %3581 = vrot.lane.b32.xlu1 %v9024_v22, %s7972_s15  ;;  %6219 = vrot.lane.b32.xlu0 %v8505_v53, %s7971_s8 }
 0xa8f   : > { %3585 = vrot.lane.b32.xlu1 %v9026_v24, %s7972_s15  ;;  %3579 = vrot.lane.b32.xlu0 %v9020_v23, %s7972_s15  ;;  %v5912_v24 = vpop.permute.xlu1 %5911 }
 0xa93   : > { %3589 = vrot.lane.b32.xlu1 %v9030_v30, %s7972_s15  ;;  %3583 = vrot.lane.b32.xlu0 %v9022_v14, %s7972_s15 }
 0xa97   : > { %3593 = vrot.lane.b32.xlu1 %v9038_v3, %s7972_s15  ;;  %3587 = vrot.lane.b32.xlu0 %v9028_v26, %s7972_s15 }
 0xa9b   : > { %4982 = vrot.lane.b32.xlu1 %v9253_v61, %s7973_s25  ;;  %3591 = vrot.lane.b32.xlu0 %v9032_v31, %s7972_s15  ;;  %v6414_v31 = vld [vmem:[%s8640_s30] sm:$0x3]  ;;  %v6416_v61 = vld [vmem:[%s8640_s30 + $0x4] sm:$0x3] }
 0xa9f   : > { %4986 = vrot.lane.b32.xlu1 %v9255_v41, %s7973_s25  ;;  %4980 = vrot.lane.b32.xlu0 %v9249_v29, %s7973_s25 }
 0xaa3   : > { %4990 = vrot.lane.b32.xlu1 %v9259_v60, %s7973_s25  ;;  %4984 = vrot.lane.b32.xlu0 %v9251_v4, %s7973_s25 }
 0xaa7   : > { %4994 = vrot.lane.b32.xlu1 %v9267_v2, %s7973_s25  ;;  %4988 = vrot.lane.b32.xlu0 %v9257_v63, %s7973_s25  ;;  %v5989_v63 = vpop.permute.xlu1 %5988 }
 0xaab   : > { %4992 = vrot.lane.b32.xlu0 %v9261_v20, %s7973_s25  ;;  %v6143_v60 = vpop.permute.xlu1 %6142 }
 0xac5   : > { %v5719_v53 = vpop.xlane.xlu0 %5718 }
 0xac6   : > { %7713 = vrcp.f32 %v5719_v53 }
 0xac9   : > { %v5725_v23 = vpop.xlane.xlu0 %5724 }
 0xaca   : > { %7715 = vrcp.f32 %v5725_v23 }
 0xad0   : > { %v7714_v14 = vpop.eup %7713 }
 0xad1   : > { %v5749_v22 = vmul.f32 %v7714_v14, %v9288_v47  ;;  %v6415_v47 = vld [vmem:[%s8640_s30 + $0x2] sm:$0x3] }
 0xad3   : > { %v6422_v26 = vmul.f32 0.25, %v5749_v22  ;;  %7428 = vmatmul.mubr.msk.f32.vlgmr.msra.gmra.mrb[56].mxu0 %vm1497_vm5, %v5749_v22 }
 0xad4   : > { %v7716_v30 = vpop.eup %7715  ;;  %7436 = vmatpush3.msk.msra.mxu0 %vm1501_vm4, %v5912_v24  ;;  %7437 = vmatprep.mubr.msk.f32.mxu0 %vm7964_vm1, %v7963_v54 }
 0xad5   : > { %v6430_v3 = vadd.f32 %v6422_v26, %v6414_v31  ;;  %v5751_v29 = vmul.f32 %v7716_v30, %v9292_v48  ;;  %7445 = vmatprep.subr.mxu0 %v7963_v54 }
 0xad7   : > { %6438 = vst.msk [vmem:[%s8640_s30] sm:$0x3] %vm1399_vm3, %v6430_v3  ;;  %v6424_v4 = vmul.f32 0.25, %v5751_v29  ;;  %7438 = vmatmul.mubr.msk.f32.vlgmr.msra.gmra.mrb[58].mxu0 %vm1497_vm5, %v5751_v29 }
 0xad8   : > { %7446 = vmatpush3.msk.msra.mxu0 %vm1501_vm4, %v6066_v52  ;;  %7447 = vmatprep.mubr.msk.f32.mxu0 %vm7964_vm1, %v7963_v54 }
 0xad9   : > { %v6432_v41 = vadd.f32 %v6424_v4, %v6416_v61  ;;  %7455 = vmatprep.subr.mxu0 %v7963_v54 }
 0xadb   : > { %6440 = vst.msk [vmem:[%s8640_s30 + $0x4] sm:$0x3] %vm1399_vm3, %v6432_v41  ;;  %v6454_v41 = vld [vmem:[#allocation11] sm:$0xff] }
 0xaf6   : > { %v5722_v20 = vpop.xlane.xlu1 %5721 }
 0xaf7   : > { %7717 = vrcp.f32 %v5722_v20 }
 0xafa   : > { %v5728_v2 = vpop.xlane.xlu1 %5727 }
 0xafb   : > { %7719 = vrcp.f32 %v5728_v2 }
 0xafe   : > { %v5731_v37 = vpop.xlane.xlu0 %5730 }
 0xaff   : > { %7721 = vrcp.f32 %v5731_v37  ;;  %v5734_v55 = vpop.xlane.xlu1 %5733  ;;  %v6456_v37 = vld [vmem:[#allocation11 + $0x10] sm:$0xff] }
 0xb00   : > { %7723 = vrcp.f32 %v5734_v55  ;;  %v6457_v55 = vld [vmem:[#allocation11 + $0x18] sm:$0xff] }
 0xb01   : > { %v7718_v18 = vpop.eup %7717 }
 0xb02   : > { %v5750_v40 = vmul.f32 %v7718_v18, %v9297_v9  ;;  %v5737_v44 = vpop.xlane.xlu0 %5736  ;;  %v6419_v9 = vld [vmem:[%s8640_s30 + $0xa] sm:$0x3]  ;;  %v7496_v18 = vpack.c.bf16 %v6457_v55, %v6456_v37 }
 0xb03   : > { %7725 = vrcp.f32 %v5737_v44  ;;  %v5740_v7 = vpop.xlane.xlu1 %5739 }
 0xb04   : > { %v6423_v46 = vmul.f32 0.25, %v5750_v40  ;;  %7727 = vrcp.f32 %v5740_v7  ;;  %7433 = vmatmul.mubr.msk.f32.vlgmr.msra.gmra.mrb[60].mxu1 %vm1497_vm5, %v5750_v40 }
 0xb05   : > { %v7720_v45 = vpop.eup %7719  ;;  %7441 = vmatpush3.msk.msra.mxu1 %vm1501_vm4, %v5989_v63  ;;  %7442 = vmatprep.mubr.msk.f32.mxu1 %vm7964_vm1, %v7963_v54  ;;  %v6455_v63 = vld [vmem:[#allocation11 + $0x8] sm:$0xff] }
 0xb06   : > { %v6431_v49 = vadd.f32 %v6423_v46, %v6415_v47  ;;  %v5752_v48 = vmul.f32 %v7720_v45, %v9304_v58  ;;  %v6220_v51 = vpop.permute.xlu0 %6219  ;;  %7450 = vmatprep.subr.mxu1 %v7963_v54 }
 0xb07   : > { %v6297_v50 = vpop.permute.xlu1 %6296 }
 0xb08   : > { %6439 = vst.msk [vmem:[%s8640_s30 + $0x2] sm:$0x3] %vm1399_vm3, %v6431_v49  ;;  %v6425_v33 = vmul.f32 0.25, %v5752_v48  ;;  %7443 = vmatmul.mubr.msk.f32.vlgmr.msra.gmra.mrb[62].mxu1 %vm1497_vm5, %v5752_v48 }
 0xb09   : > { %v7722_v1 = vpop.eup %7721  ;;  %7451 = vmatpush3.msk.msra.mxu1 %vm1501_vm4, %v6143_v60  ;;  %7452 = vmatprep.mubr.msk.f32.mxu1 %vm7964_vm1, %v7963_v54  ;;  %v7492_v60 = vpack.c.bf16 %v6455_v63, %v6454_v41 }
 0xb0a   : > { %v7724_v10 = vpop.eup %7723  ;;  %v6433_v13 = vadd.f32 %v6425_v33, %v6417_v57  ;;  %v5753_v16 = vmul.f32 %v7722_v1, %v9309_v21  ;;  %v3580_v0 = vpop.permute.xlu0 %3579  ;;  %7460 = vmatprep.subr.mxu1 %v7963_v54 }
 0xb0b   : > { %v5754_v38 = vmul.f32 %v7724_v10, %v9311_v27  ;;  %3604 = vst.msk [vmem:[#allocation2] sm:$0x3] %vm3603_vm7, %v3580_v0  ;;  %v3582_v19 = vpop.permute.xlu1 %3581 }
 0xb0c   : > { %6441 = vst.msk [vmem:[%s8640_s30 + $0x6] sm:$0x3] %vm1399_vm3, %v6433_v13  ;;  %v6426_v56 = vmul.f32 0.25, %v5753_v16  ;;  %7448 = vmatmul.mubr.msk.f32.vlgmr.msra.gmra.mrb[60].mxu0 %vm1497_vm5, %v5753_v16 }
 0xb0d   : > { %3605 = vst.msk [vmem:[#allocation2 + $0x2] sm:$0x3] %vm3603_vm7, %v3582_v19  ;;  %v7726_v34 = vpop.eup %7725  ;;  %v6427_v59 = vmul.f32 0.25, %v5754_v38  ;;  %7453 = vmatmul.mubr.msk.f32.vlgmr.msra.gmra.mrb[64].mxu1 %vm1497_vm5, %v5754_v38  ;;  %7456 = vmatpush3.msk.msra.mxu0 %vm1501_vm4, %v6220_v51 }
 0xb0e   : > { %v7728_v42 = vpop.eup %7727  ;;  %v6434_v39 = vadd.f32 %v6426_v56, %v6418_v32  ;;  %v5755_v36 = vmul.f32 %v7726_v34, %v9317_v11  ;;  %7461 = vmatpush3.msk.msra.mxu1 %vm1501_vm4, %v6297_v50  ;;  %v3584_v28 = vpop.permute.xlu0 %3583  ;;  %7457 = vmatprep.mubr.msk.f32.mxu0 %vm7964_vm1, %v7963_v54 }
 0xb0f   : > { %v6435_v5 = vadd.f32 %v6427_v59, %v6419_v9  ;;  %v5756_v62 = vmul.f32 %v7728_v42, %v9319_v12  ;;  %3606 = vst.msk [vmem:[#allocation2 + $0x4] sm:$0x3] %vm3603_vm7, %v3584_v28  ;;  %v3586_v6 = vpop.permute.xlu1 %3585  ;;  %7462 = vmatprep.mubr.msk.f32.mxu1 %vm7964_vm1, %v7963_v54  ;;  %7493 = vmatprep.subr.bf16.mxu0 %v7492_v60 }
 0xb10   : > { %6442 = vst.msk [vmem:[%s8640_s30 + $0x8] sm:$0x3] %vm1399_vm3, %v6434_v39  ;;  %v6428_v58 = vmul.f32 0.25, %v5755_v36  ;;  %7458 = vmatmul.mubr.msk.f32.vlgmr.msra.gmra.mrb[62].mxu0 %vm1497_vm5, %v5755_v36 }
 0xb11   : > { %3607 = vst.msk [vmem:[#allocation2 + $0x6] sm:$0x3] %vm3603_vm7, %v3586_v6  ;;  %v6429_v21 = vmul.f32 0.25, %v5756_v62  ;;  %7463 = vmatmul.mubr.msk.f32.vlgmr.msra.gmra.mrb[66].mxu1 %vm1497_vm5, %v5756_v62  ;;  %7495 = vmatpush3.bf16.msra.mxu0 %v7492_v60 }
 0xb12   : > { %6443 = vst.msk [vmem:[%s8640_s30 + $0xa] sm:$0x3] %vm1399_vm3, %v6435_v5  ;;  %v6436_v27 = vadd.f32 %v6428_v58, %v6420_v15  ;;  %v3588_v8 = vpop.permute.xlu0 %3587  ;;  %7497 = vmatprep.subr.bf16.mxu0 %v7496_v18 }
 0xb13   : > { %v6437_v11 = vadd.f32 %v6429_v21, %v6421_v43  ;;  %3608 = vst.msk [vmem:[#allocation2 + $0x8] sm:$0x3] %vm3603_vm7, %v3588_v8  ;;  %v3590_v54 = vpop.permute.xlu1 %3589 }
 0xb14   : > { %6444 = vst.msk [vmem:[%s8640_s30 + $0xc] sm:$0x3] %vm1399_vm3, %v6436_v27  ;;  %v6966_v27 = vld [vmem:[%s9518_s7] ss:$0 sm:$0xff] }
 0xb15   : > { %3609 = vst.msk [vmem:[#allocation2 + $0xa] sm:$0x3] %vm3603_vm7, %v3590_v54  ;;  %7499 = vmatpush3.bf16.msra.mxu0 %v7496_v18 }
 0xb16   : > { %6445 = vst.msk [vmem:[%s8640_s30 + $0xe] sm:$0x3] %vm1399_vm3, %v6437_v11  ;;  %v3592_v12 = vpop.permute.xlu0 %3591  ;;  %s6640_s30 = scalar_lea.sflag [#allocation5], %s8278_s3 }
 0xb17   : > { %3610 = vst.msk [vmem:[#allocation2 + $0xc] sm:$0x3] %vm3603_vm7, %v3592_v12  ;;  %v3594_v25 = vpop.permute.xlu1 %3593 }
 0xb18   : > { %3611 = vst.msk [vmem:[#allocation2 + $0xe] sm:$0x3] %vm3603_vm7, %v3594_v25 }
 0xb1a   : > { %v4981_v35 = vpop.permute.xlu0 %4980 }
 0xb1b   : > { %5005 = vst.msk [vmem:[#allocation2] sm:$0x3] %vm5004_vm8, %v4981_v35  ;;  %v4983_v52 = vpop.permute.xlu1 %4982 }
 0xb1c   : > { %5006 = vst.msk [vmem:[#allocation2 + $0x2] sm:$0x3] %vm5004_vm8, %v4983_v52 }
 0xb1e   : > { %v4985_v53 = vpop.permute.xlu0 %4984 }
 0xb1f   : > { %5007 = vst.msk [vmem:[#allocation2 + $0x4] sm:$0x3] %vm5004_vm8, %v4985_v53  ;;  %v4987_v23 = vpop.permute.xlu1 %4986 }
 0xb20   : > { %5008 = vst.msk [vmem:[#allocation2 + $0x6] sm:$0x3] %vm5004_vm8, %v4987_v23 }
 0xb22   : > { %v4989_v14 = vpop.permute.xlu0 %4988 }
 0xb23   : > { %5009 = vst.msk [vmem:[#allocation2 + $0x8] sm:$0x3] %vm5004_vm8, %v4989_v14  ;;  %v4991_v22 = vpop.permute.xlu1 %4990 }
 0xb24   : > { %5010 = vst.msk [vmem:[#allocation2 + $0xa] sm:$0x3] %vm5004_vm8, %v4991_v22 }
 0xb26   : > { %v4993_v24 = vpop.permute.xlu0 %4992 }
 0xb27   : > { %5011 = vst.msk [vmem:[#allocation2 + $0xc] sm:$0x3] %vm5004_vm8, %v4993_v24  ;;  %v4995_v26 = vpop.permute.xlu1 %4994 }
 0xb28   : > { %5012 = vst.msk [vmem:[#allocation2 + $0xe] sm:$0x3] %vm5004_vm8, %v4995_v26 }
 0xba6   : > { %v5830_v30 = vpop.f32.mrb[56].mxu0 }
 0xba7   : > { %6381 = vrot.lane.b32.xlu0 %v5830_v30, %s7974_s14  ;;  %v7429_v31 = vpop.f32.mrb[57].mxu0 }
 0xbaa   : > { %v5984_v3 = vpop.f32.mrb[58].mxu0 }
 0xbab   : > { %6385 = vrot.lane.b32.xlu0 %v5984_v3, %s7974_s14  ;;  %v7439_v29 = vpop.f32.mrb[59].mxu0 }
 0xbd7   : > { %v5907_v4 = vpop.f32.mrb[60].mxu1 }
 0xbd8   : > { %6383 = vrot.lane.b32.xlu1 %v5907_v4, %s7974_s14  ;;  %v7434_v61 = vpop.f32.mrb[61].mxu1 }
 0xbdb   : > { %v6061_v20 = vpop.f32.mrb[62].mxu1 }
 0xbdc   : > { %6387 = vrot.lane.b32.xlu1 %v6061_v20, %s7974_s14  ;;  %v7444_v2 = vpop.f32.mrb[63].mxu1 }
 0xbdf   : > { %v6138_v40 = vpop.f32.mrb[60].mxu0 }
 0xbe0   : > { %v6215_v44 = vpop.f32.mrb[64].mxu1  ;;  %6389 = vrot.lane.b32.xlu0 %v6138_v40, %s7974_s14  ;;  %v7449_v7 = vpop.f32.mrb[61].mxu0 }
 0xbe1   : > { %6391 = vrot.lane.b32.xlu1 %v6215_v44, %s7974_s14  ;;  %v7454_v46 = vpop.f32.mrb[65].mxu1 }
 0xbe3   : > { %v6292_v45 = vpop.f32.mrb[62].mxu0 }
 0xbe4   : > { %v6369_v47 = vpop.f32.mrb[66].mxu1  ;;  %6393 = vrot.lane.b32.xlu0 %v6292_v45, %s7974_s14  ;;  %v7459_v49 = vpop.f32.mrb[63].mxu0 }
 0xbe5   : > { %6395 = vrot.lane.b32.xlu1 %v6369_v47, %s7974_s14  ;;  %v7464_v48 = vpop.f32.mrb[67].mxu1 }
 0xc19   : > { %v6382_v51 = vpop.permute.xlu0 %6381 }
 0xc1a   : > { %6406 = vst.msk [vmem:[#allocation2] sm:$0x3] %vm6405_vm9, %v6382_v51 }
 0xc1d   : > { %v6386_v50 = vpop.permute.xlu0 %6385 }
 0xc1e   : > { %6408 = vst.msk [vmem:[#allocation2 + $0x4] sm:$0x3] %vm6405_vm9, %v6386_v50 }
 0xc21   : > { %v6446_v16 = vld [vmem:[#allocation2] sm:$0x3] }
 0xc25   : > { %v6448_v19 = vld [vmem:[#allocation2 + $0x4] sm:$0x3] }
 0xc4a   : > { %v6384_v33 = vpop.permute.xlu1 %6383 }
 0xc4b   : > { %6407 = vst.msk [vmem:[#allocation2 + $0x2] sm:$0x3] %vm6405_vm9, %v6384_v33 }
 0xc4e   : > { %v6388_v1 = vpop.permute.xlu1 %6387 }
 0xc4f   : > { %6409 = vst.msk [vmem:[#allocation2 + $0x6] sm:$0x3] %vm6405_vm9, %v6388_v1 }
 0xc52   : > { %v6390_v57 = vpop.permute.xlu0 %6389  ;;  %v6447_v10 = vld [vmem:[#allocation2 + $0x2] sm:$0x3] }
 0xc53   : > { %6410 = vst.msk [vmem:[#allocation2 + $0x8] sm:$0x3] %vm6405_vm9, %v6390_v57  ;;  %v6392_v13 = vpop.permute.xlu1 %6391  ;;  %v6473_v0 = vcombine.low %v6446_v16, %v6447_v10 }
 0xc54   : > { %6411 = vst.msk [vmem:[#allocation2 + $0xa] sm:$0x3] %vm6405_vm9, %v6392_v13 }
 0xc55   : > { %v6481_v59 = vrot.slane %v6473_v0, %v8308_v17 }
 0xc56   : > { %v6394_v38 = vpop.permute.xlu0 %6393  ;;  %v6449_v56 = vld [vmem:[#allocation2 + $0x6] sm:$0x3] }
 0xc57   : > { %6412 = vst.msk [vmem:[#allocation2 + $0xc] sm:$0x3] %vm6405_vm9, %v6394_v38  ;;  %v6396_v34 = vpop.permute.xlu1 %6395  ;;  %v6474_v32 = vcombine.low %v6448_v19, %v6449_v56 }
 0xc58   : > { %6413 = vst.msk [vmem:[#allocation2 + $0xe] sm:$0x3] %vm6405_vm9, %v6396_v34 }
 0xc59   : > { %v6488_v42 = vrot.slane %v6474_v32, %v8308_v17 }
 0xc5a   : > { %v6450_v9 = vld [vmem:[#allocation2 + $0x8] sm:$0x3] }
 0xc5b   : > { %v6489_v39 = vcombine.low %v6481_v59, %v6488_v42  ;;  %v6451_v36 = vld [vmem:[#allocation2 + $0xa] sm:$0x3] }
 0xc5c   : > { %v6490_v5 = vcombine.low %v6450_v9, %v6451_v36 }
 0xc5d   : > { %7473 = vmatprep.mubr.msk.f32.mxu0 %vm520_vm0, %v6489_v39 }
 0xc5e   : > { %v6452_v28 = vld [vmem:[#allocation2 + $0xc] sm:$0x3]  ;;  %v6498_v58 = vrot.slane %v6490_v5, %v8308_v17 }
 0xc5f   : > { %v6453_v62 = vld [vmem:[#allocation2 + $0xe] sm:$0x3] }
 0xc60   : > { %v6491_v6 = vcombine.low %v6452_v28, %v6453_v62 }
 0xc62   : > { %v6505_v15 = vrot.slane %v6491_v6, %v8308_v17 }
 0xc64   : > { %v6506_v21 = vcombine.low %v6498_v58, %v6505_v15 }
 0xc66   : > { %7474 = vmatmul.mubr.msk.f32.vlgmr.msra.gmra.mrb[64].mxu0 %vm520_vm0, %v6506_v21 }
 0xd39   : > { %v7475_v43 = vpop.f32.mrb[64].mxu0 }
 0xd3a   : > { %v6583_v8 = vadd.f32 %v7475_v43, %v6966_v27  ;;  %v6577_v11 = vpop.f32.mrb[65].mxu0 }
 0xd3b   : > { %v6578_v54 = vadd.f32 %v6966_v27, %v6577_v11 }
 0xd3c   : > { %v6605_v12 = vcombine.high %v6583_v8, %v6583_v8  ;;  %v6612_v25 = vrot.slane %v6583_v8, %v8308_v17 }
 0xd3d   : > { %v6588_v35 = vcombine.high %v6578_v54, %v6578_v54  ;;  %v6595_v52 = vrot.slane %v6578_v54, %v8308_v17 }
 0xd3e   : > { %v6619_v53 = vrot.slane %v6605_v12, %v8308_v17  ;;  %v6620_v23 = vcombine.high %v6612_v25, %v6612_v25  ;;  %6635 = vst.msk [vmem:[%s434_s21 + $0x8] sm:$0x3] %vm6630_vm10, %v6612_v25 }
 0xd3f   : > { %v6602_v14 = vrot.slane %v6588_v35, %v8308_v17  ;;  %v6603_v22 = vcombine.high %v6595_v52, %v6595_v52  ;;  %6631 = vst.msk [vmem:[%s434_s21] sm:$0x3] %vm6630_vm10, %v6595_v52 }
 0xd40   : > { %v6621_v24 = vcombine.high %v6619_v53, %v6619_v53  ;;  %6636 = vst.msk [vmem:[%s434_s21 + $0xa] sm:$0x3] %vm6630_vm10, %v6620_v23  ;;  %6637 = vst.msk [vmem:[%s434_s21 + $0xc] sm:$0x3] %vm6630_vm10, %v6619_v53 }
 0xd41   : > { %v6604_v17 = vcombine.high %v6602_v14, %v6602_v14  ;;  %6632 = vst.msk [vmem:[%s434_s21 + $0x2] sm:$0x3] %vm6630_vm10, %v6603_v22  ;;  %6633 = vst.msk [vmem:[%s434_s21 + $0x4] sm:$0x3] %vm6630_vm10, %v6602_v14 }
 0xd42   : > { %6638 = vst.msk [vmem:[%s434_s21 + $0xe] sm:$0x3] %vm6630_vm10, %v6621_v24 }
 0xd43   : > { %6634 = vst.msk [vmem:[%s434_s21 + $0x6] sm:$0x3] %vm6630_vm10, %v6604_v17 }
 0xd44   : > { %7886 = shalt.err (!%p7883_p9)
}
 0xd45   : > { %s7887_s8 = scalar_lea.hbm %s9461_s28, 256  ;;  %s7891_s14 = scalar_lea.hbm %s9550_s24, 512 }
 0xd46   : > { %p7888_p13 = scmp.ne.s32.totalorder %s9461_s28, %s7887_s8  ;;  %p7892_p12 = scmp.lt.u32.totalorder %s9461_s28, %s9550_s24 }
 0xd47   : > { %p7893_p1 = scmp.lt.u32.totalorder %s7891_s14, %s7887_s8  ;;  %p7895_p4 = scmp.lt.u32.totalorder %s7887_s8, %s9461_s28 }
 0xd48   : > { %p7889_p11 = pnand %p7888_p13, %p8182_p5 }
 0xd49   : > { %p7894_p2 = por %p7893_p1, %p7892_p12 }
 0xd4a   : > { %p7890_p7 = pneg %p7889_p11 }
 0xd4b   : > { %p7896_p0 = por %p7895_p4, %p7894_p2 }
 0xd4d   : > { %p7897_p8 = pnand %p7896_p0, %p7890_p7 }
 0xd4f   : > { %7900 = shalt.err (!%p7897_p8)
}
 0xd50   : > { %s7976_s22 = smov 32   ;;  %s7977_s21 = smov 2  }
 0xd51   : > { %7516 = dma.vmem_to_hbm [thread:$0]  (%p8182_p5), %s9463_s0, 256, %s9461_s28, %s6640_s30, %s7976_s22, %s7976_s22, %s7977_s21  }
 0xd52 PF: > { %s9551_s13 = sld [smem:[#allocation18_spill]]  ;;  %s9552_s18 = sld [smem:[#allocation19_spill]] }
 0xd53   : > { %p9554_p10 = scmp.ge.s32.totalorder %s7951_s12, 2 }
 0xd58   : > { %s6677_s19 = sand.u32 1, %s9551_s13   ;;  %p9553_p6 = scmp.ne.s32.totalorder %s9552_s18, 0 }
 0xd59   : > { %s6678_s29 = scalar_lea.sflag [#allocation5], %s6677_s19 }
 0xd5a   : > { %p7536_p3 = pnand %p9554_p10, %p9553_p6 }
 0xd5c   : > { %7934 = dma.done.wait (!%p7536_p3), %s6678_s29, 256  }
 0xd5d   : > { %7936 = vsyncadd (!%p7536_p3), %s6678_s29, 4294967040  ;;  %p27_p9 = scmp.ge.s32.totalorder %s8168_s20, 4   ;;  %s9555_s30 = smov %s7943_s10 }
 0xd5e   : > { %s9556_s10 = smov %s7947_s11  ;;  %s9557_s11 = smov %s8178_s16 }
 0xd5f   : > { %s9558_s12 = smov %s8168_s20  ;;  %29 = sbr.rel (!%p27_p9) target bundleno = 13 (0xd), region = 134 }
 0xd66   :  { %6691 = vsyncpa [#allocation4], 1 }
 0xd67   :  { %6693 = vsyncpa [#allocation4 + $0x1], 1 }
 0xd68   :  { %6694 = vsyncpa [#allocation7], 1 }
 0xd69   :  { %6696 = vsyncpa [#allocation7 + $0x1], 1 }
 0xd6a   :  { %6697 = vsyncpa [#allocation10], 1 }
 0xd6b   :  { %6698 = vsyncpa [#allocation5], 1 }
 0xd6c   :  { %6700 = vsyncpa [#allocation5 + $0x1], 1 }

</bundles_post_ra>
